<compile_context>
chip_gen: v6e
topology: v6e:2x2x1
jax: 0.10.0
libtpu: 0.0.40
codegen_flags: <defaults>
</compile_context>

<pallas_src>
import functools
import math

import jax
import jax.numpy as jnp
import numpy as np
from jax.experimental import pallas as pl
from jax.experimental.pallas import tpu as pltpu

# config stand-ins (synthetic, small)
LATENT_DIM = 16
MAX_LEN = 64


# ----------------------------------------------------------------------------
# small helpers used inside the kernel
# ----------------------------------------------------------------------------
def _erf(x):
    # Abramowitz & Stegun 7.1.26 polynomial, |err| < 1.5e-7 — matches PyTorch's
    # exact-erf F.gelu to ~1e-6 in f32.  (exp lands on the EUP slot.)
    a1, a2, a3, a4, a5 = 0.254829592, -0.284496736, 1.421413741, -1.453152027, 1.061405429
    p = 0.3275911
    sgn = jnp.where(x >= 0.0, 1.0, -1.0)
    ax = jnp.abs(x)
    t = 1.0 / (1.0 + p * ax)
    poly = ((((a5 * t + a4) * t + a3) * t + a2) * t + a1) * t
    return sgn * (1.0 - poly * jnp.exp(-ax * ax))


def _gelu_exact(x):
    return 0.5 * x * (1.0 + _erf(x * (1.0 / math.sqrt(2.0))))


def _layer_norm(v, g, b, eps=1e-5):
    mu = jnp.mean(v, axis=-1, keepdims=True)
    var = jnp.mean((v - mu) ** 2, axis=-1, keepdims=True)
    return (v - mu) * jax.lax.rsqrt(var + eps) * g + b


# ----------------------------------------------------------------------------
# fused decoder forward kernel (single block, everything VMEM-resident)
# ----------------------------------------------------------------------------
def _fused_decoder_kernel(
        x_ref, lat_ref, latw_ref, latb_ref,
        wqkv_ref, bqkv_ref, wo_ref, bo_ref, ln1g_ref, ln1b_ref,
        wvc_ref, bvc_ref, woc_ref, boc_ref, ln2g_ref, ln2b_ref,
        w1_ref, b1_ref, w2_ref, b2_ref, ln3g_ref, ln3b_ref,
        outw_ref, outb_ref, out_ref,
        *, num_layers, nhead, batch, seq_len):
    x = x_ref[...]                      # (N, D), N = batch*seq_len, batch-contiguous rows
    N, D = x.shape
    hd = D // nhead
    scale = 1.0 / math.sqrt(hd)

    # Block-diagonal causal additive bias, generated in-kernel (no O(N^2) DMA).
    # Built as an OR over the (static, small) batch blocks to avoid vector
    # integer div/mod.  TODO(synk): for large batch, move batch to a grid axis.
    ri = jax.lax.broadcasted_iota(jnp.int32, (N, N), 0)
    ci = jax.lax.broadcasted_iota(jnp.int32, (N, N), 1)
    allowed = None
    for b in range(batch):
        lo, hi = b * seq_len, (b + 1) * seq_len
        blk = (ri >= lo) & (ri < hi) & (ci >= lo) & (ci <= ri)
        allowed = blk if allowed is None else (allowed | blk)
    mask = jnp.where(allowed, 0.0, -1e30)                              # (N, N) f32

    # memory = latent_to_hidden(latent): one memory token per sample -> (B, D)
    mem = (jnp.dot(lat_ref[...], latw_ref[...], preferred_element_type=jnp.float32)
           + latb_ref[...])

    for l in range(num_layers):
        # ---------- multi-head causal self-attention ----------
        # ONE fused, lane-dense QKV projection: (N, D) x (D, 3D)
        qkv = (jnp.dot(x, wqkv_ref[l], preferred_element_type=jnp.float32)
               + bqkv_ref[l])                                          # (N, 3D)
        wo_l = wo_ref[l]                                               # (D, D)

        # Per-head score / weighted-sum as statically unrolled 2-D dots on
        # lane-slice views of qkv; the head-concat is folded into accumulated
        # per-head out-projection matmuls (no lane-boundary slice copies).
        sa = None
        for h in range(nhead):
            qh = qkv[:, 0 * D + h * hd:0 * D + (h + 1) * hd]           # (N, hd)
            kh = qkv[:, 1 * D + h * hd:1 * D + (h + 1) * hd]
            vh = qkv[:, 2 * D + h * hd:2 * D + (h + 1) * hd]
            # q @ k^T without materializing a transpose
            sh = jax.lax.dot_general(qh, kh, (((1,), (1,)), ((), ())),
                                     preferred_element_type=jnp.float32)
            sh = sh * scale + mask
            sh = sh - jnp.max(sh, axis=-1, keepdims=True)
            ph = jnp.exp(sh)
            ph = ph / jnp.sum(ph, axis=-1, keepdims=True)              # exact softmax
            oh = jnp.dot(ph, vh, preferred_element_type=jnp.float32)   # (N, hd)
            contrib = jnp.dot(oh, wo_l[h * hd:(h + 1) * hd, :],
                              preferred_element_type=jnp.float32)      # (N, D)
            sa = contrib if sa is None else sa + contrib
        sa = sa + bo_ref[l]
        x = _layer_norm(x + sa, ln1g_ref[l], ln1b_ref[l])

        # ---------- cross-attention over the single memory token ----------
        # softmax over exactly one key == 1, so only the V / out projections
        # matter (mathematically exact for memory length 1).
        vmem = jnp.dot(mem, wvc_ref[l], preferred_element_type=jnp.float32) + bvc_ref[l]
        ca_b = jnp.dot(vmem, woc_ref[l], preferred_element_type=jnp.float32) + boc_ref[l]
        # rows of a sample are contiguous -> broadcast its row across seq_len rows
        ca = jnp.broadcast_to(ca_b[:, None, :], (batch, seq_len, D)).reshape(N, D)
        x = _layer_norm(x + ca, ln2g_ref[l], ln2b_ref[l])

        # ---------- position-wise feed-forward (exact-erf GELU) ----------
        h1 = jnp.dot(x, w1_ref[l], preferred_element_type=jnp.float32) + b1_ref[l]
        h1 = _gelu_exact(h1)
        ff = jnp.dot(h1, w2_ref[l], preferred_element_type=jnp.float32) + b2_ref[l]
        x = _layer_norm(x + ff, ln3g_ref[l], ln3b_ref[l])

    # ---------- output projection: lane-dense (vocab padded to 128-multiple) ----------
    out_ref[...] = (jnp.dot(x, outw_ref[...], preferred_element_type=jnp.float32)
                    + outb_ref[...])


# ----------------------------------------------------------------------------
# host-side parameter packing (fused QKV kept lane-dense, cross-attn V slice)
# ----------------------------------------------------------------------------
_PACK_ORDER = ("wqkv", "bqkv", "wo", "bo", "ln1g", "ln1b",
               "wvc", "bvc", "woc", "boc", "ln2g", "ln2b",
               "w1", "b1", "w2", "b2", "ln3g", "ln3b")


def _pack_layer_params(params, d_model):
    D = d_model
    acc = {n: [] for n in _PACK_ORDER}
    for lp in params["layers"]:
        acc["wqkv"].append(lp["w_in_s"])            # (D, 3D) kept fused & lane-dense
        acc["bqkv"].append(lp["b_in_s"])            # (1, 3D)
        acc["wo"].append(lp["wo_s"]);   acc["bo"].append(lp["bo_s"])
        acc["ln1g"].append(lp["ln1g"]); acc["ln1b"].append(lp["ln1b"])
        # cross-attention over a length-1 memory: only the V projection is live,
        # so 2/3 of w_in_c is never shipped to VMEM.
        acc["wvc"].append(lp["w_in_c"][:, 2 * D:3 * D])
        acc["bvc"].append(lp["b_in_c"][:, 2 * D:3 * D])
        acc["woc"].append(lp["wo_c"]);  acc["boc"].append(lp["bo_c"])
        acc["ln2g"].append(lp["ln2g"]); acc["ln2b"].append(lp["ln2b"])
        acc["w1"].append(lp["w1"]);     acc["b1"].append(lp["b1"])
        acc["w2"].append(lp["w2"]);     acc["b2"].append(lp["b2"])
        acc["ln3g"].append(lp["ln3g"]); acc["ln3b"].append(lp["ln3b"])
    return [jnp.stack(acc[n], axis=0) for n in _PACK_ORDER]


# ----------------------------------------------------------------------------
# module-level glue: embedding, positional encoding, parameters, full forward
# ----------------------------------------------------------------------------
def positional_encoding(max_len, d_model):
    position = np.arange(max_len, dtype=np.float32)[:, None]
    div_term = np.exp(
        np.arange(0, d_model, 2, dtype=np.float32) * (-math.log(10000.0) / d_model)
    )
    pe = np.zeros((max_len, d_model), dtype=np.float32)
    pe[:, 0::2] = np.sin(position * div_term)
    pe[:, 1::2] = np.cos(position * div_term)
    return jnp.asarray(pe)


def init_params(key, vocab_size, d_model, nhead, num_layers, latent_dim):
    def lin(k, din, dout):
        return (
            (0.02 * jax.random.normal(k, (din, dout))).astype(jnp.float32),
            jnp.zeros((1, dout), jnp.float32),
        )

    keys = jax.random.split(key, 3 + num_layers)
    params = {
        "embedding": (0.02 * jax.random.normal(keys[0], (vocab_size, d_model))).astype(jnp.float32),
    }
    params["lat_w"], params["lat_b"] = lin(keys[1], latent_dim, d_model)
    params["out_w"], params["out_b"] = lin(keys[2], d_model, vocab_size)

    layers = []
    for l in range(num_layers):
        ks = jax.random.split(keys[3 + l], 6)
        lp = {}
        lp["w_in_s"], lp["b_in_s"] = lin(ks[0], d_model, 3 * d_model)
        lp["wo_s"], lp["bo_s"] = lin(ks[1], d_model, d_model)
        lp["w_in_c"], lp["b_in_c"] = lin(ks[2], d_model, 3 * d_model)
        lp["wo_c"], lp["bo_c"] = lin(ks[3], d_model, d_model)
        lp["w1"], lp["b1"] = lin(ks[4], d_model, 4 * d_model)
        lp["w2"], lp["b2"] = lin(ks[5], 4 * d_model, d_model)
        for i in (1, 2, 3):
            lp[f"ln{i}g"] = jnp.ones((1, d_model), jnp.float32)
            lp[f"ln{i}b"] = jnp.zeros((1, d_model), jnp.float32)
        layers.append(lp)
    params["layers"] = layers
    return params


@functools.partial(jax.jit, static_argnames=("d_model", "nhead", "max_len"))
def _forward_impl(tgt, latent, params, *, d_model, nhead, max_len):
    B, S = tgt.shape
    N = B * S
    num_layers = len(params["layers"])
    vocab_size = params["out_w"].shape[1]
    assert d_model % nhead == 0

    # embedding * sqrt(d_model) + positional encoding (gather glue in JAX;
    # pe / packing constant-fold under jit).
    emb = params["embedding"][tgt] * math.sqrt(d_model)              # (B, S, D)
    pe = positional_encoding(max_len, d_model)[:S]                   # (S, D)
    x = (emb + pe[None, :, :]).astype(jnp.float32).reshape(N, d_model)

    packed = _pack_layer_params(params, d_model)

    # lane-dense output: pad vocab up to a multiple of 128 (zeros), slice after.
    vpad = ((vocab_size + 127) // 128) * 128
    out_w_pad = jnp.zeros((d_model, vpad), jnp.float32).at[:, :vocab_size].set(params["out_w"])
    out_b_pad = jnp.zeros((1, vpad), jnp.float32).at[:, :vocab_size].set(params["out_b"])

    vmem_spec = pl.BlockSpec(memory_space=pltpu.MemorySpace.VMEM)
    n_inputs = 4 + len(packed) + 2

    logits_pad = pl.pallas_call(
        functools.partial(_fused_decoder_kernel, num_layers=num_layers,
                          nhead=nhead, batch=B, seq_len=S),
        out_shape=jax.ShapeDtypeStruct((N, vpad), jnp.float32),
        in_specs=[vmem_spec] * n_inputs,
        out_specs=vmem_spec,
    )(x, latent.astype(jnp.float32), params["lat_w"], params["lat_b"],
      *packed, out_w_pad, out_b_pad)

    return logits_pad[:, :vocab_size].reshape(B, S, vocab_size)


def transformer_decoder_forward(tgt, latent, params, *, d_model, nhead, max_len,
                                tgt_mask=None):
    # TODO(synk): tgt_key_padding_mask (the `tgt_mask` argument) is only
    # supported as None; a non-None padding mask would need folding into the
    # in-kernel additive mask.
    assert tgt_mask is None
    return _forward_impl(tgt, latent, params,
                         d_model=d_model, nhead=nhead, max_len=max_len)


# ----------------------------------------------------------------------------
if __name__ == "__main__":
    vocab_size, d_model, nhead, num_layers = 32, 32, 4, 2
    B, S = 2, 8

    key = jax.random.PRNGKey(0)
    k_params, k_tgt, k_lat = jax.random.split(key, 3)

    params = init_params(k_params, vocab_size, d_model, nhead, num_layers, LATENT_DIM)
    tgt = jax.random.randint(k_tgt, (B, S), 0, vocab_size, dtype=jnp.int32)
    latent = jax.random.normal(k_lat, (B, LATENT_DIM), dtype=jnp.float32)

    logits = transformer_decoder_forward(
        tgt, latent, params, d_model=d_model, nhead=nhead, max_len=MAX_LEN
    )
    jax.block_until_ready(logits)
    assert logits.shape == (B, S, vocab_size) and logits.dtype == jnp.float32
    assert bool(jnp.all(jnp.isfinite(logits)))
    print("KERNEL_OK")
</pallas_src>

<mosaic_0001>
module attributes {stable_mosaic.version = 11 : i64} {
  func.func @_fused_decoder_kernel(%arg0: memref<16x32xf32, #tpu.memory_space<vmem>>, %arg1: memref<2x16xf32, #tpu.memory_space<vmem>>, %arg2: memref<16x32xf32, #tpu.memory_space<vmem>>, %arg3: memref<1x32xf32, #tpu.memory_space<vmem>>, %arg4: memref<2x32x96xf32, #tpu.memory_space<vmem>>, %arg5: memref<2x1x96xf32, #tpu.memory_space<vmem>>, %arg6: memref<2x32x32xf32, #tpu.memory_space<vmem>>, %arg7: memref<2x1x32xf32, #tpu.memory_space<vmem>>, %arg8: memref<2x1x32xf32, #tpu.memory_space<vmem>>, %arg9: memref<2x1x32xf32, #tpu.memory_space<vmem>>, %arg10: memref<2x32x32xf32, #tpu.memory_space<vmem>>, %arg11: memref<2x1x32xf32, #tpu.memory_space<vmem>>, %arg12: memref<2x32x32xf32, #tpu.memory_space<vmem>>, %arg13: memref<2x1x32xf32, #tpu.memory_space<vmem>>, %arg14: memref<2x1x32xf32, #tpu.memory_space<vmem>>, %arg15: memref<2x1x32xf32, #tpu.memory_space<vmem>>, %arg16: memref<2x32x128xf32, #tpu.memory_space<vmem>>, %arg17: memref<2x1x128xf32, #tpu.memory_space<vmem>>, %arg18: memref<2x128x32xf32, #tpu.memory_space<vmem>>, %arg19: memref<2x1x32xf32, #tpu.memory_space<vmem>>, %arg20: memref<2x1x32xf32, #tpu.memory_space<vmem>>, %arg21: memref<2x1x32xf32, #tpu.memory_space<vmem>>, %arg22: memref<32x128xf32, #tpu.memory_space<vmem>>, %arg23: memref<1x128xf32, #tpu.memory_space<vmem>>, %arg24: memref<16x128xf32, #tpu.memory_space<vmem>>) attributes {dimension_semantics = [], scalar_prefetch = 0 : i64, scratch_operands = 0 : i64, tpu.core_type = #tpu.core_type<tc>} {
    %c0 = arith.constant 0 : index
    %c0_0 = arith.constant 0 : index
    %0 = vector.load %arg0[%c0, %c0_0] : memref<16x32xf32, #tpu.memory_space<vmem>>, vector<16x32xf32>
    %1 = tpu.iota {dimensions = array<i32: 0>} : vector<16x16xi32>
    %2 = tpu.iota {dimensions = array<i32: 1>} : vector<16x16xi32>
    %c0_i32 = arith.constant 0 : i32
    %3 = vector.broadcast %c0_i32 : i32 to vector<16x16xi32>
    %4 = arith.cmpi sge, %1, %3 : vector<16x16xi32>
    %c8_i32 = arith.constant 8 : i32
    %5 = vector.broadcast %c8_i32 : i32 to vector<16x16xi32>
    %6 = arith.cmpi slt, %1, %5 : vector<16x16xi32>
    %7 = arith.andi %4, %6 : vector<16x16xi1>
    %c0_i32_1 = arith.constant 0 : i32
    %8 = vector.broadcast %c0_i32_1 : i32 to vector<16x16xi32>
    %9 = arith.cmpi sge, %2, %8 : vector<16x16xi32>
    %10 = arith.andi %7, %9 : vector<16x16xi1>
    %11 = arith.cmpi sle, %2, %1 : vector<16x16xi32>
    %12 = arith.andi %10, %11 : vector<16x16xi1>
    %c8_i32_2 = arith.constant 8 : i32
    %13 = vector.broadcast %c8_i32_2 : i32 to vector<16x16xi32>
    %14 = arith.cmpi sge, %1, %13 : vector<16x16xi32>
    %c16_i32 = arith.constant 16 : i32
    %15 = vector.broadcast %c16_i32 : i32 to vector<16x16xi32>
    %16 = arith.cmpi slt, %1, %15 : vector<16x16xi32>
    %17 = arith.andi %14, %16 : vector<16x16xi1>
    %c8_i32_3 = arith.constant 8 : i32
    %18 = vector.broadcast %c8_i32_3 : i32 to vector<16x16xi32>
    %19 = arith.cmpi sge, %2, %18 : vector<16x16xi32>
    %20 = arith.andi %17, %19 : vector<16x16xi1>
    %21 = arith.cmpi sle, %2, %1 : vector<16x16xi32>
    %22 = arith.andi %20, %21 : vector<16x16xi1>
    %23 = arith.ori %12, %22 : vector<16x16xi1>
    %cst = arith.constant 0.000000e+00 : f32
    %cst_4 = arith.constant -1.000000e+30 : f32
    %24 = vector.broadcast %cst : f32 to vector<16x16xf32>
    %25 = vector.broadcast %cst_4 : f32 to vector<16x16xf32>
    %26 = arith.select %23, %24, %25 : vector<16x16xi1>, vector<16x16xf32>
    %c0_5 = arith.constant 0 : index
    %c0_6 = arith.constant 0 : index
    %27 = vector.load %arg1[%c0_5, %c0_6] : memref<2x16xf32, #tpu.memory_space<vmem>>, vector<2x16xf32>
    %c0_7 = arith.constant 0 : index
    %c0_8 = arith.constant 0 : index
    %28 = vector.load %arg2[%c0_7, %c0_8] : memref<16x32xf32, #tpu.memory_space<vmem>>, vector<16x32xf32>
    %cst_9 = arith.constant dense<0.000000e+00> : vector<2x32xf32>
    %29 = tpu.matmul %27, %28, %cst_9 {dimension_numbers = #tpu.dot_dimension_numbers<[1], [0], [0], [1], [0, 0, 1, 1], [], []>} : vector<2x16xf32>, vector<16x32xf32>, vector<2x32xf32> -> vector<2x32xf32>
    %c0_10 = arith.constant 0 : index
    %c0_11 = arith.constant 0 : index
    %30 = vector.load %arg3[%c0_10, %c0_11] : memref<1x32xf32, #tpu.memory_space<vmem>>, vector<1x32xf32>
    %31 = vector.broadcast %30 : vector<1x32xf32> to vector<2x32xf32>
    %32 = arith.addf %29, %31 : vector<2x32xf32>
    %c0_12 = arith.constant 0 : index
    %c0_13 = arith.constant 0 : index
    %c0_14 = arith.constant 0 : index
    %33 = vector.load %arg4[%c0_12, %c0_13, %c0_14] : memref<2x32x96xf32, #tpu.memory_space<vmem>>, vector<1x32x96xf32>
    %34 = vector.shape_cast %33 : vector<1x32x96xf32> to vector<32x96xf32>
    %cst_15 = arith.constant dense<0.000000e+00> : vector<16x96xf32>
    %35 = tpu.matmul %0, %34, %cst_15 {dimension_numbers = #tpu.dot_dimension_numbers<[1], [0], [0], [1], [0, 0, 1, 1], [], []>} : vector<16x32xf32>, vector<32x96xf32>, vector<16x96xf32> -> vector<16x96xf32>
    %c0_16 = arith.constant 0 : index
    %c0_17 = arith.constant 0 : index
    %c0_18 = arith.constant 0 : index
    %36 = vector.load %arg5[%c0_16, %c0_17, %c0_18] : memref<2x1x96xf32, #tpu.memory_space<vmem>>, vector<1x1x96xf32>
    %37 = vector.shape_cast %36 : vector<1x1x96xf32> to vector<1x96xf32>
    %38 = vector.broadcast %37 : vector<1x96xf32> to vector<16x96xf32>
    %39 = arith.addf %35, %38 : vector<16x96xf32>
    %c0_19 = arith.constant 0 : index
    %c0_20 = arith.constant 0 : index
    %c0_21 = arith.constant 0 : index
    %40 = vector.load %arg6[%c0_19, %c0_20, %c0_21] : memref<2x32x32xf32, #tpu.memory_space<vmem>>, vector<1x32x32xf32>
    %41 = vector.shape_cast %40 : vector<1x32x32xf32> to vector<32x32xf32>
    %42 = vector.extract_strided_slice %39 {offsets = [0, 0], sizes = [16, 8], strides = [1, 1]} : vector<16x96xf32> to vector<16x8xf32>
    %43 = vector.extract_strided_slice %39 {offsets = [0, 32], sizes = [16, 8], strides = [1, 1]} : vector<16x96xf32> to vector<16x8xf32>
    %44 = vector.extract_strided_slice %39 {offsets = [0, 64], sizes = [16, 8], strides = [1, 1]} : vector<16x96xf32> to vector<16x8xf32>
    %cst_22 = arith.constant dense<0.000000e+00> : vector<16x16xf32>
    %45 = tpu.matmul %42, %43, %cst_22 {dimension_numbers = #tpu.dot_dimension_numbers<[1], [1], [0], [0], [0, 0, 1, 0], [], []>} : vector<16x8xf32>, vector<16x8xf32>, vector<16x16xf32> -> vector<16x16xf32>
    %cst_23 = arith.constant 0.353553385 : f32
    %46 = vector.broadcast %cst_23 : f32 to vector<16x16xf32>
    %47 = arith.mulf %45, %46 : vector<16x16xf32>
    %48 = arith.addf %47, %26 : vector<16x16xf32>
    %cst_24 = arith.constant dense<0xFF800000> : vector<16xf32>
    %49 = vector.multi_reduction <maximumf>, %48, %cst_24 [1] : vector<16x16xf32> to vector<16xf32>
    %50 = vector.shape_cast %49 : vector<16xf32> to vector<16x1xf32>
    %51 = vector.broadcast %50 : vector<16x1xf32> to vector<16x16xf32>
    %52 = arith.subf %48, %51 : vector<16x16xf32>
    %53 = math.exp %52 : vector<16x16xf32>
    %cst_25 = arith.constant dense<0.000000e+00> : vector<16xf32>
    %54 = vector.multi_reduction <add>, %53, %cst_25 [1] : vector<16x16xf32> to vector<16xf32>
    %55 = vector.shape_cast %54 : vector<16xf32> to vector<16x1xf32>
    %56 = vector.broadcast %55 : vector<16x1xf32> to vector<16x16xf32>
    %57 = arith.divf %53, %56 : vector<16x16xf32>
    %cst_26 = arith.constant dense<0.000000e+00> : vector<16x8xf32>
    %58 = tpu.matmul %57, %44, %cst_26 {dimension_numbers = #tpu.dot_dimension_numbers<[1], [0], [0], [1], [0, 0, 1, 1], [], []>} : vector<16x16xf32>, vector<16x8xf32>, vector<16x8xf32> -> vector<16x8xf32>
    %59 = vector.extract_strided_slice %41 {offsets = [0, 0], sizes = [8, 32], strides = [1, 1]} : vector<32x32xf32> to vector<8x32xf32>
    %cst_27 = arith.constant dense<0.000000e+00> : vector<16x32xf32>
    %60 = tpu.matmul %58, %59, %cst_27 {dimension_numbers = #tpu.dot_dimension_numbers<[1], [0], [0], [1], [0, 0, 1, 1], [], []>} : vector<16x8xf32>, vector<8x32xf32>, vector<16x32xf32> -> vector<16x32xf32>
    %61 = vector.extract_strided_slice %39 {offsets = [0, 8], sizes = [16, 8], strides = [1, 1]} : vector<16x96xf32> to vector<16x8xf32>
    %62 = vector.extract_strided_slice %39 {offsets = [0, 40], sizes = [16, 8], strides = [1, 1]} : vector<16x96xf32> to vector<16x8xf32>
    %63 = vector.extract_strided_slice %39 {offsets = [0, 72], sizes = [16, 8], strides = [1, 1]} : vector<16x96xf32> to vector<16x8xf32>
    %cst_28 = arith.constant dense<0.000000e+00> : vector<16x16xf32>
    %64 = tpu.matmul %61, %62, %cst_28 {dimension_numbers = #tpu.dot_dimension_numbers<[1], [1], [0], [0], [0, 0, 1, 0], [], []>} : vector<16x8xf32>, vector<16x8xf32>, vector<16x16xf32> -> vector<16x16xf32>
    %cst_29 = arith.constant 0.353553385 : f32
    %65 = vector.broadcast %cst_29 : f32 to vector<16x16xf32>
    %66 = arith.mulf %64, %65 : vector<16x16xf32>
    %67 = arith.addf %66, %26 : vector<16x16xf32>
    %cst_30 = arith.constant dense<0xFF800000> : vector<16xf32>
    %68 = vector.multi_reduction <maximumf>, %67, %cst_30 [1] : vector<16x16xf32> to vector<16xf32>
    %69 = vector.shape_cast %68 : vector<16xf32> to vector<16x1xf32>
    %70 = vector.broadcast %69 : vector<16x1xf32> to vector<16x16xf32>
    %71 = arith.subf %67, %70 : vector<16x16xf32>
    %72 = math.exp %71 : vector<16x16xf32>
    %cst_31 = arith.constant dense<0.000000e+00> : vector<16xf32>
    %73 = vector.multi_reduction <add>, %72, %cst_31 [1] : vector<16x16xf32> to vector<16xf32>
    %74 = vector.shape_cast %73 : vector<16xf32> to vector<16x1xf32>
    %75 = vector.broadcast %74 : vector<16x1xf32> to vector<16x16xf32>
    %76 = arith.divf %72, %75 : vector<16x16xf32>
    %cst_32 = arith.constant dense<0.000000e+00> : vector<16x8xf32>
    %77 = tpu.matmul %76, %63, %cst_32 {dimension_numbers = #tpu.dot_dimension_numbers<[1], [0], [0], [1], [0, 0, 1, 1], [], []>} : vector<16x16xf32>, vector<16x8xf32>, vector<16x8xf32> -> vector<16x8xf32>
    %78 = vector.extract_strided_slice %41 {offsets = [8, 0], sizes = [8, 32], strides = [1, 1]} : vector<32x32xf32> to vector<8x32xf32>
    %cst_33 = arith.constant dense<0.000000e+00> : vector<16x32xf32>
    %79 = tpu.matmul %77, %78, %cst_33 {dimension_numbers = #tpu.dot_dimension_numbers<[1], [0], [0], [1], [0, 0, 1, 1], [], []>} : vector<16x8xf32>, vector<8x32xf32>, vector<16x32xf32> -> vector<16x32xf32>
    %80 = arith.addf %60, %79 : vector<16x32xf32>
    %81 = vector.extract_strided_slice %39 {offsets = [0, 16], sizes = [16, 8], strides = [1, 1]} : vector<16x96xf32> to vector<16x8xf32>
    %82 = vector.extract_strided_slice %39 {offsets = [0, 48], sizes = [16, 8], strides = [1, 1]} : vector<16x96xf32> to vector<16x8xf32>
    %83 = vector.extract_strided_slice %39 {offsets = [0, 80], sizes = [16, 8], strides = [1, 1]} : vector<16x96xf32> to vector<16x8xf32>
    %cst_34 = arith.constant dense<0.000000e+00> : vector<16x16xf32>
    %84 = tpu.matmul %81, %82, %cst_34 {dimension_numbers = #tpu.dot_dimension_numbers<[1], [1], [0], [0], [0, 0, 1, 0], [], []>} : vector<16x8xf32>, vector<16x8xf32>, vector<16x16xf32> -> vector<16x16xf32>
    %cst_35 = arith.constant 0.353553385 : f32
    %85 = vector.broadcast %cst_35 : f32 to vector<16x16xf32>
    %86 = arith.mulf %84, %85 : vector<16x16xf32>
    %87 = arith.addf %86, %26 : vector<16x16xf32>
    %cst_36 = arith.constant dense<0xFF800000> : vector<16xf32>
    %88 = vector.multi_reduction <maximumf>, %87, %cst_36 [1] : vector<16x16xf32> to vector<16xf32>
    %89 = vector.shape_cast %88 : vector<16xf32> to vector<16x1xf32>
    %90 = vector.broadcast %89 : vector<16x1xf32> to vector<16x16xf32>
    %91 = arith.subf %87, %90 : vector<16x16xf32>
    %92 = math.exp %91 : vector<16x16xf32>
    %cst_37 = arith.constant dense<0.000000e+00> : vector<16xf32>
    %93 = vector.multi_reduction <add>, %92, %cst_37 [1] : vector<16x16xf32> to vector<16xf32>
    %94 = vector.shape_cast %93 : vector<16xf32> to vector<16x1xf32>
    %95 = vector.broadcast %94 : vector<16x1xf32> to vector<16x16xf32>
    %96 = arith.divf %92, %95 : vector<16x16xf32>
    %cst_38 = arith.constant dense<0.000000e+00> : vector<16x8xf32>
    %97 = tpu.matmul %96, %83, %cst_38 {dimension_numbers = #tpu.dot_dimension_numbers<[1], [0], [0], [1], [0, 0, 1, 1], [], []>} : vector<16x16xf32>, vector<16x8xf32>, vector<16x8xf32> -> vector<16x8xf32>
    %98 = vector.extract_strided_slice %41 {offsets = [16, 0], sizes = [8, 32], strides = [1, 1]} : vector<32x32xf32> to vector<8x32xf32>
    %cst_39 = arith.constant dense<0.000000e+00> : vector<16x32xf32>
    %99 = tpu.matmul %97, %98, %cst_39 {dimension_numbers = #tpu.dot_dimension_numbers<[1], [0], [0], [1], [0, 0, 1, 1], [], []>} : vector<16x8xf32>, vector<8x32xf32>, vector<16x32xf32> -> vector<16x32xf32>
    %100 = arith.addf %80, %99 : vector<16x32xf32>
    %101 = vector.extract_strided_slice %39 {offsets = [0, 24], sizes = [16, 8], strides = [1, 1]} : vector<16x96xf32> to vector<16x8xf32>
    %102 = vector.extract_strided_slice %39 {offsets = [0, 56], sizes = [16, 8], strides = [1, 1]} : vector<16x96xf32> to vector<16x8xf32>
    %103 = vector.extract_strided_slice %39 {offsets = [0, 88], sizes = [16, 8], strides = [1, 1]} : vector<16x96xf32> to vector<16x8xf32>
    %cst_40 = arith.constant dense<0.000000e+00> : vector<16x16xf32>
    %104 = tpu.matmul %101, %102, %cst_40 {dimension_numbers = #tpu.dot_dimension_numbers<[1], [1], [0], [0], [0, 0, 1, 0], [], []>} : vector<16x8xf32>, vector<16x8xf32>, vector<16x16xf32> -> vector<16x16xf32>
    %cst_41 = arith.constant 0.353553385 : f32
    %105 = vector.broadcast %cst_41 : f32 to vector<16x16xf32>
    %106 = arith.mulf %104, %105 : vector<16x16xf32>
    %107 = arith.addf %106, %26 : vector<16x16xf32>
    %cst_42 = arith.constant dense<0xFF800000> : vector<16xf32>
    %108 = vector.multi_reduction <maximumf>, %107, %cst_42 [1] : vector<16x16xf32> to vector<16xf32>
    %109 = vector.shape_cast %108 : vector<16xf32> to vector<16x1xf32>
    %110 = vector.broadcast %109 : vector<16x1xf32> to vector<16x16xf32>
    %111 = arith.subf %107, %110 : vector<16x16xf32>
    %112 = math.exp %111 : vector<16x16xf32>
    %cst_43 = arith.constant dense<0.000000e+00> : vector<16xf32>
    %113 = vector.multi_reduction <add>, %112, %cst_43 [1] : vector<16x16xf32> to vector<16xf32>
    %114 = vector.shape_cast %113 : vector<16xf32> to vector<16x1xf32>
    %115 = vector.broadcast %114 : vector<16x1xf32> to vector<16x16xf32>
    %116 = arith.divf %112, %115 : vector<16x16xf32>
    %cst_44 = arith.constant dense<0.000000e+00> : vector<16x8xf32>
    %117 = tpu.matmul %116, %103, %cst_44 {dimension_numbers = #tpu.dot_dimension_numbers<[1], [0], [0], [1], [0, 0, 1, 1], [], []>} : vector<16x16xf32>, vector<16x8xf32>, vector<16x8xf32> -> vector<16x8xf32>
    %118 = vector.extract_strided_slice %41 {offsets = [24, 0], sizes = [8, 32], strides = [1, 1]} : vector<32x32xf32> to vector<8x32xf32>
    %cst_45 = arith.constant dense<0.000000e+00> : vector<16x32xf32>
    %119 = tpu.matmul %117, %118, %cst_45 {dimension_numbers = #tpu.dot_dimension_numbers<[1], [0], [0], [1], [0, 0, 1, 1], [], []>} : vector<16x8xf32>, vector<8x32xf32>, vector<16x32xf32> -> vector<16x32xf32>
    %120 = arith.addf %100, %119 : vector<16x32xf32>
    %c0_46 = arith.constant 0 : index
    %c0_47 = arith.constant 0 : index
    %c0_48 = arith.constant 0 : index
    %121 = vector.load %arg7[%c0_46, %c0_47, %c0_48] : memref<2x1x32xf32, #tpu.memory_space<vmem>>, vector<1x1x32xf32>
    %122 = vector.shape_cast %121 : vector<1x1x32xf32> to vector<1x32xf32>
    %123 = vector.broadcast %122 : vector<1x32xf32> to vector<16x32xf32>
    %124 = arith.addf %120, %123 : vector<16x32xf32>
    %125 = arith.addf %0, %124 : vector<16x32xf32>
    %c0_49 = arith.constant 0 : index
    %c0_50 = arith.constant 0 : index
    %c0_51 = arith.constant 0 : index
    %126 = vector.load %arg8[%c0_49, %c0_50, %c0_51] : memref<2x1x32xf32, #tpu.memory_space<vmem>>, vector<1x1x32xf32>
    %127 = vector.shape_cast %126 : vector<1x1x32xf32> to vector<1x32xf32>
    %c0_52 = arith.constant 0 : index
    %c0_53 = arith.constant 0 : index
    %c0_54 = arith.constant 0 : index
    %128 = vector.load %arg9[%c0_52, %c0_53, %c0_54] : memref<2x1x32xf32, #tpu.memory_space<vmem>>, vector<1x1x32xf32>
    %129 = vector.shape_cast %128 : vector<1x1x32xf32> to vector<1x32xf32>
    %cst_55 = arith.constant dense<0.000000e+00> : vector<16xf32>
    %130 = vector.multi_reduction <add>, %125, %cst_55 [1] : vector<16x32xf32> to vector<16xf32>
    %131 = vector.shape_cast %130 : vector<16xf32> to vector<16x1xf32>
    %cst_56 = arith.constant 3.200000e+01 : f32
    %132 = vector.broadcast %cst_56 : f32 to vector<16x1xf32>
    %133 = arith.divf %131, %132 : vector<16x1xf32>
    %134 = vector.broadcast %133 : vector<16x1xf32> to vector<16x32xf32>
    %135 = arith.subf %125, %134 : vector<16x32xf32>
    %136 = arith.mulf %135, %135 : vector<16x32xf32>
    %cst_57 = arith.constant dense<0.000000e+00> : vector<16xf32>
    %137 = vector.multi_reduction <add>, %136, %cst_57 [1] : vector<16x32xf32> to vector<16xf32>
    %138 = vector.shape_cast %137 : vector<16xf32> to vector<16x1xf32>
    %cst_58 = arith.constant 3.200000e+01 : f32
    %139 = vector.broadcast %cst_58 : f32 to vector<16x1xf32>
    %140 = arith.divf %138, %139 : vector<16x1xf32>
    %141 = vector.broadcast %133 : vector<16x1xf32> to vector<16x32xf32>
    %142 = arith.subf %125, %141 : vector<16x32xf32>
    %cst_59 = arith.constant 9.99999974E-6 : f32
    %143 = vector.broadcast %cst_59 : f32 to vector<16x1xf32>
    %144 = arith.addf %140, %143 : vector<16x1xf32>
    %145 = math.rsqrt %144 : vector<16x1xf32>
    %146 = vector.broadcast %145 : vector<16x1xf32> to vector<16x32xf32>
    %147 = arith.mulf %142, %146 : vector<16x32xf32>
    %148 = vector.broadcast %127 : vector<1x32xf32> to vector<16x32xf32>
    %149 = arith.mulf %147, %148 : vector<16x32xf32>
    %150 = vector.broadcast %129 : vector<1x32xf32> to vector<16x32xf32>
    %151 = arith.addf %149, %150 : vector<16x32xf32>
    %c0_60 = arith.constant 0 : index
    %c0_61 = arith.constant 0 : index
    %c0_62 = arith.constant 0 : index
    %152 = vector.load %arg10[%c0_60, %c0_61, %c0_62] : memref<2x32x32xf32, #tpu.memory_space<vmem>>, vector<1x32x32xf32>
    %153 = vector.shape_cast %152 : vector<1x32x32xf32> to vector<32x32xf32>
    %cst_63 = arith.constant dense<0.000000e+00> : vector<2x32xf32>
    %154 = tpu.matmul %32, %153, %cst_63 {dimension_numbers = #tpu.dot_dimension_numbers<[1], [0], [0], [1], [0, 0, 1, 1], [], []>} : vector<2x32xf32>, vector<32x32xf32>, vector<2x32xf32> -> vector<2x32xf32>
    %c0_64 = arith.constant 0 : index
    %c0_65 = arith.constant 0 : index
    %c0_66 = arith.constant 0 : index
    %155 = vector.load %arg11[%c0_64, %c0_65, %c0_66] : memref<2x1x32xf32, #tpu.memory_space<vmem>>, vector<1x1x32xf32>
    %156 = vector.shape_cast %155 : vector<1x1x32xf32> to vector<1x32xf32>
    %157 = vector.broadcast %156 : vector<1x32xf32> to vector<2x32xf32>
    %158 = arith.addf %154, %157 : vector<2x32xf32>
    %c0_67 = arith.constant 0 : index
    %c0_68 = arith.constant 0 : index
    %c0_69 = arith.constant 0 : index
    %159 = vector.load %arg12[%c0_67, %c0_68, %c0_69] : memref<2x32x32xf32, #tpu.memory_space<vmem>>, vector<1x32x32xf32>
    %160 = vector.shape_cast %159 : vector<1x32x32xf32> to vector<32x32xf32>
    %cst_70 = arith.constant dense<0.000000e+00> : vector<2x32xf32>
    %161 = tpu.matmul %158, %160, %cst_70 {dimension_numbers = #tpu.dot_dimension_numbers<[1], [0], [0], [1], [0, 0, 1, 1], [], []>} : vector<2x32xf32>, vector<32x32xf32>, vector<2x32xf32> -> vector<2x32xf32>
    %c0_71 = arith.constant 0 : index
    %c0_72 = arith.constant 0 : index
    %c0_73 = arith.constant 0 : index
    %162 = vector.load %arg13[%c0_71, %c0_72, %c0_73] : memref<2x1x32xf32, #tpu.memory_space<vmem>>, vector<1x1x32xf32>
    %163 = vector.shape_cast %162 : vector<1x1x32xf32> to vector<1x32xf32>
    %164 = vector.broadcast %163 : vector<1x32xf32> to vector<2x32xf32>
    %165 = arith.addf %161, %164 : vector<2x32xf32>
    %166 = vector.shape_cast %165 : vector<2x32xf32> to vector<2x1x32xf32>
    %167 = vector.shape_cast %166 : vector<2x1x32xf32> to vector<2x1x32xf32>
    %168 = vector.broadcast %167 : vector<2x1x32xf32> to vector<2x8x32xf32>
    %169 = vector.shape_cast %168 : vector<2x8x32xf32> to vector<16x32xf32>
    %170 = arith.addf %151, %169 : vector<16x32xf32>
    %c0_74 = arith.constant 0 : index
    %c0_75 = arith.constant 0 : index
    %c0_76 = arith.constant 0 : index
    %171 = vector.load %arg14[%c0_74, %c0_75, %c0_76] : memref<2x1x32xf32, #tpu.memory_space<vmem>>, vector<1x1x32xf32>
    %172 = vector.shape_cast %171 : vector<1x1x32xf32> to vector<1x32xf32>
    %c0_77 = arith.constant 0 : index
    %c0_78 = arith.constant 0 : index
    %c0_79 = arith.constant 0 : index
    %173 = vector.load %arg15[%c0_77, %c0_78, %c0_79] : memref<2x1x32xf32, #tpu.memory_space<vmem>>, vector<1x1x32xf32>
    %174 = vector.shape_cast %173 : vector<1x1x32xf32> to vector<1x32xf32>
    %cst_80 = arith.constant dense<0.000000e+00> : vector<16xf32>
    %175 = vector.multi_reduction <add>, %170, %cst_80 [1] : vector<16x32xf32> to vector<16xf32>
    %176 = vector.shape_cast %175 : vector<16xf32> to vector<16x1xf32>
    %cst_81 = arith.constant 3.200000e+01 : f32
    %177 = vector.broadcast %cst_81 : f32 to vector<16x1xf32>
    %178 = arith.divf %176, %177 : vector<16x1xf32>
    %179 = vector.broadcast %178 : vector<16x1xf32> to vector<16x32xf32>
    %180 = arith.subf %170, %179 : vector<16x32xf32>
    %181 = arith.mulf %180, %180 : vector<16x32xf32>
    %cst_82 = arith.constant dense<0.000000e+00> : vector<16xf32>
    %182 = vector.multi_reduction <add>, %181, %cst_82 [1] : vector<16x32xf32> to vector<16xf32>
    %183 = vector.shape_cast %182 : vector<16xf32> to vector<16x1xf32>
    %cst_83 = arith.constant 3.200000e+01 : f32
    %184 = vector.broadcast %cst_83 : f32 to vector<16x1xf32>
    %185 = arith.divf %183, %184 : vector<16x1xf32>
    %186 = vector.broadcast %178 : vector<16x1xf32> to vector<16x32xf32>
    %187 = arith.subf %170, %186 : vector<16x32xf32>
    %cst_84 = arith.constant 9.99999974E-6 : f32
    %188 = vector.broadcast %cst_84 : f32 to vector<16x1xf32>
    %189 = arith.addf %185, %188 : vector<16x1xf32>
    %190 = math.rsqrt %189 : vector<16x1xf32>
    %191 = vector.broadcast %190 : vector<16x1xf32> to vector<16x32xf32>
    %192 = arith.mulf %187, %191 : vector<16x32xf32>
    %193 = vector.broadcast %172 : vector<1x32xf32> to vector<16x32xf32>
    %194 = arith.mulf %192, %193 : vector<16x32xf32>
    %195 = vector.broadcast %174 : vector<1x32xf32> to vector<16x32xf32>
    %196 = arith.addf %194, %195 : vector<16x32xf32>
    %c0_85 = arith.constant 0 : index
    %c0_86 = arith.constant 0 : index
    %c0_87 = arith.constant 0 : index
    %197 = vector.load %arg16[%c0_85, %c0_86, %c0_87] : memref<2x32x128xf32, #tpu.memory_space<vmem>>, vector<1x32x128xf32>
    %198 = vector.shape_cast %197 : vector<1x32x128xf32> to vector<32x128xf32>
    %cst_88 = arith.constant dense<0.000000e+00> : vector<16x128xf32>
    %199 = tpu.matmul %196, %198, %cst_88 {dimension_numbers = #tpu.dot_dimension_numbers<[1], [0], [0], [1], [0, 0, 1, 1], [], []>} : vector<16x32xf32>, vector<32x128xf32>, vector<16x128xf32> -> vector<16x128xf32>
    %c0_89 = arith.constant 0 : index
    %c0_90 = arith.constant 0 : index
    %c0_91 = arith.constant 0 : index
    %200 = vector.load %arg17[%c0_89, %c0_90, %c0_91] : memref<2x1x128xf32, #tpu.memory_space<vmem>>, vector<1x1x128xf32>
    %201 = vector.shape_cast %200 : vector<1x1x128xf32> to vector<1x128xf32>
    %202 = vector.broadcast %201 : vector<1x128xf32> to vector<16x128xf32>
    %203 = arith.addf %199, %202 : vector<16x128xf32>
    %cst_92 = arith.constant 5.000000e-01 : f32
    %204 = vector.broadcast %cst_92 : f32 to vector<16x128xf32>
    %205 = arith.mulf %204, %203 : vector<16x128xf32>
    %cst_93 = arith.constant 0.707106769 : f32
    %206 = vector.broadcast %cst_93 : f32 to vector<16x128xf32>
    %207 = arith.mulf %203, %206 : vector<16x128xf32>
    %cst_94 = arith.constant 0.000000e+00 : f32
    %208 = vector.broadcast %cst_94 : f32 to vector<16x128xf32>
    %209 = arith.cmpf oge, %207, %208 : vector<16x128xf32>
    %cst_95 = arith.constant 1.000000e+00 : f32
    %cst_96 = arith.constant -1.000000e+00 : f32
    %210 = vector.broadcast %cst_95 : f32 to vector<16x128xf32>
    %211 = vector.broadcast %cst_96 : f32 to vector<16x128xf32>
    %212 = arith.select %209, %210, %211 : vector<16x128xi1>, vector<16x128xf32>
    %213 = math.absf %207 : vector<16x128xf32>
    %cst_97 = arith.constant 0.327591091 : f32
    %214 = vector.broadcast %cst_97 : f32 to vector<16x128xf32>
    %215 = arith.mulf %214, %213 : vector<16x128xf32>
    %cst_98 = arith.constant 1.000000e+00 : f32
    %216 = vector.broadcast %cst_98 : f32 to vector<16x128xf32>
    %217 = arith.addf %216, %215 : vector<16x128xf32>
    %cst_99 = arith.constant 1.000000e+00 : f32
    %218 = vector.broadcast %cst_99 : f32 to vector<16x128xf32>
    %219 = arith.divf %218, %217 : vector<16x128xf32>
    %cst_100 = arith.constant 1.06140542 : f32
    %220 = vector.broadcast %cst_100 : f32 to vector<16x128xf32>
    %221 = arith.mulf %220, %219 : vector<16x128xf32>
    %cst_101 = arith.constant -1.45315206 : f32
    %222 = vector.broadcast %cst_101 : f32 to vector<16x128xf32>
    %223 = arith.addf %221, %222 : vector<16x128xf32>
    %224 = arith.mulf %223, %219 : vector<16x128xf32>
    %cst_102 = arith.constant 1.42141378 : f32
    %225 = vector.broadcast %cst_102 : f32 to vector<16x128xf32>
    %226 = arith.addf %224, %225 : vector<16x128xf32>
    %227 = arith.mulf %226, %219 : vector<16x128xf32>
    %cst_103 = arith.constant -0.284496725 : f32
    %228 = vector.broadcast %cst_103 : f32 to vector<16x128xf32>
    %229 = arith.addf %227, %228 : vector<16x128xf32>
    %230 = arith.mulf %229, %219 : vector<16x128xf32>
    %cst_104 = arith.constant 0.254829586 : f32
    %231 = vector.broadcast %cst_104 : f32 to vector<16x128xf32>
    %232 = arith.addf %230, %231 : vector<16x128xf32>
    %233 = arith.mulf %232, %219 : vector<16x128xf32>
    %cst_105 = arith.constant 0.000000e+00 : f32
    %234 = vector.broadcast %cst_105 : f32 to vector<16x128xf32>
    %235 = arith.subf %234, %213 : vector<16x128xf32>
    %236 = arith.mulf %235, %213 : vector<16x128xf32>
    %237 = math.exp %236 : vector<16x128xf32>
    %238 = arith.mulf %233, %237 : vector<16x128xf32>
    %cst_106 = arith.constant 1.000000e+00 : f32
    %239 = vector.broadcast %cst_106 : f32 to vector<16x128xf32>
    %240 = arith.subf %239, %238 : vector<16x128xf32>
    %241 = arith.mulf %212, %240 : vector<16x128xf32>
    %cst_107 = arith.constant 1.000000e+00 : f32
    %242 = vector.broadcast %cst_107 : f32 to vector<16x128xf32>
    %243 = arith.addf %242, %241 : vector<16x128xf32>
    %244 = arith.mulf %205, %243 : vector<16x128xf32>
    %c0_108 = arith.constant 0 : index
    %c0_109 = arith.constant 0 : index
    %c0_110 = arith.constant 0 : index
    %245 = vector.load %arg18[%c0_108, %c0_109, %c0_110] : memref<2x128x32xf32, #tpu.memory_space<vmem>>, vector<1x128x32xf32>
    %246 = vector.shape_cast %245 : vector<1x128x32xf32> to vector<128x32xf32>
    %cst_111 = arith.constant dense<0.000000e+00> : vector<16x32xf32>
    %247 = tpu.matmul %244, %246, %cst_111 {dimension_numbers = #tpu.dot_dimension_numbers<[1], [0], [0], [1], [0, 0, 1, 1], [], []>} : vector<16x128xf32>, vector<128x32xf32>, vector<16x32xf32> -> vector<16x32xf32>
    %c0_112 = arith.constant 0 : index
    %c0_113 = arith.constant 0 : index
    %c0_114 = arith.constant 0 : index
    %248 = vector.load %arg19[%c0_112, %c0_113, %c0_114] : memref<2x1x32xf32, #tpu.memory_space<vmem>>, vector<1x1x32xf32>
    %249 = vector.shape_cast %248 : vector<1x1x32xf32> to vector<1x32xf32>
    %250 = vector.broadcast %249 : vector<1x32xf32> to vector<16x32xf32>
    %251 = arith.addf %247, %250 : vector<16x32xf32>
    %252 = arith.addf %196, %251 : vector<16x32xf32>
    %c0_115 = arith.constant 0 : index
    %c0_116 = arith.constant 0 : index
    %c0_117 = arith.constant 0 : index
    %253 = vector.load %arg20[%c0_115, %c0_116, %c0_117] : memref<2x1x32xf32, #tpu.memory_space<vmem>>, vector<1x1x32xf32>
    %254 = vector.shape_cast %253 : vector<1x1x32xf32> to vector<1x32xf32>
    %c0_118 = arith.constant 0 : index
    %c0_119 = arith.constant 0 : index
    %c0_120 = arith.constant 0 : index
    %255 = vector.load %arg21[%c0_118, %c0_119, %c0_120] : memref<2x1x32xf32, #tpu.memory_space<vmem>>, vector<1x1x32xf32>
    %256 = vector.shape_cast %255 : vector<1x1x32xf32> to vector<1x32xf32>
    %cst_121 = arith.constant dense<0.000000e+00> : vector<16xf32>
    %257 = vector.multi_reduction <add>, %252, %cst_121 [1] : vector<16x32xf32> to vector<16xf32>
    %258 = vector.shape_cast %257 : vector<16xf32> to vector<16x1xf32>
    %cst_122 = arith.constant 3.200000e+01 : f32
    %259 = vector.broadcast %cst_122 : f32 to vector<16x1xf32>
    %260 = arith.divf %258, %259 : vector<16x1xf32>
    %261 = vector.broadcast %260 : vector<16x1xf32> to vector<16x32xf32>
    %262 = arith.subf %252, %261 : vector<16x32xf32>
    %263 = arith.mulf %262, %262 : vector<16x32xf32>
    %cst_123 = arith.constant dense<0.000000e+00> : vector<16xf32>
    %264 = vector.multi_reduction <add>, %263, %cst_123 [1] : vector<16x32xf32> to vector<16xf32>
    %265 = vector.shape_cast %264 : vector<16xf32> to vector<16x1xf32>
    %cst_124 = arith.constant 3.200000e+01 : f32
    %266 = vector.broadcast %cst_124 : f32 to vector<16x1xf32>
    %267 = arith.divf %265, %266 : vector<16x1xf32>
    %268 = vector.broadcast %260 : vector<16x1xf32> to vector<16x32xf32>
    %269 = arith.subf %252, %268 : vector<16x32xf32>
    %cst_125 = arith.constant 9.99999974E-6 : f32
    %270 = vector.broadcast %cst_125 : f32 to vector<16x1xf32>
    %271 = arith.addf %267, %270 : vector<16x1xf32>
    %272 = math.rsqrt %271 : vector<16x1xf32>
    %273 = vector.broadcast %272 : vector<16x1xf32> to vector<16x32xf32>
    %274 = arith.mulf %269, %273 : vector<16x32xf32>
    %275 = vector.broadcast %254 : vector<1x32xf32> to vector<16x32xf32>
    %276 = arith.mulf %274, %275 : vector<16x32xf32>
    %277 = vector.broadcast %256 : vector<1x32xf32> to vector<16x32xf32>
    %278 = arith.addf %276, %277 : vector<16x32xf32>
    %c1 = arith.constant 1 : index
    %c0_126 = arith.constant 0 : index
    %c0_127 = arith.constant 0 : index
    %279 = vector.load %arg4[%c1, %c0_126, %c0_127] : memref<2x32x96xf32, #tpu.memory_space<vmem>>, vector<1x32x96xf32>
    %280 = vector.shape_cast %279 : vector<1x32x96xf32> to vector<32x96xf32>
    %cst_128 = arith.constant dense<0.000000e+00> : vector<16x96xf32>
    %281 = tpu.matmul %278, %280, %cst_128 {dimension_numbers = #tpu.dot_dimension_numbers<[1], [0], [0], [1], [0, 0, 1, 1], [], []>} : vector<16x32xf32>, vector<32x96xf32>, vector<16x96xf32> -> vector<16x96xf32>
    %c1_129 = arith.constant 1 : index
    %c0_130 = arith.constant 0 : index
    %c0_131 = arith.constant 0 : index
    %282 = vector.load %arg5[%c1_129, %c0_130, %c0_131] : memref<2x1x96xf32, #tpu.memory_space<vmem>>, vector<1x1x96xf32>
    %283 = vector.shape_cast %282 : vector<1x1x96xf32> to vector<1x96xf32>
    %284 = vector.broadcast %283 : vector<1x96xf32> to vector<16x96xf32>
    %285 = arith.addf %281, %284 : vector<16x96xf32>
    %c1_132 = arith.constant 1 : index
    %c0_133 = arith.constant 0 : index
    %c0_134 = arith.constant 0 : index
    %286 = vector.load %arg6[%c1_132, %c0_133, %c0_134] : memref<2x32x32xf32, #tpu.memory_space<vmem>>, vector<1x32x32xf32>
    %287 = vector.shape_cast %286 : vector<1x32x32xf32> to vector<32x32xf32>
    %288 = vector.extract_strided_slice %285 {offsets = [0, 0], sizes = [16, 8], strides = [1, 1]} : vector<16x96xf32> to vector<16x8xf32>
    %289 = vector.extract_strided_slice %285 {offsets = [0, 32], sizes = [16, 8], strides = [1, 1]} : vector<16x96xf32> to vector<16x8xf32>
    %290 = vector.extract_strided_slice %285 {offsets = [0, 64], sizes = [16, 8], strides = [1, 1]} : vector<16x96xf32> to vector<16x8xf32>
    %cst_135 = arith.constant dense<0.000000e+00> : vector<16x16xf32>
    %291 = tpu.matmul %288, %289, %cst_135 {dimension_numbers = #tpu.dot_dimension_numbers<[1], [1], [0], [0], [0, 0, 1, 0], [], []>} : vector<16x8xf32>, vector<16x8xf32>, vector<16x16xf32> -> vector<16x16xf32>
    %cst_136 = arith.constant 0.353553385 : f32
    %292 = vector.broadcast %cst_136 : f32 to vector<16x16xf32>
    %293 = arith.mulf %291, %292 : vector<16x16xf32>
    %294 = arith.addf %293, %26 : vector<16x16xf32>
    %cst_137 = arith.constant dense<0xFF800000> : vector<16xf32>
    %295 = vector.multi_reduction <maximumf>, %294, %cst_137 [1] : vector<16x16xf32> to vector<16xf32>
    %296 = vector.shape_cast %295 : vector<16xf32> to vector<16x1xf32>
    %297 = vector.broadcast %296 : vector<16x1xf32> to vector<16x16xf32>
    %298 = arith.subf %294, %297 : vector<16x16xf32>
    %299 = math.exp %298 : vector<16x16xf32>
    %cst_138 = arith.constant dense<0.000000e+00> : vector<16xf32>
    %300 = vector.multi_reduction <add>, %299, %cst_138 [1] : vector<16x16xf32> to vector<16xf32>
    %301 = vector.shape_cast %300 : vector<16xf32> to vector<16x1xf32>
    %302 = vector.broadcast %301 : vector<16x1xf32> to vector<16x16xf32>
    %303 = arith.divf %299, %302 : vector<16x16xf32>
    %cst_139 = arith.constant dense<0.000000e+00> : vector<16x8xf32>
    %304 = tpu.matmul %303, %290, %cst_139 {dimension_numbers = #tpu.dot_dimension_numbers<[1], [0], [0], [1], [0, 0, 1, 1], [], []>} : vector<16x16xf32>, vector<16x8xf32>, vector<16x8xf32> -> vector<16x8xf32>
    %305 = vector.extract_strided_slice %287 {offsets = [0, 0], sizes = [8, 32], strides = [1, 1]} : vector<32x32xf32> to vector<8x32xf32>
    %cst_140 = arith.constant dense<0.000000e+00> : vector<16x32xf32>
    %306 = tpu.matmul %304, %305, %cst_140 {dimension_numbers = #tpu.dot_dimension_numbers<[1], [0], [0], [1], [0, 0, 1, 1], [], []>} : vector<16x8xf32>, vector<8x32xf32>, vector<16x32xf32> -> vector<16x32xf32>
    %307 = vector.extract_strided_slice %285 {offsets = [0, 8], sizes = [16, 8], strides = [1, 1]} : vector<16x96xf32> to vector<16x8xf32>
    %308 = vector.extract_strided_slice %285 {offsets = [0, 40], sizes = [16, 8], strides = [1, 1]} : vector<16x96xf32> to vector<16x8xf32>
    %309 = vector.extract_strided_slice %285 {offsets = [0, 72], sizes = [16, 8], strides = [1, 1]} : vector<16x96xf32> to vector<16x8xf32>
    %cst_141 = arith.constant dense<0.000000e+00> : vector<16x16xf32>
    %310 = tpu.matmul %307, %308, %cst_141 {dimension_numbers = #tpu.dot_dimension_numbers<[1], [1], [0], [0], [0, 0, 1, 0], [], []>} : vector<16x8xf32>, vector<16x8xf32>, vector<16x16xf32> -> vector<16x16xf32>
    %cst_142 = arith.constant 0.353553385 : f32
    %311 = vector.broadcast %cst_142 : f32 to vector<16x16xf32>
    %312 = arith.mulf %310, %311 : vector<16x16xf32>
    %313 = arith.addf %312, %26 : vector<16x16xf32>
    %cst_143 = arith.constant dense<0xFF800000> : vector<16xf32>
    %314 = vector.multi_reduction <maximumf>, %313, %cst_143 [1] : vector<16x16xf32> to vector<16xf32>
    %315 = vector.shape_cast %314 : vector<16xf32> to vector<16x1xf32>
    %316 = vector.broadcast %315 : vector<16x1xf32> to vector<16x16xf32>
    %317 = arith.subf %313, %316 : vector<16x16xf32>
    %318 = math.exp %317 : vector<16x16xf32>
    %cst_144 = arith.constant dense<0.000000e+00> : vector<16xf32>
    %319 = vector.multi_reduction <add>, %318, %cst_144 [1] : vector<16x16xf32> to vector<16xf32>
    %320 = vector.shape_cast %319 : vector<16xf32> to vector<16x1xf32>
    %321 = vector.broadcast %320 : vector<16x1xf32> to vector<16x16xf32>
    %322 = arith.divf %318, %321 : vector<16x16xf32>
    %cst_145 = arith.constant dense<0.000000e+00> : vector<16x8xf32>
    %323 = tpu.matmul %322, %309, %cst_145 {dimension_numbers = #tpu.dot_dimension_numbers<[1], [0], [0], [1], [0, 0, 1, 1], [], []>} : vector<16x16xf32>, vector<16x8xf32>, vector<16x8xf32> -> vector<16x8xf32>
    %324 = vector.extract_strided_slice %287 {offsets = [8, 0], sizes = [8, 32], strides = [1, 1]} : vector<32x32xf32> to vector<8x32xf32>
    %cst_146 = arith.constant dense<0.000000e+00> : vector<16x32xf32>
    %325 = tpu.matmul %323, %324, %cst_146 {dimension_numbers = #tpu.dot_dimension_numbers<[1], [0], [0], [1], [0, 0, 1, 1], [], []>} : vector<16x8xf32>, vector<8x32xf32>, vector<16x32xf32> -> vector<16x32xf32>
    %326 = arith.addf %306, %325 : vector<16x32xf32>
    %327 = vector.extract_strided_slice %285 {offsets = [0, 16], sizes = [16, 8], strides = [1, 1]} : vector<16x96xf32> to vector<16x8xf32>
    %328 = vector.extract_strided_slice %285 {offsets = [0, 48], sizes = [16, 8], strides = [1, 1]} : vector<16x96xf32> to vector<16x8xf32>
    %329 = vector.extract_strided_slice %285 {offsets = [0, 80], sizes = [16, 8], strides = [1, 1]} : vector<16x96xf32> to vector<16x8xf32>
    %cst_147 = arith.constant dense<0.000000e+00> : vector<16x16xf32>
    %330 = tpu.matmul %327, %328, %cst_147 {dimension_numbers = #tpu.dot_dimension_numbers<[1], [1], [0], [0], [0, 0, 1, 0], [], []>} : vector<16x8xf32>, vector<16x8xf32>, vector<16x16xf32> -> vector<16x16xf32>
    %cst_148 = arith.constant 0.353553385 : f32
    %331 = vector.broadcast %cst_148 : f32 to vector<16x16xf32>
    %332 = arith.mulf %330, %331 : vector<16x16xf32>
    %333 = arith.addf %332, %26 : vector<16x16xf32>
    %cst_149 = arith.constant dense<0xFF800000> : vector<16xf32>
    %334 = vector.multi_reduction <maximumf>, %333, %cst_149 [1] : vector<16x16xf32> to vector<16xf32>
    %335 = vector.shape_cast %334 : vector<16xf32> to vector<16x1xf32>
    %336 = vector.broadcast %335 : vector<16x1xf32> to vector<16x16xf32>
    %337 = arith.subf %333, %336 : vector<16x16xf32>
    %338 = math.exp %337 : vector<16x16xf32>
    %cst_150 = arith.constant dense<0.000000e+00> : vector<16xf32>
    %339 = vector.multi_reduction <add>, %338, %cst_150 [1] : vector<16x16xf32> to vector<16xf32>
    %340 = vector.shape_cast %339 : vector<16xf32> to vector<16x1xf32>
    %341 = vector.broadcast %340 : vector<16x1xf32> to vector<16x16xf32>
    %342 = arith.divf %338, %341 : vector<16x16xf32>
    %cst_151 = arith.constant dense<0.000000e+00> : vector<16x8xf32>
    %343 = tpu.matmul %342, %329, %cst_151 {dimension_numbers = #tpu.dot_dimension_numbers<[1], [0], [0], [1], [0, 0, 1, 1], [], []>} : vector<16x16xf32>, vector<16x8xf32>, vector<16x8xf32> -> vector<16x8xf32>
    %344 = vector.extract_strided_slice %287 {offsets = [16, 0], sizes = [8, 32], strides = [1, 1]} : vector<32x32xf32> to vector<8x32xf32>
    %cst_152 = arith.constant dense<0.000000e+00> : vector<16x32xf32>
    %345 = tpu.matmul %343, %344, %cst_152 {dimension_numbers = #tpu.dot_dimension_numbers<[1], [0], [0], [1], [0, 0, 1, 1], [], []>} : vector<16x8xf32>, vector<8x32xf32>, vector<16x32xf32> -> vector<16x32xf32>
    %346 = arith.addf %326, %345 : vector<16x32xf32>
    %347 = vector.extract_strided_slice %285 {offsets = [0, 24], sizes = [16, 8], strides = [1, 1]} : vector<16x96xf32> to vector<16x8xf32>
    %348 = vector.extract_strided_slice %285 {offsets = [0, 56], sizes = [16, 8], strides = [1, 1]} : vector<16x96xf32> to vector<16x8xf32>
    %349 = vector.extract_strided_slice %285 {offsets = [0, 88], sizes = [16, 8], strides = [1, 1]} : vector<16x96xf32> to vector<16x8xf32>
    %cst_153 = arith.constant dense<0.000000e+00> : vector<16x16xf32>
    %350 = tpu.matmul %347, %348, %cst_153 {dimension_numbers = #tpu.dot_dimension_numbers<[1], [1], [0], [0], [0, 0, 1, 0], [], []>} : vector<16x8xf32>, vector<16x8xf32>, vector<16x16xf32> -> vector<16x16xf32>
    %cst_154 = arith.constant 0.353553385 : f32
    %351 = vector.broadcast %cst_154 : f32 to vector<16x16xf32>
    %352 = arith.mulf %350, %351 : vector<16x16xf32>
    %353 = arith.addf %352, %26 : vector<16x16xf32>
    %cst_155 = arith.constant dense<0xFF800000> : vector<16xf32>
    %354 = vector.multi_reduction <maximumf>, %353, %cst_155 [1] : vector<16x16xf32> to vector<16xf32>
    %355 = vector.shape_cast %354 : vector<16xf32> to vector<16x1xf32>
    %356 = vector.broadcast %355 : vector<16x1xf32> to vector<16x16xf32>
    %357 = arith.subf %353, %356 : vector<16x16xf32>
    %358 = math.exp %357 : vector<16x16xf32>
    %cst_156 = arith.constant dense<0.000000e+00> : vector<16xf32>
    %359 = vector.multi_reduction <add>, %358, %cst_156 [1] : vector<16x16xf32> to vector<16xf32>
    %360 = vector.shape_cast %359 : vector<16xf32> to vector<16x1xf32>
    %361 = vector.broadcast %360 : vector<16x1xf32> to vector<16x16xf32>
    %362 = arith.divf %358, %361 : vector<16x16xf32>
    %cst_157 = arith.constant dense<0.000000e+00> : vector<16x8xf32>
    %363 = tpu.matmul %362, %349, %cst_157 {dimension_numbers = #tpu.dot_dimension_numbers<[1], [0], [0], [1], [0, 0, 1, 1], [], []>} : vector<16x16xf32>, vector<16x8xf32>, vector<16x8xf32> -> vector<16x8xf32>
    %364 = vector.extract_strided_slice %287 {offsets = [24, 0], sizes = [8, 32], strides = [1, 1]} : vector<32x32xf32> to vector<8x32xf32>
    %cst_158 = arith.constant dense<0.000000e+00> : vector<16x32xf32>
    %365 = tpu.matmul %363, %364, %cst_158 {dimension_numbers = #tpu.dot_dimension_numbers<[1], [0], [0], [1], [0, 0, 1, 1], [], []>} : vector<16x8xf32>, vector<8x32xf32>, vector<16x32xf32> -> vector<16x32xf32>
    %366 = arith.addf %346, %365 : vector<16x32xf32>
    %c1_159 = arith.constant 1 : index
    %c0_160 = arith.constant 0 : index
    %c0_161 = arith.constant 0 : index
    %367 = vector.load %arg7[%c1_159, %c0_160, %c0_161] : memref<2x1x32xf32, #tpu.memory_space<vmem>>, vector<1x1x32xf32>
    %368 = vector.shape_cast %367 : vector<1x1x32xf32> to vector<1x32xf32>
    %369 = vector.broadcast %368 : vector<1x32xf32> to vector<16x32xf32>
    %370 = arith.addf %366, %369 : vector<16x32xf32>
    %371 = arith.addf %278, %370 : vector<16x32xf32>
    %c1_162 = arith.constant 1 : index
    %c0_163 = arith.constant 0 : index
    %c0_164 = arith.constant 0 : index
    %372 = vector.load %arg8[%c1_162, %c0_163, %c0_164] : memref<2x1x32xf32, #tpu.memory_space<vmem>>, vector<1x1x32xf32>
    %373 = vector.shape_cast %372 : vector<1x1x32xf32> to vector<1x32xf32>
    %c1_165 = arith.constant 1 : index
    %c0_166 = arith.constant 0 : index
    %c0_167 = arith.constant 0 : index
    %374 = vector.load %arg9[%c1_165, %c0_166, %c0_167] : memref<2x1x32xf32, #tpu.memory_space<vmem>>, vector<1x1x32xf32>
    %375 = vector.shape_cast %374 : vector<1x1x32xf32> to vector<1x32xf32>
    %cst_168 = arith.constant dense<0.000000e+00> : vector<16xf32>
    %376 = vector.multi_reduction <add>, %371, %cst_168 [1] : vector<16x32xf32> to vector<16xf32>
    %377 = vector.shape_cast %376 : vector<16xf32> to vector<16x1xf32>
    %cst_169 = arith.constant 3.200000e+01 : f32
    %378 = vector.broadcast %cst_169 : f32 to vector<16x1xf32>
    %379 = arith.divf %377, %378 : vector<16x1xf32>
    %380 = vector.broadcast %379 : vector<16x1xf32> to vector<16x32xf32>
    %381 = arith.subf %371, %380 : vector<16x32xf32>
    %382 = arith.mulf %381, %381 : vector<16x32xf32>
    %cst_170 = arith.constant dense<0.000000e+00> : vector<16xf32>
    %383 = vector.multi_reduction <add>, %382, %cst_170 [1] : vector<16x32xf32> to vector<16xf32>
    %384 = vector.shape_cast %383 : vector<16xf32> to vector<16x1xf32>
    %cst_171 = arith.constant 3.200000e+01 : f32
    %385 = vector.broadcast %cst_171 : f32 to vector<16x1xf32>
    %386 = arith.divf %384, %385 : vector<16x1xf32>
    %387 = vector.broadcast %379 : vector<16x1xf32> to vector<16x32xf32>
    %388 = arith.subf %371, %387 : vector<16x32xf32>
    %cst_172 = arith.constant 9.99999974E-6 : f32
    %389 = vector.broadcast %cst_172 : f32 to vector<16x1xf32>
    %390 = arith.addf %386, %389 : vector<16x1xf32>
    %391 = math.rsqrt %390 : vector<16x1xf32>
    %392 = vector.broadcast %391 : vector<16x1xf32> to vector<16x32xf32>
    %393 = arith.mulf %388, %392 : vector<16x32xf32>
    %394 = vector.broadcast %373 : vector<1x32xf32> to vector<16x32xf32>
    %395 = arith.mulf %393, %394 : vector<16x32xf32>
    %396 = vector.broadcast %375 : vector<1x32xf32> to vector<16x32xf32>
    %397 = arith.addf %395, %396 : vector<16x32xf32>
    %c1_173 = arith.constant 1 : index
    %c0_174 = arith.constant 0 : index
    %c0_175 = arith.constant 0 : index
    %398 = vector.load %arg10[%c1_173, %c0_174, %c0_175] : memref<2x32x32xf32, #tpu.memory_space<vmem>>, vector<1x32x32xf32>
    %399 = vector.shape_cast %398 : vector<1x32x32xf32> to vector<32x32xf32>
    %cst_176 = arith.constant dense<0.000000e+00> : vector<2x32xf32>
    %400 = tpu.matmul %32, %399, %cst_176 {dimension_numbers = #tpu.dot_dimension_numbers<[1], [0], [0], [1], [0, 0, 1, 1], [], []>} : vector<2x32xf32>, vector<32x32xf32>, vector<2x32xf32> -> vector<2x32xf32>
    %c1_177 = arith.constant 1 : index
    %c0_178 = arith.constant 0 : index
    %c0_179 = arith.constant 0 : index
    %401 = vector.load %arg11[%c1_177, %c0_178, %c0_179] : memref<2x1x32xf32, #tpu.memory_space<vmem>>, vector<1x1x32xf32>
    %402 = vector.shape_cast %401 : vector<1x1x32xf32> to vector<1x32xf32>
    %403 = vector.broadcast %402 : vector<1x32xf32> to vector<2x32xf32>
    %404 = arith.addf %400, %403 : vector<2x32xf32>
    %c1_180 = arith.constant 1 : index
    %c0_181 = arith.constant 0 : index
    %c0_182 = arith.constant 0 : index
    %405 = vector.load %arg12[%c1_180, %c0_181, %c0_182] : memref<2x32x32xf32, #tpu.memory_space<vmem>>, vector<1x32x32xf32>
    %406 = vector.shape_cast %405 : vector<1x32x32xf32> to vector<32x32xf32>
    %cst_183 = arith.constant dense<0.000000e+00> : vector<2x32xf32>
    %407 = tpu.matmul %404, %406, %cst_183 {dimension_numbers = #tpu.dot_dimension_numbers<[1], [0], [0], [1], [0, 0, 1, 1], [], []>} : vector<2x32xf32>, vector<32x32xf32>, vector<2x32xf32> -> vector<2x32xf32>
    %c1_184 = arith.constant 1 : index
    %c0_185 = arith.constant 0 : index
    %c0_186 = arith.constant 0 : index
    %408 = vector.load %arg13[%c1_184, %c0_185, %c0_186] : memref<2x1x32xf32, #tpu.memory_space<vmem>>, vector<1x1x32xf32>
    %409 = vector.shape_cast %408 : vector<1x1x32xf32> to vector<1x32xf32>
    %410 = vector.broadcast %409 : vector<1x32xf32> to vector<2x32xf32>
    %411 = arith.addf %407, %410 : vector<2x32xf32>
    %412 = vector.shape_cast %411 : vector<2x32xf32> to vector<2x1x32xf32>
    %413 = vector.shape_cast %412 : vector<2x1x32xf32> to vector<2x1x32xf32>
    %414 = vector.broadcast %413 : vector<2x1x32xf32> to vector<2x8x32xf32>
    %415 = vector.shape_cast %414 : vector<2x8x32xf32> to vector<16x32xf32>
    %416 = arith.addf %397, %415 : vector<16x32xf32>
    %c1_187 = arith.constant 1 : index
    %c0_188 = arith.constant 0 : index
    %c0_189 = arith.constant 0 : index
    %417 = vector.load %arg14[%c1_187, %c0_188, %c0_189] : memref<2x1x32xf32, #tpu.memory_space<vmem>>, vector<1x1x32xf32>
    %418 = vector.shape_cast %417 : vector<1x1x32xf32> to vector<1x32xf32>
    %c1_190 = arith.constant 1 : index
    %c0_191 = arith.constant 0 : index
    %c0_192 = arith.constant 0 : index
    %419 = vector.load %arg15[%c1_190, %c0_191, %c0_192] : memref<2x1x32xf32, #tpu.memory_space<vmem>>, vector<1x1x32xf32>
    %420 = vector.shape_cast %419 : vector<1x1x32xf32> to vector<1x32xf32>
    %cst_193 = arith.constant dense<0.000000e+00> : vector<16xf32>
    %421 = vector.multi_reduction <add>, %416, %cst_193 [1] : vector<16x32xf32> to vector<16xf32>
    %422 = vector.shape_cast %421 : vector<16xf32> to vector<16x1xf32>
    %cst_194 = arith.constant 3.200000e+01 : f32
    %423 = vector.broadcast %cst_194 : f32 to vector<16x1xf32>
    %424 = arith.divf %422, %423 : vector<16x1xf32>
    %425 = vector.broadcast %424 : vector<16x1xf32> to vector<16x32xf32>
    %426 = arith.subf %416, %425 : vector<16x32xf32>
    %427 = arith.mulf %426, %426 : vector<16x32xf32>
    %cst_195 = arith.constant dense<0.000000e+00> : vector<16xf32>
    %428 = vector.multi_reduction <add>, %427, %cst_195 [1] : vector<16x32xf32> to vector<16xf32>
    %429 = vector.shape_cast %428 : vector<16xf32> to vector<16x1xf32>
    %cst_196 = arith.constant 3.200000e+01 : f32
    %430 = vector.broadcast %cst_196 : f32 to vector<16x1xf32>
    %431 = arith.divf %429, %430 : vector<16x1xf32>
    %432 = vector.broadcast %424 : vector<16x1xf32> to vector<16x32xf32>
    %433 = arith.subf %416, %432 : vector<16x32xf32>
    %cst_197 = arith.constant 9.99999974E-6 : f32
    %434 = vector.broadcast %cst_197 : f32 to vector<16x1xf32>
    %435 = arith.addf %431, %434 : vector<16x1xf32>
    %436 = math.rsqrt %435 : vector<16x1xf32>
    %437 = vector.broadcast %436 : vector<16x1xf32> to vector<16x32xf32>
    %438 = arith.mulf %433, %437 : vector<16x32xf32>
    %439 = vector.broadcast %418 : vector<1x32xf32> to vector<16x32xf32>
    %440 = arith.mulf %438, %439 : vector<16x32xf32>
    %441 = vector.broadcast %420 : vector<1x32xf32> to vector<16x32xf32>
    %442 = arith.addf %440, %441 : vector<16x32xf32>
    %c1_198 = arith.constant 1 : index
    %c0_199 = arith.constant 0 : index
    %c0_200 = arith.constant 0 : index
    %443 = vector.load %arg16[%c1_198, %c0_199, %c0_200] : memref<2x32x128xf32, #tpu.memory_space<vmem>>, vector<1x32x128xf32>
    %444 = vector.shape_cast %443 : vector<1x32x128xf32> to vector<32x128xf32>
    %cst_201 = arith.constant dense<0.000000e+00> : vector<16x128xf32>
    %445 = tpu.matmul %442, %444, %cst_201 {dimension_numbers = #tpu.dot_dimension_numbers<[1], [0], [0], [1], [0, 0, 1, 1], [], []>} : vector<16x32xf32>, vector<32x128xf32>, vector<16x128xf32> -> vector<16x128xf32>
    %c1_202 = arith.constant 1 : index
    %c0_203 = arith.constant 0 : index
    %c0_204 = arith.constant 0 : index
    %446 = vector.load %arg17[%c1_202, %c0_203, %c0_204] : memref<2x1x128xf32, #tpu.memory_space<vmem>>, vector<1x1x128xf32>
    %447 = vector.shape_cast %446 : vector<1x1x128xf32> to vector<1x128xf32>
    %448 = vector.broadcast %447 : vector<1x128xf32> to vector<16x128xf32>
    %449 = arith.addf %445, %448 : vector<16x128xf32>
    %cst_205 = arith.constant 5.000000e-01 : f32
    %450 = vector.broadcast %cst_205 : f32 to vector<16x128xf32>
    %451 = arith.mulf %450, %449 : vector<16x128xf32>
    %cst_206 = arith.constant 0.707106769 : f32
    %452 = vector.broadcast %cst_206 : f32 to vector<16x128xf32>
    %453 = arith.mulf %449, %452 : vector<16x128xf32>
    %cst_207 = arith.constant 0.000000e+00 : f32
    %454 = vector.broadcast %cst_207 : f32 to vector<16x128xf32>
    %455 = arith.cmpf oge, %453, %454 : vector<16x128xf32>
    %cst_208 = arith.constant 1.000000e+00 : f32
    %cst_209 = arith.constant -1.000000e+00 : f32
    %456 = vector.broadcast %cst_208 : f32 to vector<16x128xf32>
    %457 = vector.broadcast %cst_209 : f32 to vector<16x128xf32>
    %458 = arith.select %455, %456, %457 : vector<16x128xi1>, vector<16x128xf32>
    %459 = math.absf %453 : vector<16x128xf32>
    %cst_210 = arith.constant 0.327591091 : f32
    %460 = vector.broadcast %cst_210 : f32 to vector<16x128xf32>
    %461 = arith.mulf %460, %459 : vector<16x128xf32>
    %cst_211 = arith.constant 1.000000e+00 : f32
    %462 = vector.broadcast %cst_211 : f32 to vector<16x128xf32>
    %463 = arith.addf %462, %461 : vector<16x128xf32>
    %cst_212 = arith.constant 1.000000e+00 : f32
    %464 = vector.broadcast %cst_212 : f32 to vector<16x128xf32>
    %465 = arith.divf %464, %463 : vector<16x128xf32>
    %cst_213 = arith.constant 1.06140542 : f32
    %466 = vector.broadcast %cst_213 : f32 to vector<16x128xf32>
    %467 = arith.mulf %466, %465 : vector<16x128xf32>
    %cst_214 = arith.constant -1.45315206 : f32
    %468 = vector.broadcast %cst_214 : f32 to vector<16x128xf32>
    %469 = arith.addf %467, %468 : vector<16x128xf32>
    %470 = arith.mulf %469, %465 : vector<16x128xf32>
    %cst_215 = arith.constant 1.42141378 : f32
    %471 = vector.broadcast %cst_215 : f32 to vector<16x128xf32>
    %472 = arith.addf %470, %471 : vector<16x128xf32>
    %473 = arith.mulf %472, %465 : vector<16x128xf32>
    %cst_216 = arith.constant -0.284496725 : f32
    %474 = vector.broadcast %cst_216 : f32 to vector<16x128xf32>
    %475 = arith.addf %473, %474 : vector<16x128xf32>
    %476 = arith.mulf %475, %465 : vector<16x128xf32>
    %cst_217 = arith.constant 0.254829586 : f32
    %477 = vector.broadcast %cst_217 : f32 to vector<16x128xf32>
    %478 = arith.addf %476, %477 : vector<16x128xf32>
    %479 = arith.mulf %478, %465 : vector<16x128xf32>
    %cst_218 = arith.constant 0.000000e+00 : f32
    %480 = vector.broadcast %cst_218 : f32 to vector<16x128xf32>
    %481 = arith.subf %480, %459 : vector<16x128xf32>
    %482 = arith.mulf %481, %459 : vector<16x128xf32>
    %483 = math.exp %482 : vector<16x128xf32>
    %484 = arith.mulf %479, %483 : vector<16x128xf32>
    %cst_219 = arith.constant 1.000000e+00 : f32
    %485 = vector.broadcast %cst_219 : f32 to vector<16x128xf32>
    %486 = arith.subf %485, %484 : vector<16x128xf32>
    %487 = arith.mulf %458, %486 : vector<16x128xf32>
    %cst_220 = arith.constant 1.000000e+00 : f32
    %488 = vector.broadcast %cst_220 : f32 to vector<16x128xf32>
    %489 = arith.addf %488, %487 : vector<16x128xf32>
    %490 = arith.mulf %451, %489 : vector<16x128xf32>
    %c1_221 = arith.constant 1 : index
    %c0_222 = arith.constant 0 : index
    %c0_223 = arith.constant 0 : index
    %491 = vector.load %arg18[%c1_221, %c0_222, %c0_223] : memref<2x128x32xf32, #tpu.memory_space<vmem>>, vector<1x128x32xf32>
    %492 = vector.shape_cast %491 : vector<1x128x32xf32> to vector<128x32xf32>
    %cst_224 = arith.constant dense<0.000000e+00> : vector<16x32xf32>
    %493 = tpu.matmul %490, %492, %cst_224 {dimension_numbers = #tpu.dot_dimension_numbers<[1], [0], [0], [1], [0, 0, 1, 1], [], []>} : vector<16x128xf32>, vector<128x32xf32>, vector<16x32xf32> -> vector<16x32xf32>
    %c1_225 = arith.constant 1 : index
    %c0_226 = arith.constant 0 : index
    %c0_227 = arith.constant 0 : index
    %494 = vector.load %arg19[%c1_225, %c0_226, %c0_227] : memref<2x1x32xf32, #tpu.memory_space<vmem>>, vector<1x1x32xf32>
    %495 = vector.shape_cast %494 : vector<1x1x32xf32> to vector<1x32xf32>
    %496 = vector.broadcast %495 : vector<1x32xf32> to vector<16x32xf32>
    %497 = arith.addf %493, %496 : vector<16x32xf32>
    %498 = arith.addf %442, %497 : vector<16x32xf32>
    %c1_228 = arith.constant 1 : index
    %c0_229 = arith.constant 0 : index
    %c0_230 = arith.constant 0 : index
    %499 = vector.load %arg20[%c1_228, %c0_229, %c0_230] : memref<2x1x32xf32, #tpu.memory_space<vmem>>, vector<1x1x32xf32>
    %500 = vector.shape_cast %499 : vector<1x1x32xf32> to vector<1x32xf32>
    %c1_231 = arith.constant 1 : index
    %c0_232 = arith.constant 0 : index
    %c0_233 = arith.constant 0 : index
    %501 = vector.load %arg21[%c1_231, %c0_232, %c0_233] : memref<2x1x32xf32, #tpu.memory_space<vmem>>, vector<1x1x32xf32>
    %502 = vector.shape_cast %501 : vector<1x1x32xf32> to vector<1x32xf32>
    %cst_234 = arith.constant dense<0.000000e+00> : vector<16xf32>
    %503 = vector.multi_reduction <add>, %498, %cst_234 [1] : vector<16x32xf32> to vector<16xf32>
    %504 = vector.shape_cast %503 : vector<16xf32> to vector<16x1xf32>
    %cst_235 = arith.constant 3.200000e+01 : f32
    %505 = vector.broadcast %cst_235 : f32 to vector<16x1xf32>
    %506 = arith.divf %504, %505 : vector<16x1xf32>
    %507 = vector.broadcast %506 : vector<16x1xf32> to vector<16x32xf32>
    %508 = arith.subf %498, %507 : vector<16x32xf32>
    %509 = arith.mulf %508, %508 : vector<16x32xf32>
    %cst_236 = arith.constant dense<0.000000e+00> : vector<16xf32>
    %510 = vector.multi_reduction <add>, %509, %cst_236 [1] : vector<16x32xf32> to vector<16xf32>
    %511 = vector.shape_cast %510 : vector<16xf32> to vector<16x1xf32>
    %cst_237 = arith.constant 3.200000e+01 : f32
    %512 = vector.broadcast %cst_237 : f32 to vector<16x1xf32>
    %513 = arith.divf %511, %512 : vector<16x1xf32>
    %514 = vector.broadcast %506 : vector<16x1xf32> to vector<16x32xf32>
    %515 = arith.subf %498, %514 : vector<16x32xf32>
    %cst_238 = arith.constant 9.99999974E-6 : f32
    %516 = vector.broadcast %cst_238 : f32 to vector<16x1xf32>
    %517 = arith.addf %513, %516 : vector<16x1xf32>
    %518 = math.rsqrt %517 : vector<16x1xf32>
    %519 = vector.broadcast %518 : vector<16x1xf32> to vector<16x32xf32>
    %520 = arith.mulf %515, %519 : vector<16x32xf32>
    %521 = vector.broadcast %500 : vector<1x32xf32> to vector<16x32xf32>
    %522 = arith.mulf %520, %521 : vector<16x32xf32>
    %523 = vector.broadcast %502 : vector<1x32xf32> to vector<16x32xf32>
    %524 = arith.addf %522, %523 : vector<16x32xf32>
    %c0_239 = arith.constant 0 : index
    %c0_240 = arith.constant 0 : index
    %525 = vector.load %arg22[%c0_239, %c0_240] : memref<32x128xf32, #tpu.memory_space<vmem>>, vector<32x128xf32>
    %cst_241 = arith.constant dense<0.000000e+00> : vector<16x128xf32>
    %526 = tpu.matmul %524, %525, %cst_241 {dimension_numbers = #tpu.dot_dimension_numbers<[1], [0], [0], [1], [0, 0, 1, 1], [], []>} : vector<16x32xf32>, vector<32x128xf32>, vector<16x128xf32> -> vector<16x128xf32>
    %c0_242 = arith.constant 0 : index
    %c0_243 = arith.constant 0 : index
    %527 = vector.load %arg23[%c0_242, %c0_243] : memref<1x128xf32, #tpu.memory_space<vmem>>, vector<1x128xf32>
    %528 = vector.broadcast %527 : vector<1x128xf32> to vector<16x128xf32>
    %529 = arith.addf %526, %528 : vector<16x128xf32>
    %c0_244 = arith.constant 0 : index
    %c0_245 = arith.constant 0 : index
    %530 = vector.load %arg24[%c0_244, %c0_245] : memref<16x128xf32, #tpu.memory_space<vmem>>, vector<16x128xf32>
    tpu.vector_store %arg24[%c0_244, %c0_245], %529 {strides = array<i32>} : memref<16x128xf32, #tpu.memory_space<vmem>>, vector<16x128xf32>,
    return
  }
}

</mosaic_0001>

<bundles_post_ra>
// kernel: _forward_impl.1
= control target key start
LH: loop header
LB: loop body
LE: loop exit
PB: predicated region body
PF: predicated region fallthrough
CT: control target
= control target key end

     0   :  { %vm207_vm0 = vcmask 261120   ;;  %v4750_v6 = vmov 0.0   ;;  %vm4751_vm1 = vmmov 0   ;;  %vm122_vm2 = vcmask 130048   ;;  %s5646_s25 = smov 88   ;;  %s5634_s28 = smov 112   ;;  %s5598_s4 = inlined_call_operand.vmem [shape: f32[2,32,96], index: 4, kind: input, shape index: {}]   ;;  %s5599_s0 = inlined_call_operand.vmem [shape: f32[16,32], index: 0, kind: input, shape index: {}]   ;;  %s5600_s2 = inlined_call_operand.vmem [shape: f32[16,32], index: 2, kind: input, shape index: {}]   ;;  %s5601_s1 = inlined_call_operand.vmem [shape: f32[2,16], index: 1, kind: input, shape index: {}]   ;;  %s5602_s5 = inlined_call_operand.vmem [shape: f32[2,1,96], index: 5, kind: input, shape index: {}]   ;;  %s5603_s6 = inlined_call_operand.vmem [shape: f32[2,32,32], index: 6, kind: input, shape index: {}]   ;;  %s5604_s10 = inlined_call_operand.vmem [shape: f32[2,32,32], index: 10, kind: input, shape index: {}]   ;;  %s5605_s3 = inlined_call_operand.vmem [shape: f32[1,32], index: 3, kind: input, shape index: {}]   ;;  %s5606_s12 = inlined_call_operand.vmem [shape: f32[2,32,32], index: 12, kind: input, shape index: {}]   ;;  %s5607_s11 = inlined_call_operand.vmem [shape: f32[2,1,32], index: 11, kind: input, shape index: {}]   ;;  %s5608_s7 = inlined_call_operand.vmem [shape: f32[2,1,32], index: 7, kind: input, shape index: {}]   ;;  %s5609_s13 = inlined_call_operand.vmem [shape: f32[2,1,32], index: 13, kind: input, shape index: {}]   ;;  %s5610_s8 = inlined_call_operand.vmem [shape: f32[2,1,32], index: 8, kind: input, shape index: {}]   ;;  %s5611_s9 = inlined_call_operand.vmem [shape: f32[2,1,32], index: 9, kind: input, shape index: {}]   ;;  %s5612_s16 = inlined_call_operand.vmem [shape: f32[2,32,128], index: 16, kind: input, shape index: {}]   ;;  %s5613_s14 = inlined_call_operand.vmem [shape: f32[2,1,32], index: 14, kind: input, shape index: {}]   ;;  %s5614_s15 = inlined_call_operand.vmem [shape: f32[2,1,32], index: 15, kind: input, shape index: {}]   ;;  %s5615_s18 = inlined_call_operand.vmem [shape: f32[2,128,32], index: 18, kind: input, shape index: {}]   ;;  %s5616_s17 = inlined_call_operand.vmem [shape: f32[2,1,128], index: 17, kind: input, shape index: {}]   ;;  %s5617_s19 = inlined_call_operand.vmem [shape: f32[2,1,32], index: 19, kind: input, shape index: {}]   ;;  %s5618_s20 = inlined_call_operand.vmem [shape: f32[2,1,32], index: 20, kind: input, shape index: {}]   ;;  %s5619_s21 = inlined_call_operand.vmem [shape: f32[2,1,32], index: 21, kind: input, shape index: {}]   ;;  %s5620_s22 = inlined_call_operand.vmem [shape: f32[32,128], index: 22, kind: input, shape index: {}]   ;;  %s5621_s23 = inlined_call_operand.vmem [shape: f32[1,128], index: 23, kind: input, shape index: {}]   ;;  %s5622_s24 = inlined_call_operand.vmem [shape: f32[16,128], index: 24, kind: output, shape index: {}]  }
   0x1   :  { %5648 = sst [smem:[#allocation2_spill]] %s5598_s4  ;;  %4302 = vmatprep.subr.mxu0 %v4750_v6  ;;  %4306 = vmatprep.mubr.msk.f32.mxu0 %vm4751_vm1, %v4750_v6  ;;  %vm299_vm3 = vcmask 64512   ;;  %v79_v23 = vlaneseq  ;;  %v4755_v28 = vmov -1e+30   ;;  %s5670_s30 = smov 112  }
   0x2   :  { %5649 = sst [smem:[#allocation3_spill]] %s5599_s0  ;;  %s4756_s0 = smov 64  }
   0x3   :  { %5650 = sst [smem:[#allocation4_spill]] %s5600_s2  ;;  %v4966_v24 = vshrl.u32 %v79_v23, 7  ;;  %v83_v26 = vand.u32 127, %v79_v23  ;;  %s5630_s2 = smov 104  }
   0x4   :  { %5651 = sst [smem:[#allocation5_spill]] %s5601_s1 }
   0x5   :  { %5652 = sst [smem:[#allocation6_spill]] %s5602_s5  ;;  %s5640_s5 = smov 120   ;;  %v81_v25 = vadd.s32 8, %v4966_v24  ;;  %vm103_vm5 = vcmp.ge.s32.totalorder %v83_v26, 8  ;;  %vm93_vm7 = vcmp.le.s32.totalorder %v83_v26, %v4966_v24 }
   0x6   :  { %5653 = sst [smem:[#allocation7_spill]] %s5603_s6  ;;  %v4972_v33 = vsel %vm93_vm7, 0.0, %v4755_v28  ;;  %s5638_s6 = smov 56  }
   0x7   :  { %5654 = sst [smem:[#allocation8_spill]] %s5604_s10  ;;  %vm94_vm4 = vcmp.le.s32.totalorder %v83_v26, %v81_v25  ;;  %s5632_s10 = smov 72  }
   0x8   :  { %5655 = sst [smem:[#allocation9_spill]] %s5605_s3  ;;  %vm107_vm6 = vmand %vm103_vm5, %vm94_vm4 }
   0x9   :  { %5656 = sst [smem:[#allocation10_spill]] %s5606_s12  ;;  %s4753_s12 = smov 96   ;;  %v4970_v29 = vsel %vm107_vm6, 0.0, %v4755_v28 }
   0xa   :  { %s5657_s27 = sld [smem:[#allocation2_spill]] }
   0xb   :  { %s5658_s1 = sld [smem:[#allocation3_spill]] }
   0xc   :  { %s5659_s26 = sld [smem:[#allocation4_spill]] }
   0xd   :  { %s5661_s4 = sld [smem:[#allocation6_spill]] }
   0xe   :  { %s5662_s3 = sld [smem:[#allocation7_spill]] }
   0xf   :  { %s5664_s29 = sld [smem:[#allocation9_spill]] }
  0x10   :  { %v199_v0 = vld [vmem:[%s5657_s27 + $0x18] sm:$0xff]  ;;  %v198_v1 = vld [vmem:[%s5657_s27 + $0x10] sm:$0xff]  ;;  %v197_v3 = vld [vmem:[%s5657_s27 + $0x8] sm:$0xff] }
  0x11   :  { %4309 = vmatprep.subr.mxu1 %v199_v0  ;;  %v4900_v2 = vld [vmem:[%s5658_s1] sm:$0xff]  ;;  %v4913_v5 = vld [vmem:[%s5658_s1 + $0x8] sm:$0xff]  ;;  %s5660_s1 = sld [smem:[#allocation5_spill]] }
  0x12   :  { %4310 = vmatpush3.msra.mxu1 %v199_v0  ;;  %4317 = vmatprep.mubr.msk.f32.mxu1 %vm207_vm0, %v4900_v2  ;;  %v196_v4 = vld [vmem:[%s5657_s27] sm:$0xff]  ;;  %v114_v7 = vld [vmem:[%s5659_s26 + $0x8] sm:$0xff] }
  0x13   :  { %4311 = vmatprep.subr.mxu1 %v198_v1  ;;  %v113_v8 = vld [vmem:[%s5659_s26] sm:$0xff]  ;;  %4303 = vmatpush3.msra.mxu0 %v114_v7  ;;  %s5636_s26 = smov 80  }
  0x14   :  { %4312 = vmatpush3.msra.mxu1 %v198_v1  ;;  %4304 = vmatprep.subr.mxu0 %v4750_v6  ;;  %v3974_v10 = vld [vmem:[%s5661_s4] ss:$0 sm:$0xff] }
  0x15   :  { %4313 = vmatprep.subr.mxu1 %v197_v3  ;;  %4305 = vmatpush3.msra.mxu0 %v113_v8 }
  0x16   :  { %4314 = vmatpush3.msra.mxu1 %v197_v3 }
  0x17   :  { %4315 = vmatprep.subr.mxu1 %v196_v4  ;;  %v112_v9 = vld [vmem:[%s5660_s1] sm:$0x3]  ;;  %s5663_s1 = sld [smem:[#allocation8_spill]] }
  0x18   :  { %4316 = vmatpush3.msra.mxu1 %v196_v4  ;;  %4307 = vmatmul.mubr.msk.f32.vlgmr.msra.gmra.mxu0 %vm122_vm2, %v112_v9 }
  0x19   :  { %4318 = vmatmul.mubr.msk.f32.vlgmr.msra.gmra.mxu1 %vm207_vm0, %v4913_v5 }
  0xd8   :  { %v4964_v21 = vpop.f32.mrf.mxu0 }
  0xd9   :  { %v4319_v11 = vpop.f32.mrf.mxu1 }
  0xda   :  { %v4934_v12 = vadd.f32 %v4319_v11, %v3974_v10  ;;  %v4308_v22 = vpop.f32.mrf.mxu0 }
  0xdb   :  { %v280_v13 = vpop.f32.mrf.mxu1  ;;  %v290_v22 = vld [vmem:[%s5662_s3 + $0x8] sm:$0xff] }
  0xdc   :  { %v4936_v14 = vadd.f32 %v3974_v10, %v280_v13  ;;  %502 = vrot.lane.b32.xlu1 %v4934_v12, %s5646_s25  ;;  %297 = vrot.lane.b32.xlu0 %v4934_v12, %s4753_s12 }
  0xde   :  { %4324 = vmatprep.mubr.msk.f32.mxu1 %vm299_vm3, %v4936_v14 }
  0xe0   :  { %500 = vrot.lane.b32.xlu1 %v4936_v14, %s5646_s25  ;;  %295 = vrot.lane.b32.xlu0 %v4936_v14, %s4753_s12 }
  0xe4   :  { %498 = vrot.lane.b32.xlu1 %v4934_v12, %s5640_s5  ;;  %496 = vrot.lane.b32.xlu0 %v4936_v14, %s5640_s5  ;;  %s5644_s5 = smov 48  }
 0x14e   :  { %v503_v15 = vpop.permute.xlu1 %502  ;;  %v298_v16 = vpop.permute.xlu0 %297 }
 0x14f   :  { %4320 = vmatprep.subr.msk.mxu1 %vm299_vm3, %v298_v16  ;;  %4334 = vmatprep.subr.msk.mxu0 %vm299_vm3, %v503_v15 }
 0x150   :  { %4321 = vmatpush3.xpose.msk.msra.mxu1 %vm299_vm3, %v298_v16  ;;  %4335 = vmatpush3.xpose.msk.msra.mxu0 %vm299_vm3, %v503_v15 }
 0x152   :  { %v501_v17 = vpop.permute.xlu1 %500  ;;  %v296_v18 = vpop.permute.xlu0 %295 }
 0x153   :  { %4322 = vmatprep.subr.msk.mxu1 %vm299_vm3, %v296_v18  ;;  %4336 = vmatprep.subr.msk.mxu0 %vm299_vm3, %v501_v17 }
 0x154   :  { %4323 = vmatpush3.xpose.msk.msra.mxu1 %vm299_vm3, %v296_v18  ;;  %4337 = vmatpush3.xpose.msk.msra.mxu0 %vm299_vm3, %v501_v17 }
 0x156   :  { %v499_v19 = vpop.permute.xlu1 %498  ;;  %v497_v20 = vpop.permute.xlu0 %496 }
 0x157   :  { %4325 = vmatmul.mubr.msk.f32.vlgmr.msra.gmra.mxu1 %vm299_vm3, %v4934_v12  ;;  %4338 = vmatprep.mubr.msk.f32.mxu0 %vm299_vm3, %v497_v20 }
 0x158   :  { %4339 = vmatmul.mubr.msk.f32.vlgmr.msra.gmra.mxu0 %vm299_vm3, %v499_v19 }
 0x217   :  { %v4326_v27 = vpop.f32.mrf.mxu1 }
 0x218   :  { %v384_v30 = vmul.f32 0.35355338, %v4326_v27  ;;  %v4340_v31 = vpop.f32.mrf.mxu0  ;;  %v289_v27 = vld [vmem:[%s5662_s3] sm:$0xff] }
 0x219   :  { %v374_v32 = vpop.f32.mrf.mxu1  ;;  %v588_v40 = vmul.f32 0.35355338, %v4340_v31  ;;  %4353 = vmatprep.subr.mxu0 %v289_v27 }
 0x21a   :  { %v383_v34 = vmul.f32 0.35355338, %v374_v32  ;;  %v578_v35 = vpop.f32.mrf.mxu0  ;;  %v386_v36 = vadd.f32 %v384_v30, %v4970_v29  ;;  %4354 = vmatpush3.msra.mxu0 %v289_v27 }
 0x21b   :  { %v587_v37 = vmul.f32 0.35355338, %v578_v35  ;;  %v590_v44 = vadd.f32 %v588_v40, %v4970_v29  ;;  %v1495_v40 = vld [vmem:[%s5663_s1 + $0x18] sm:$0xff] }
 0x21c   :  { %v390_v38 = vsel %vm122_vm2, %v386_v36, -inf  ;;  %v385_v39 = vadd.f32 %v383_v34, %v4972_v33 }
 0x21d   :  { %391 = vmax.xlane.f32.xlu1 %v390_v38  ;;  %v589_v42 = vadd.f32 %v587_v37, %v4972_v33  ;;  %v594_v45 = vsel %vm122_vm2, %v590_v44, -inf }
 0x21e   :  { %v387_v41 = vsel %vm122_vm2, %v385_v39, -inf }
 0x21f   :  { %388 = vmax.xlane.f32.xlu0 %v387_v41  ;;  %v591_v43 = vsel %vm122_vm2, %v589_v42, -inf }
 0x223   :  { %592 = vmax.xlane.f32.xlu0 %v591_v43  ;;  %v1493_v43 = vld [vmem:[%s5663_s1 + $0x8] sm:$0xff] }
 0x227   :  { %595 = vmax.xlane.f32.xlu0 %v594_v45  ;;  %v1492_v45 = vld [vmem:[%s5663_s1] sm:$0xff] }
 0x22e   :  { %411 = vrot.lane.b32.xlu1 %v4934_v12, %s4756_s0 }
 0x232   :  { %615 = vrot.lane.b32.xlu1 %v4934_v12, %s5638_s6 }
 0x2a6   :  { %v392_v46 = vpop.xlane.xlu1 %391 }
 0x2a7   :  { %v394_v47 = vsub.f32 %v386_v36, %v392_v46 }
 0x2a8   :  { %v389_v48 = vpop.xlane.xlu0 %388 }
 0x2a9   :  { %v397_v49 = vmul.f32 1.442695, %v394_v47  ;;  %v393_v50 = vsub.f32 %v385_v39, %v389_v48 }
 0x2aa   :  { %v412_v51 = vpop.permute.xlu1 %411 }
 0x2ab   :  { %4646 = vpow2.f32 %v397_v49  ;;  %v395_v52 = vmul.f32 1.442695, %v393_v50  ;;  %4327 = vmatprep.subr.mxu1 %v412_v51 }
 0x2ac   :  { %4328 = vmatpush3.msra.mxu1 %v412_v51  ;;  %v593_v53 = vpop.xlane.xlu0 %592 }
 0x2ad   :  { %4648 = vpow2.f32 %v395_v52  ;;  %v597_v54 = vsub.f32 %v589_v42, %v593_v53  ;;  %v1494_v42 = vld [vmem:[%s5663_s1 + $0x10] sm:$0xff] }
 0x2ae   :  { %v616_v4 = vpop.permute.xlu1 %615 }
 0x2af   :  { %v599_v55 = vmul.f32 1.442695, %v597_v54 }
 0x2b0   :  { %v596_v56 = vpop.xlane.xlu0 %595 }
 0x2b1   :  { %4650 = vpow2.f32 %v599_v55  ;;  %v598_v57 = vsub.f32 %v590_v44, %v596_v56  ;;  %v3972_v44 = vld [vmem:[%s5664_s29] ss:$0 sm:$0xff] }
 0x2b2   :  { %v5057_v46 = vadd.f32 %v3972_v44, %v4964_v21 }
 0x2b3   :  { %v601_v58 = vmul.f32 1.442695, %v598_v57 }
 0x2b5   :  { %4652 = vpow2.f32 %v601_v58 }
 0x2b8   :  { %v4647_v59 = vpop.eup %4646 }
 0x2b9   :  { %v402_v60 = vsel %vm122_vm2, %v4647_v59, 0.0 }
 0x2ba   :  { %v4649_v61 = vpop.eup %4648  ;;  %403 = vadd.xlane.f32.xlu0 %v402_v60 }
 0x2bb   :  { %v399_v62 = vsel %vm122_vm2, %v4649_v61, 0.0 }
 0x2bc   :  { %400 = vadd.xlane.f32.xlu1 %v399_v62 }
 0x2be   :  { %v4651_v63 = vpop.eup %4650 }
 0x2bf   :  { %v603_v0 = vsel %vm122_vm2, %v4651_v63, 0.0 }
 0x2c0   :  { %604 = vadd.xlane.f32.xlu1 %v603_v0 }
 0x2c2   :  { %v4653_v1 = vpop.eup %4652 }
 0x2c3   :  { %v606_v3 = vsel %vm122_vm2, %v4653_v1, 0.0 }
 0x2c4   :  { %607 = vadd.xlane.f32.xlu0 %v606_v3 }
 0x2d1   :  { %613 = vrot.lane.b32.xlu1 %v4936_v14, %s5638_s6  ;;  %s5642_s6 = smov 40  }
 0x2d5   :  { %866 = vrot.lane.b32.xlu1 %v4936_v14, %s5636_s26 }
 0x2d9   :  { %864 = vrot.lane.b32.xlu1 %v4934_v12, %s5634_s28 }
 0x2da   :  { %409 = vrot.lane.b32.xlu0 %v4936_v14, %s4756_s0 }
 0x2dd   :  { %1153 = vrot.lane.b32.xlu1 %v4936_v14, %s5632_s10 }
 0x2de   :  { %868 = vrot.lane.b32.xlu0 %v4934_v12, %s5636_s26  ;;  %s5665_s26 = sld [smem:[#allocation10_spill]] }
 0x2e1   :  { %1151 = vrot.lane.b32.xlu1 %v4934_v12, %s5630_s2 }
 0x2e2   :  { %862 = vrot.lane.b32.xlu0 %v4936_v14, %s5634_s28  ;;  %s5668_s28 = smov 56  }
 0x2e6   :  { %1155 = vrot.lane.b32.xlu0 %v4934_v12, %s5632_s10 }
 0x2ea   :  { %1149 = vrot.lane.b32.xlu0 %v4936_v14, %s5630_s2 }
 0x343   :  { %v404_v7 = vpop.xlane.xlu0 %403 }
 0x344   :  { %4654 = vrcp.f32 %v404_v7 }
 0x345   :  { %v401_v8 = vpop.xlane.xlu1 %400 }
 0x346   :  { %4656 = vrcp.f32 %v401_v8 }
 0x349   :  { %v605_v9 = vpop.xlane.xlu1 %604 }
 0x34a   :  { %4658 = vrcp.f32 %v605_v9 }
 0x34d   :  { %v608_v10 = vpop.xlane.xlu0 %607  ;;  %v614_v19 = vpop.permute.xlu1 %613 }
 0x34e   :  { %4660 = vrcp.f32 %v608_v10 }
 0x351   :  { %v410_v11 = vpop.permute.xlu0 %409  ;;  %v4655_v13 = vpop.eup %4654 }
 0x352   :  { %4329 = vmatprep.subr.mxu1 %v410_v11  ;;  %v408_v17 = vmul.f32 %v4655_v13, %v4647_v59  ;;  %v867_v34 = vpop.permute.xlu1 %866 }
 0x353   :  { %v4657_v15 = vpop.eup %4656  ;;  %4330 = vmatpush3.msra.mxu1 %v410_v11 }
 0x354   :  { %4341 = vmatprep.subr.mxu1 %v616_v4  ;;  %v406_v16 = vmul.f32 %v4657_v15, %v4649_v61 }
 0x355   :  { %v869_v26 = vpop.permute.xlu0 %868 }
 0x356   :  { %4331 = vmatprep.mubr.msk.f32.mxu1 %vm122_vm2, %v406_v16  ;;  %v865_v37 = vpop.permute.xlu1 %864 }
 0x357   :  { %v4659_v18 = vpop.eup %4658  ;;  %4332 = vmatmul.mubr.msk.f32.vlgmr.msra.gmra.mxu1 %vm122_vm2, %v408_v17 }
 0x358   :  { %4342 = vmatpush3.msra.mxu1 %v616_v4  ;;  %v610_v20 = vmul.f32 %v4659_v18, %v4651_v63 }
 0x359   :  { %4343 = vmatprep.subr.mxu1 %v614_v19  ;;  %v863_v31 = vpop.permute.xlu0 %862 }
 0x35a   :  { %4344 = vmatpush3.msra.mxu1 %v614_v19  ;;  %4345 = vmatprep.mubr.msk.f32.mxu1 %vm122_vm2, %v610_v20  ;;  %v1154_v39 = vpop.permute.xlu1 %1153 }
 0x35b   :  { %v4661_v23 = vpop.eup %4660  ;;  %4348 = vmatprep.subr.mxu1 %v290_v22 }
 0x35c   :  { %v612_v25 = vmul.f32 %v4661_v23, %v4653_v1 }
 0x35d   :  { %v1156_v36 = vpop.permute.xlu0 %1155 }
 0x35e   :  { %4346 = vmatmul.mubr.msk.f32.vlgmr.msra.gmra.mxu1 %vm122_vm2, %v612_v25  ;;  %v1152_v41 = vpop.permute.xlu1 %1151 }
 0x35f   :  { %4349 = vmatpush3.msra.mxu1 %v290_v22 }
 0x360   :  { %4358 = vmatprep.subr.msk.mxu1 %vm299_vm3, %v869_v26 }
 0x361   :  { %v1150_v38 = vpop.permute.xlu0 %1149 }
 0x417   :  { %v4333_v28 = vpop.f32.mrf.mxu1 }
 0x419   :  { %v487_v30 = vpop.f32.mrf.mxu1 }
 0x41a   :  { %4355 = vmatprep.mubr.msk.f32.mxu0 %vm299_vm3, %v487_v30 }
 0x41b   :  { %4356 = vmatmul.mubr.msk.f32.vlgmr.msra.gmra.mxu0 %vm299_vm3, %v4333_v28 }
 0x41e   :  { %v4347_v32 = vpop.f32.mrf.mxu1 }
 0x420   :  { %v691_v35 = vpop.f32.mrf.mxu1 }
 0x421   :  { %4350 = vmatprep.mubr.msk.f32.mxu1 %vm299_vm3, %v691_v35 }
 0x422   :  { %4351 = vmatmul.mubr.msk.f32.vlgmr.msra.gmra.mxu1 %vm299_vm3, %v4347_v32 }
 0x423   :  { %4359 = vmatpush3.xpose.msk.msra.mxu1 %vm299_vm3, %v869_v26  ;;  %4362 = vmatprep.mubr.msk.f32.mxu1 %vm299_vm3, %v863_v31  ;;  %v291_v31 = vld [vmem:[%s5662_s3 + $0x10] sm:$0xff] }
 0x424   :  { %4360 = vmatprep.subr.msk.mxu1 %vm299_vm3, %v867_v34 }
 0x427   :  { %4361 = vmatpush3.xpose.msk.msra.mxu1 %vm299_vm3, %v867_v34 }
 0x428   :  { %4377 = vmatprep.subr.msk.mxu1 %vm299_vm3, %v1156_v36 }
 0x42a   :  { %4363 = vmatmul.mubr.msk.f32.vlgmr.msra.gmra.mxu1 %vm299_vm3, %v865_v37 }
 0x42b   :  { %4378 = vmatpush3.xpose.msk.msra.mxu1 %vm299_vm3, %v1156_v36  ;;  %4381 = vmatprep.mubr.msk.f32.mxu1 %vm299_vm3, %v1150_v38 }
 0x42c   :  { %4379 = vmatprep.subr.msk.mxu1 %vm299_vm3, %v1154_v39 }
 0x42f   :  { %4380 = vmatpush3.xpose.msk.msra.mxu1 %vm299_vm3, %v1154_v39 }
 0x430   :  { %4396 = vmatprep.subr.mxu1 %v4750_v6 }
 0x432   :  { %4382 = vmatmul.mubr.msk.f32.vlgmr.msra.gmra.mxu1 %vm299_vm3, %v1152_v41 }
 0x433   :  { %4397 = vmatpush3.msra.mxu1 %v1495_v40  ;;  %4404 = vmatprep.mubr.msk.f32.mxu1 %vm4751_vm1, %v4750_v6 }
 0x434   :  { %4398 = vmatprep.subr.mxu1 %v4750_v6 }
 0x435   :  { %4399 = vmatpush3.msra.mxu1 %v1494_v42 }
 0x436   :  { %4400 = vmatprep.subr.mxu1 %v4750_v6 }
 0x437   :  { %4401 = vmatpush3.msra.mxu1 %v1493_v43 }
 0x438   :  { %4402 = vmatprep.subr.mxu1 %v4750_v6 }
 0x439   :  { %4403 = vmatpush3.msra.mxu1 %v1492_v45 }
 0x43a   :  { %4405 = vmatmul.mubr.msk.f32.vlgmr.msra.gmra.mxu1 %vm207_vm0, %v5057_v46 }
 0x4db   :  { %v4357_v47 = vpop.f32.mrf.mxu0 }
 0x4dd   :  { %v853_v43 = vpop.f32.mrf.mxu0 }
 0x4e2   :  { %v4352_v48 = vpop.f32.mrf.mxu1 }
 0x4e3   :  { %v5062_v49 = vadd.f32 %v4357_v47, %v4352_v48 }
 0x4e4   :  { %v5064_v50 = vpop.f32.mrf.mxu1 }
 0x4ea   :  { %v4364_v51 = vpop.f32.mrf.mxu1 }
 0x4eb   :  { %v954_v52 = vmul.f32 0.35355338, %v4364_v51 }
 0x4ec   :  { %v944_v53 = vpop.f32.mrf.mxu1 }
 0x4ed   :  { %v953_v54 = vmul.f32 0.35355338, %v944_v53  ;;  %v956_v55 = vadd.f32 %v954_v52, %v4970_v29 }
 0x4ef   :  { %v960_v21 = vsel %vm122_vm2, %v956_v55, -inf  ;;  %v955_v56 = vadd.f32 %v953_v54, %v4972_v33  ;;  %v292_v54 = vld [vmem:[%s5662_s3 + $0x18] sm:$0xff] }
 0x4f0   :  { %961 = vmax.xlane.f32.xlu1 %v960_v21  ;;  %v854_v21 = vadd.f32 %v853_v43, %v5064_v50  ;;  %v4012_v50 = vld [vmem:[%s5607_s11] ss:$0 sm:$0xff] }
 0x4f1   :  { %v957_v57 = vsel %vm122_vm2, %v955_v56, -inf }
 0x4f2   :  { %958 = vmax.xlane.f32.xlu0 %v957_v57  ;;  %v4383_v58 = vpop.f32.mrf.mxu1 }
 0x4f3   :  { %v1241_v20 = vmul.f32 0.35355338, %v4383_v58 }
 0x4f4   :  { %v1231_v59 = vpop.f32.mrf.mxu1 }
 0x4f5   :  { %v1240_v62 = vmul.f32 0.35355338, %v1231_v59  ;;  %v1243_v25 = vadd.f32 %v1241_v20, %v4970_v29 }
 0x4f7   :  { %v1242_v63 = vadd.f32 %v1240_v62, %v4972_v33  ;;  %v1247_v26 = vsel %vm122_vm2, %v1243_v25, -inf  ;;  %v1579_v62 = vld [vmem:[%s5665_s26 + $0x18] sm:$0xff] }
 0x4f9   :  { %v1244_v0 = vsel %vm122_vm2, %v1242_v63, -inf }
 0x4fa   :  { %v5070_v60 = vpop.f32.mrf.mxu1 }
 0x4fc   :  { %v4406_v61 = vpop.f32.mrf.mxu1 }
 0x501   :  { %981 = vrot.lane.b32.xlu1 %v4934_v12, %s5644_s5 }
 0x525   :  { %1245 = vmax.xlane.f32.xlu1 %v1244_v0  ;;  %v1576_v0 = vld [vmem:[%s5665_s26] sm:$0xff] }
 0x579   :  { %v962_v1 = vpop.xlane.xlu1 %961 }
 0x57a   :  { %v964_v3 = vsub.f32 %v956_v55, %v962_v1  ;;  %v1573_v1 = vadd.f32 %v4012_v50, %v5070_v60 }
 0x57b   :  { %v959_v4 = vpop.xlane.xlu0 %958 }
 0x57c   :  { %v967_v7 = vmul.f32 1.442695, %v964_v3  ;;  %v963_v8 = vsub.f32 %v955_v56, %v959_v4  ;;  %v4009_v4 = vld [vmem:[%s5608_s7] ss:$0 sm:$0xff] }
 0x57d   :  { %v982_v9 = vpop.permute.xlu1 %981 }
 0x57e   :  { %4662 = vpow2.f32 %v967_v7  ;;  %v965_v10 = vmul.f32 1.442695, %v963_v8  ;;  %4365 = vmatprep.subr.mxu0 %v982_v9 }
 0x57f   :  { %4366 = vmatpush3.msra.mxu0 %v982_v9 }
 0x580   :  { %4664 = vpow2.f32 %v965_v10 }
 0x58b   :  { %v4663_v11 = vpop.eup %4662 }
 0x58c   :  { %v972_v13 = vsel %vm122_vm2, %v4663_v11, 0.0 }
 0x58d   :  { %v4665_v15 = vpop.eup %4664  ;;  %973 = vadd.xlane.f32.xlu0 %v972_v13 }
 0x58e   :  { %v969_v16 = vsel %vm122_vm2, %v4665_v15, 0.0 }
 0x591   :  { %970 = vadd.xlane.f32.xlu0 %v969_v16 }
 0x5a7   :  { %979 = vrot.lane.b32.xlu0 %v4936_v14, %s5644_s5  ;;  %s5671_s5 = smov 72  }
 0x5ae   :  { %v1246_v17 = vpop.xlane.xlu1 %1245 }
 0x5af   :  { %v1250_v18 = vsub.f32 %v1242_v63, %v1246_v17  ;;  %v1578_v63 = vld [vmem:[%s5665_s26 + $0x10] sm:$0xff] }
 0x5b1   :  { %v1252_v19 = vmul.f32 1.442695, %v1250_v18 }
 0x5b3   :  { %4666 = vpow2.f32 %v1252_v19 }
 0x5c0   :  { %v4667_v22 = vpop.eup %4666 }
 0x5c1   :  { %v1256_v23 = vsel %vm122_vm2, %v4667_v22, 0.0 }
 0x5c2   :  { %1257 = vadd.xlane.f32.xlu1 %v1256_v23 }
 0x5c6   :  { %1248 = vmax.xlane.f32.xlu0 %v1247_v26 }
 0x5d3   :  { %1268 = vrot.lane.b32.xlu1 %v4934_v12, %s5642_s6 }
 0x616   :  { %v974_v27 = vpop.xlane.xlu0 %973 }
 0x617   :  { %4668 = vrcp.f32 %v974_v27 }
 0x61a   :  { %v971_v28 = vpop.xlane.xlu0 %970 }
 0x61b   :  { %4670 = vrcp.f32 %v971_v28 }
 0x61e   :  { %v980_v30 = vpop.permute.xlu0 %979 }
 0x61f   :  { %4367 = vmatprep.subr.mxu0 %v980_v30 }
 0x620   :  { %4368 = vmatpush3.msra.mxu0 %v980_v30 }
 0x621   :  { %4372 = vmatprep.subr.mxu0 %v291_v31 }
 0x624   :  { %v4669_v32 = vpop.eup %4668 }
 0x625   :  { %v978_v36 = vmul.f32 %v4669_v32, %v4663_v11 }
 0x628   :  { %v4671_v34 = vpop.eup %4670 }
 0x629   :  { %v976_v35 = vmul.f32 %v4671_v34, %v4665_v15 }
 0x62b   :  { %4369 = vmatprep.mubr.msk.f32.mxu0 %vm122_vm2, %v976_v35 }
 0x62c   :  { %4370 = vmatmul.mubr.msk.f32.vlgmr.msra.gmra.mxu0 %vm122_vm2, %v978_v36 }
 0x62d   :  { %4373 = vmatpush3.msra.mxu0 %v291_v31 }
 0x64b   :  { %v1258_v12 = vpop.xlane.xlu1 %1257 }
 0x64f   :  { %v1269_v37 = vpop.permute.xlu1 %1268  ;;  %v1249_v38 = vpop.xlane.xlu0 %1248 }
 0x650   :  { %v1251_v39 = vsub.f32 %v1243_v25, %v1249_v38  ;;  %4384 = vmatprep.subr.mxu0 %v1269_v37  ;;  %v4014_v38 = vld [vmem:[%s5609_s13] ss:$0 sm:$0xff] }
 0x652   :  { %v1254_v40 = vmul.f32 1.442695, %v1251_v39 }
 0x654   :  { %4672 = vpow2.f32 %v1254_v40 }
 0x655   :  { %4674 = vrcp.f32 %v1258_v12 }
 0x661   :  { %v4673_v41 = vpop.eup %4672 }
 0x662   :  { %v1259_v42 = vsel %vm122_vm2, %v4673_v41, 0.0  ;;  %v4675_v44 = vpop.eup %4674 }
 0x663   :  { %1260 = vadd.xlane.f32.xlu0 %v1259_v42  ;;  %v1263_v51 = vmul.f32 %v4675_v44, %v4667_v22 }
 0x679   :  { %1266 = vrot.lane.b32.xlu0 %v4936_v14, %s5642_s6  ;;  %s5669_s6 = smov 80  }
 0x6ec   :  { %v4371_v45 = vpop.f32.mrf.mxu0  ;;  %v1261_v47 = vpop.xlane.xlu0 %1260 }
 0x6ed   :  { %4676 = vrcp.f32 %v1261_v47 }
 0x6ee   :  { %v1057_v48 = vpop.f32.mrf.mxu0 }
 0x6ef   :  { %4374 = vmatprep.mubr.msk.f32.mxu0 %vm299_vm3, %v1057_v48 }
 0x6f0   :  { %4375 = vmatmul.mubr.msk.f32.vlgmr.msra.gmra.mxu0 %vm299_vm3, %v4371_v45  ;;  %v1267_v52 = vpop.permute.xlu0 %1266  ;;  %v4010_v45 = vld [vmem:[%s5610_s8] ss:$0 sm:$0xff] }
 0x6f1   :  { %4385 = vmatpush3.msra.mxu0 %v1269_v37  ;;  %4388 = vmatprep.mubr.msk.f32.mxu0 %vm122_vm2, %v1263_v51 }
 0x6f2   :  { %4386 = vmatprep.subr.mxu0 %v1267_v52 }
 0x6f3   :  { %4387 = vmatpush3.msra.mxu0 %v1267_v52  ;;  %v4011_v52 = vld [vmem:[%s5611_s9] ss:$0 sm:$0xff] }
 0x6f4   :  { %4391 = vmatprep.subr.mxu0 %v292_v54 }
 0x6fa   :  { %v4677_v53 = vpop.eup %4676 }
 0x6fb   :  { %v1265_v14 = vmul.f32 %v4677_v53, %v4673_v41 }
 0x6fd   :  { %4389 = vmatmul.mubr.msk.f32.vlgmr.msra.gmra.mxu0 %vm122_vm2, %v1265_v14 }
 0x6fe   :  { %4392 = vmatpush3.msra.mxu0 %v292_v54  ;;  %v5152_v54 = vsub.s32 0, %v4966_v24 }
 0x6ff   :  { %4407 = vmatprep.subr.mxu0 %v4750_v6 }
 0x7b0   :  { %v4376_v55 = vpop.f32.mrf.mxu0 }
 0x7b1   :  { %v1148_v56 = vadd.f32 %v4376_v55, %v5062_v49  ;;  %v1577_v49 = vld [vmem:[%s5665_s26 + $0x8] sm:$0xff] }
 0x7b2   :  { %v1138_v57 = vpop.f32.mrf.mxu0 }
 0x7b3   :  { %v1147_v58 = vadd.f32 %v1138_v57, %v854_v21 }
 0x7bd   :  { %v4390_v59 = vpop.f32.mrf.mxu0 }
 0x7bf   :  { %v1344_v61 = vpop.f32.mrf.mxu0 }
 0x7c0   :  { %4393 = vmatprep.mubr.msk.f32.mxu0 %vm299_vm3, %v1344_v61 }
 0x7c1   :  { %4394 = vmatmul.mubr.msk.f32.vlgmr.msra.gmra.mxu0 %vm299_vm3, %v4390_v59 }
 0x7c2   :  { %4408 = vmatpush3.msra.mxu0 %v1579_v62  ;;  %4415 = vmatprep.mubr.msk.f32.mxu0 %vm4751_vm1, %v4750_v6 }
 0x7c3   :  { %4409 = vmatprep.subr.mxu0 %v4750_v6 }
 0x7c4   :  { %4410 = vmatpush3.msra.mxu0 %v1578_v63 }
 0x7c5   :  { %4411 = vmatprep.subr.mxu0 %v4750_v6 }
 0x7c6   :  { %4412 = vmatpush3.msra.mxu0 %v1577_v49 }
 0x7c7   :  { %4413 = vmatprep.subr.mxu0 %v4750_v6 }
 0x7c8   :  { %4414 = vmatpush3.msra.mxu0 %v1576_v0 }
 0x7c9   :  { %4416 = vmatmul.mubr.msk.f32.vlgmr.msra.gmra.mxu0 %vm207_vm0, %v1573_v1 }
 0x881   :  { %v4395_v3 = vpop.f32.mrf.mxu0 }
 0x882   :  { %v1435_v7 = vadd.f32 %v4395_v3, %v1148_v56 }
 0x883   :  { %v1425_v8 = vpop.f32.mrf.mxu0 }
 0x884   :  { %v1444_v9 = vadd.f32 %v4009_v4, %v1435_v7  ;;  %v1434_v10 = vadd.f32 %v1425_v8, %v1147_v58 }
 0x886   :  { %v1443_v11 = vadd.f32 %v4009_v4, %v1434_v10  ;;  %v1446_v13 = vadd.f32 %v1444_v9, %v4913_v5 }
 0x888   :  { %v1452_v15 = vsel %vm207_vm0, %v1446_v13, 0.0  ;;  %v1445_v60 = vadd.f32 %v1443_v11, %v4900_v2  ;;  %v4764_v2 = vmov 1966171168   ;;  %v1742_v11 = vld [vmem:[%s5612_s16 + $0x18] sm:$0xff] }
 0x889   :  { %v1656_v16 = vpop.f32.mrf.mxu0  ;;  %1453 = vadd.xlane.f32.xlu0 %v1452_v15  ;;  %v1662_v31 = vunpack.c.l.s4 %v4764_v2  ;;  %4418 = vmatprep.subr.mxu1 %v1742_v11  ;;  %v1740_v15 = vld [vmem:[%s5612_s16 + $0x8] sm:$0xff] }
 0x88a   :  { %v1449_v17 = vsel %vm207_vm0, %v1445_v60, 0.0  ;;  %v1657_v40 = vadd.f32 %v4014_v38, %v1656_v16  ;;  %4419 = vmatpush3.msra.mxu1 %v1742_v11  ;;  %v1895_v38 = vld [vmem:[%s5615_s18 + $0x50] sm:$0xff] }
 0x88b   :  { %v4417_v18 = vpop.f32.mrf.mxu0  ;;  %1450 = vadd.xlane.f32.xlu1 %v1449_v17  ;;  %v1663_v36 = vunpack.c.0.s8 %v1662_v31 }
 0x88d   :  { %v5140_v41 = vsub.s32 %v1663_v36, %v4966_v24  ;;  %v1898_v36 = vld [vmem:[%s5615_s18 + $0x68] sm:$0xff] }
 0x88f   :  { %v1667_v42 = vrot.slane %v1657_v40, %v5140_v41  ;;  %v1893_v40 = vld [vmem:[%s5615_s18 + $0x40] sm:$0xff] }
 0x891   :  { %v1668_v43 = vcombine.high %v1667_v42, %v1667_v42  ;;  %v1675_v53 = vrot.slane %v1667_v42, %v5140_v41  ;;  %v1892_v42 = vld [vmem:[%s5615_s18 + $0x38] sm:$0xff] }
 0x893   :  { %v1682_v48 = vrot.slane %v1668_v43, %v5140_v41  ;;  %v1686_v61 = vrot.slane %v1675_v53, %v5152_v54  ;;  %v1891_v43 = vld [vmem:[%s5615_s18 + $0x30] sm:$0xff]  ;;  %v4018_v53 = vld [vmem:[%s5616_s17] ss:$0 sm:$0xff] }
 0x895   :  { %v1690_v56 = vrot.slane %v1682_v48, %v5152_v54  ;;  %v1887_v48 = vld [vmem:[%s5615_s18 + $0x10] sm:$0xff] }
 0x912   :  { %v1454_v19 = vpop.xlane.xlu0 %1453 }
 0x913   :  { %v1457_v20 = vmul.f32 0.03125, %v1454_v19 }
 0x914   :  { %v1451_v22 = vpop.xlane.xlu1 %1450 }
 0x915   :  { %v1459_v23 = vsub.f32 %v1446_v13, %v1457_v20  ;;  %v1456_v25 = vmul.f32 0.03125, %v1451_v22  ;;  %v1741_v13 = vld [vmem:[%s5612_s16 + $0x10] sm:$0xff] }
 0x916   :  { %4420 = vmatprep.subr.mxu1 %v1741_v13 }
 0x917   :  { %v1458_v26 = vsub.f32 %v1445_v60, %v1456_v25  ;;  %v1461_v27 = vmul.f32 %v1459_v23, %v1459_v23  ;;  %4421 = vmatpush3.msra.mxu1 %v1741_v13  ;;  %v1739_v60 = vld [vmem:[%s5612_s16] sm:$0xff] }
 0x918   :  { %4422 = vmatprep.subr.mxu1 %v1740_v15  ;;  %v4016_v25 = vld [vmem:[%s5613_s14] ss:$0 sm:$0xff] }
 0x919   :  { %v1465_v28 = vsel %vm207_vm0, %v1461_v27, 0.0  ;;  %v1460_v5 = vmul.f32 %v1458_v26, %v1458_v26  ;;  %4423 = vmatpush3.msra.mxu1 %v1740_v15 }
 0x91a   :  { %1466 = vadd.xlane.f32.xlu0 %v1465_v28  ;;  %4424 = vmatprep.subr.mxu1 %v1739_v60 }
 0x91b   :  { %v1462_v30 = vsel %vm207_vm0, %v1460_v5, 0.0  ;;  %4425 = vmatpush3.msra.mxu1 %v1739_v60 }
 0x91c   :  { %1463 = vadd.xlane.f32.xlu1 %v1462_v30  ;;  %v4017_v30 = vld [vmem:[%s5614_s15] ss:$0 sm:$0xff] }
 0x9a3   :  { %v1467_v32 = vpop.xlane.xlu0 %1466 }
 0x9a4   :  { %v1469_v34 = vmul.f32 0.03125, %v1467_v32 }
 0x9a5   :  { %v1464_v35 = vpop.xlane.xlu1 %1463 }
 0x9a6   :  { %v1471_v12 = vadd.f32 1e-05, %v1469_v34  ;;  %v1468_v37 = vmul.f32 0.03125, %v1464_v35  ;;  %v1900_v34 = vld [vmem:[%s5615_s18 + $0x78] sm:$0xff]  ;;  %v1899_v35 = vld [vmem:[%s5615_s18 + $0x70] sm:$0xff] }
 0x9a7   :  { %4429 = vmatprep.subr.mxu0 %v1900_v34 }
 0x9a8   :  { %4678 = vrsqrt.f32 %v1471_v12  ;;  %v1470_v39 = vadd.f32 1e-05, %v1468_v37  ;;  %4430 = vmatpush3.msra.mxu0 %v1900_v34  ;;  %v1897_v12 = vld [vmem:[%s5615_s18 + $0x60] sm:$0xff]  ;;  %v1896_v37 = vld [vmem:[%s5615_s18 + $0x58] sm:$0xff] }
 0x9a9   :  { %4431 = vmatprep.subr.mxu0 %v1899_v35 }
 0x9aa   :  { %4680 = vrsqrt.f32 %v1470_v39  ;;  %4432 = vmatpush3.msra.mxu0 %v1899_v35  ;;  %v1894_v39 = vld [vmem:[%s5615_s18 + $0x48] sm:$0xff] }
 0x9ab   :  { %4433 = vmatprep.subr.mxu0 %v1898_v36 }
 0x9ac   :  { %4434 = vmatpush3.msra.mxu0 %v1898_v36 }
 0x9ad   :  { %4435 = vmatprep.subr.mxu0 %v1897_v12 }
 0x9ae   :  { %4436 = vmatpush3.msra.mxu0 %v1897_v12  ;;  %v4765_v12 = vmov -1.0  }
 0x9af   :  { %4437 = vmatprep.subr.mxu0 %v1896_v37 }
 0x9b0   :  { %4438 = vmatpush3.msra.mxu0 %v1896_v37 }
 0x9b1   :  { %4439 = vmatprep.subr.mxu0 %v1895_v38 }
 0x9b2   :  { %4440 = vmatpush3.msra.mxu0 %v1895_v38 }
 0x9b3   :  { %4441 = vmatprep.subr.mxu0 %v1894_v39 }
 0x9b4   :  { %4442 = vmatpush3.msra.mxu0 %v1894_v39 }
 0x9b5   :  { %v4679_v44 = vpop.eup %4678  ;;  %4443 = vmatprep.subr.mxu0 %v1893_v40 }
 0x9b6   :  { %v1475_v47 = vmul.f32 %v4679_v44, %v1459_v23  ;;  %4444 = vmatpush3.msra.mxu0 %v1893_v40  ;;  %v1890_v44 = vld [vmem:[%s5615_s18 + $0x28] sm:$0xff] }
 0x9b7   :  { %v4681_v51 = vpop.eup %4680  ;;  %4445 = vmatprep.subr.mxu0 %v1892_v42 }
 0x9b8   :  { %v1483_v14 = vmul.f32 %v4010_v45, %v1475_v47  ;;  %v1474_v55 = vmul.f32 %v4681_v51, %v1458_v26  ;;  %4446 = vmatpush3.msra.mxu0 %v1892_v42  ;;  %v1888_v47 = vld [vmem:[%s5615_s18 + $0x18] sm:$0xff]  ;;  %v1886_v51 = vld [vmem:[%s5615_s18 + $0x8] sm:$0xff] }
 0x9b9   :  { %4447 = vmatprep.subr.mxu0 %v1891_v43 }
 0x9ba   :  { %v1491_v21 = vadd.f32 %v4011_v52, %v1483_v14  ;;  %v1482_v57 = vmul.f32 %v4010_v45, %v1474_v55  ;;  %4448 = vmatpush3.msra.mxu0 %v1891_v43  ;;  %v1889_v45 = vld [vmem:[%s5615_s18 + $0x20] sm:$0xff] }
 0x9bb   :  { %4449 = vmatprep.subr.mxu0 %v1890_v44 }
 0x9bc   :  { %v1694_v58 = vadd.f32 %v1690_v56, %v1491_v21  ;;  %v1490_v59 = vadd.f32 %v4011_v52, %v1482_v57  ;;  %4450 = vmatpush3.msra.mxu0 %v1890_v44  ;;  %v1885_v52 = vld [vmem:[%s5615_s18] sm:$0xff] }
 0x9bd   :  { %4451 = vmatprep.subr.mxu0 %v1889_v45 }
 0x9be   :  { %v1700_v62 = vsel %vm207_vm0, %v1694_v58, 0.0  ;;  %v1693_v63 = vadd.f32 %v1686_v61, %v1490_v59  ;;  %4452 = vmatpush3.msra.mxu0 %v1889_v45 }
 0x9bf   :  { %1701 = vadd.xlane.f32.xlu0 %v1700_v62  ;;  %4453 = vmatprep.subr.mxu0 %v1888_v47 }
 0x9c0   :  { %v1697_v49 = vsel %vm207_vm0, %v1693_v63, 0.0  ;;  %4454 = vmatpush3.msra.mxu0 %v1888_v47 }
 0x9c1   :  { %1698 = vadd.xlane.f32.xlu1 %v1697_v49  ;;  %4455 = vmatprep.subr.mxu0 %v1887_v48 }
 0x9c2   :  { %4456 = vmatpush3.msra.mxu0 %v1887_v48 }
 0x9c3   :  { %4457 = vmatprep.subr.mxu0 %v1886_v51 }
 0x9c4   :  { %4458 = vmatpush3.msra.mxu0 %v1886_v51 }
 0x9c5   :  { %4459 = vmatprep.subr.mxu0 %v1885_v52 }
 0x9c6   :  { %4460 = vmatpush3.msra.mxu0 %v1885_v52 }
 0xa48   :  { %v1702_v50 = vpop.xlane.xlu0 %1701 }
 0xa49   :  { %v1704_v0 = vmul.f32 0.03125, %v1702_v50 }
 0xa4a   :  { %v1699_v24 = vpop.xlane.xlu1 %1698 }
 0xa4b   :  { %v1706_v1 = vsub.f32 %v1694_v58, %v1704_v0  ;;  %v1703_v3 = vmul.f32 0.03125, %v1699_v24 }
 0xa4d   :  { %v1705_v4 = vsub.f32 %v1693_v63, %v1703_v3  ;;  %v1708_v7 = vmul.f32 %v1706_v1, %v1706_v1 }
 0xa4f   :  { %v1712_v8 = vsel %vm207_vm0, %v1708_v7, 0.0  ;;  %v1707_v9 = vmul.f32 %v1705_v4, %v1705_v4 }
 0xa50   :  { %1713 = vadd.xlane.f32.xlu0 %v1712_v8 }
 0xa51   :  { %v1709_v10 = vsel %vm207_vm0, %v1707_v9, 0.0 }
 0xa52   :  { %1710 = vadd.xlane.f32.xlu1 %v1709_v10 }
 0xad9   :  { %v1714_v16 = vpop.xlane.xlu0 %1713 }
 0xada   :  { %v1716_v17 = vmul.f32 0.03125, %v1714_v16 }
 0xadb   :  { %v1711_v18 = vpop.xlane.xlu1 %1710 }
 0xadc   :  { %v1718_v19 = vadd.f32 1e-05, %v1716_v17  ;;  %v1715_v20 = vmul.f32 0.03125, %v1711_v18 }
 0xade   :  { %4682 = vrsqrt.f32 %v1718_v19  ;;  %v1717_v22 = vadd.f32 1e-05, %v1715_v20 }
 0xae0   :  { %4684 = vrsqrt.f32 %v1717_v22 }
 0xaeb   :  { %v4683_v23 = vpop.eup %4682 }
 0xaec   :  { %v1722_v26 = vmul.f32 %v4683_v23, %v1706_v1 }
 0xaed   :  { %v4685_v27 = vpop.eup %4684 }
 0xaee   :  { %v1721_v28 = vmul.f32 %v4685_v27, %v1705_v4  ;;  %v1730_v5 = vmul.f32 %v4016_v25, %v1722_v26 }
 0xaf0   :  { %v1729_v2 = vmul.f32 %v4016_v25, %v1721_v28  ;;  %v5180_v32 = vadd.f32 %v4017_v30, %v1730_v5 }
 0xaf2   :  { %v5178_v31 = vadd.f32 %v4017_v30, %v1729_v2 }
 0xaf4   :  { %4426 = vmatprep.mubr.msk.f32.mxu1 %vm207_vm0, %v5178_v31 }
 0xaf5   :  { %4427 = vmatmul.mubr.msk.f32.vlgmr.msra.gmra.mxu1 %vm207_vm0, %v5180_v32 }
 0xbb5   :  { %v4428_v14 = vpop.f32.mrf.mxu1 }
 0xbb6   :  { %v1828_v55 = vadd.f32 %v4428_v14, %v4018_v53 }
 0xbb7   :  { %v1822_v21 = vpop.f32.mrf.mxu1 }
 0xbb8   :  { %v1834_v56 = vmul.f32 0.70710677, %v1828_v55  ;;  %v1823_v57 = vadd.f32 %v4018_v53, %v1822_v21  ;;  %v1832_v48 = vmul.f32 0.5, %v1828_v55  ;;  %v4021_v53 = vld [vmem:[%s5617_s19] ss:$0 sm:$0xff] }
 0xbba   :  { %v1840_v58 = vand.u32 2147483647, %v1834_v56  ;;  %v1833_v59 = vmul.f32 0.70710677, %v1823_v57  ;;  %vm1836_vm8 = vcmp.ge.f32.partialorder %v1834_v56, 0.0  ;;  %v1831_v45 = vmul.f32 0.5, %v1823_v57 }
 0xbbb   :  { %v1838_v37 = vsel %vm1836_vm8, 1.0, %v4765_v12 }
 0xbbc   :  { %v1842_v61 = vmul.f32 0.3275911, %v1840_v58  ;;  %v1839_v62 = vand.u32 2147483647, %v1833_v59  ;;  %v1868_v0 = vsub.f32 0.0, %v1840_v58  ;;  %vm1835_vm9 = vcmp.ge.f32.partialorder %v1833_v59, 0.0 }
 0xbbd   :  { %v1837_v42 = vsel %vm1835_vm9, 1.0, %v4765_v12 }
 0xbbe   :  { %v1844_v63 = vadd.f32 1.0, %v1842_v61  ;;  %v1841_v49 = vmul.f32 0.3275911, %v1839_v62  ;;  %v1867_v24 = vsub.f32 0.0, %v1839_v62  ;;  %v1870_v1 = vmul.f32 %v1868_v0, %v1840_v58 }
 0xbc0   :  { %4686 = vrcp.f32 %v1844_v63  ;;  %v1843_v50 = vadd.f32 1.0, %v1841_v49  ;;  %v1869_v4 = vmul.f32 %v1867_v24, %v1839_v62  ;;  %v1873_v8 = vmul.f32 1.442695, %v1870_v1 }
 0xbc2   :  { %4688 = vrcp.f32 %v1843_v50  ;;  %v1871_v11 = vmul.f32 1.442695, %v1869_v4 }
 0xbc3   :  { %4690 = vpow2.f32 %v1873_v8  ;;  %v4025_v8 = vld [vmem:[%s5657_s27 + $0x28] sm:$0xff] }
 0xbc4   :  { %4692 = vpow2.f32 %v1871_v11 }
 0xbcd   :  { %v4687_v3 = vpop.eup %4686 }
 0xbce   :  { %v1850_v7 = vmul.f32 1.0614054, %v4687_v3 }
 0xbcf   :  { %v4689_v9 = vpop.eup %4688 }
 0xbd0   :  { %v1852_v10 = vadd.f32 -1.4531521, %v1850_v7  ;;  %v1849_v13 = vmul.f32 1.0614054, %v4689_v9  ;;  %v4691_v5 = vpop.eup %4690  ;;  %v4026_v7 = vld [vmem:[%s5657_s27 + $0x30] sm:$0xff] }
 0xbd1   :  { %v4693_v35 = vpop.eup %4692 }
 0xbd2   :  { %v1854_v15 = vmul.f32 %v4687_v3, %v1852_v10  ;;  %v1851_v60 = vadd.f32 -1.4531521, %v1849_v13 }
 0xbd4   :  { %v1856_v16 = vadd.f32 1.4214138, %v1854_v15  ;;  %v1853_v17 = vmul.f32 %v4689_v9, %v1851_v60 }
 0xbd6   :  { %v1858_v18 = vmul.f32 %v4687_v3, %v1856_v16  ;;  %v1855_v19 = vadd.f32 1.4214138, %v1853_v17 }
 0xbd8   :  { %v1860_v20 = vadd.f32 -0.28449672, %v1858_v18  ;;  %v1857_v22 = vmul.f32 %v4689_v9, %v1855_v19  ;;  %v4022_v18 = vld [vmem:[%s5618_s20] ss:$0 sm:$0xff] }
 0xbda   :  { %v1862_v23 = vmul.f32 %v4687_v3, %v1860_v20  ;;  %v1859_v25 = vadd.f32 -0.28449672, %v1857_v22 }
 0xbdc   :  { %v1864_v26 = vadd.f32 0.2548296, %v1862_v23  ;;  %v1861_v27 = vmul.f32 %v4689_v9, %v1859_v25  ;;  %v4023_v25 = vld [vmem:[%s5619_s21] ss:$0 sm:$0xff] }
 0xbde   :  { %v1866_v28 = vmul.f32 %v4687_v3, %v1864_v26  ;;  %v1863_v30 = vadd.f32 0.2548296, %v1861_v27 }
 0xbe0   :  { %v1876_v2 = vmul.f32 %v4691_v5, %v1866_v28  ;;  %v1865_v34 = vmul.f32 %v4689_v9, %v1863_v30  ;;  %v4024_v9 = vld [vmem:[%s5657_s27 + $0x20] sm:$0xff] }
 0xbe1   :  { %v4029_v5 = vld [vmem:[%s5661_s4 + $0x1] ss:$0 sm:$0xff]  ;;  %s5666_s4 = smov 88  }
 0xbe2   :  { %v1878_v36 = vsub.f32 1.0, %v1876_v2  ;;  %v1875_v38 = vmul.f32 %v4693_v35, %v1865_v34 }
 0xbe4   :  { %v1880_v39 = vmul.f32 %v1878_v36, %v1838_v37  ;;  %v1877_v40 = vsub.f32 1.0, %v1875_v38 }
 0xbe6   :  { %v1879_v43 = vmul.f32 %v1877_v40, %v1837_v42  ;;  %v1882_v44 = vadd.f32 1.0, %v1880_v39 }
 0xbe8   :  { %v1881_v47 = vadd.f32 1.0, %v1879_v43  ;;  %v1884_v52 = vmul.f32 %v1882_v44, %v1832_v48 }
 0xbea   :  { %v1883_v51 = vmul.f32 %v1881_v47, %v1831_v45 }
 0xbec   :  { %4461 = vmatprep.mubr.f32.mxu0 %v1883_v51 }
 0xbed   :  { %4462 = vmatmul.mubr.f32.vlgmr.msra.gmra.mxu0 %v1884_v52 }
 0xcad   :  { %v4463_v14 = vpop.f32.mrf.mxu0 }
 0xcae   :  { %v1980_v21 = vadd.f32 %v4463_v14, %v4021_v53 }
 0xcaf   :  { %v1974_v56 = vpop.f32.mrf.mxu0 }
 0xcb0   :  { %v1975_v58 = vadd.f32 %v4021_v53, %v1974_v56  ;;  %v1984_v59 = vadd.f32 %v1980_v21, %v5180_v32 }
 0xcb2   :  { %v1990_v61 = vsel %vm207_vm0, %v1984_v59, 0.0  ;;  %v1983_v57 = vadd.f32 %v1975_v58, %v5178_v31  ;;  %v4027_v31 = vld [vmem:[%s5657_s27 + $0x38] sm:$0xff]  ;;  %s5672_s27 = smov 104  }
 0xcb3   :  { %1991 = vadd.xlane.f32.xlu0 %v1990_v61  ;;  %4464 = vmatprep.subr.mxu1 %v4027_v31 }
 0xcb4   :  { %v1987_v55 = vsel %vm207_vm0, %v1983_v57, 0.0  ;;  %4465 = vmatpush3.msra.mxu1 %v4027_v31 }
 0xcb5   :  { %1988 = vadd.xlane.f32.xlu1 %v1987_v55  ;;  %4466 = vmatprep.subr.mxu1 %v4026_v7 }
 0xcb6   :  { %4467 = vmatpush3.msra.mxu1 %v4026_v7 }
 0xcb7   :  { %4468 = vmatprep.subr.mxu1 %v4025_v8 }
 0xcb8   :  { %4469 = vmatpush3.msra.mxu1 %v4025_v8 }
 0xcb9   :  { %4470 = vmatprep.subr.mxu1 %v4024_v9 }
 0xcba   :  { %4471 = vmatpush3.msra.mxu1 %v4024_v9 }
 0xd3c   :  { %v1992_v62 = vpop.xlane.xlu0 %1991 }
 0xd3d   :  { %v1994_v63 = vmul.f32 0.03125, %v1992_v62 }
 0xd3e   :  { %v1989_v49 = vpop.xlane.xlu1 %1988 }
 0xd3f   :  { %v1996_v50 = vsub.f32 %v1984_v59, %v1994_v63  ;;  %v1993_v0 = vmul.f32 0.03125, %v1989_v49 }
 0xd41   :  { %v1995_v24 = vsub.f32 %v1983_v57, %v1993_v0  ;;  %v1998_v1 = vmul.f32 %v1996_v50, %v1996_v50 }
 0xd43   :  { %v2002_v3 = vsel %vm207_vm0, %v1998_v1, 0.0  ;;  %v1997_v4 = vmul.f32 %v1995_v24, %v1995_v24 }
 0xd44   :  { %2003 = vadd.xlane.f32.xlu0 %v2002_v3 }
 0xd45   :  { %v1999_v32 = vsel %vm207_vm0, %v1997_v4, 0.0 }
 0xd46   :  { %2000 = vadd.xlane.f32.xlu1 %v1999_v32 }
 0xdcd   :  { %v2004_v10 = vpop.xlane.xlu0 %2003 }
 0xdce   :  { %v2006_v11 = vmul.f32 0.03125, %v2004_v10 }
 0xdcf   :  { %v2001_v13 = vpop.xlane.xlu1 %2000 }
 0xdd0   :  { %v2008_v15 = vadd.f32 1e-05, %v2006_v11  ;;  %v2005_v60 = vmul.f32 0.03125, %v2001_v13 }
 0xdd2   :  { %4694 = vrsqrt.f32 %v2008_v15  ;;  %v2007_v16 = vadd.f32 1e-05, %v2005_v60 }
 0xdd4   :  { %4696 = vrsqrt.f32 %v2007_v16 }
 0xddf   :  { %v4695_v17 = vpop.eup %4694 }
 0xde0   :  { %v2012_v19 = vmul.f32 %v4695_v17, %v1996_v50  ;;  %v4033_v17 = vld [vmem:[%s5662_s3 + $0x28] sm:$0xff] }
 0xde1   :  { %v4697_v20 = vpop.eup %4696 }
 0xde2   :  { %v2011_v22 = vmul.f32 %v4697_v20, %v1995_v24  ;;  %v2020_v23 = vmul.f32 %v4022_v18, %v2012_v19 }
 0xde4   :  { %v2019_v26 = vmul.f32 %v4022_v18, %v2011_v22  ;;  %v5268_v28 = vadd.f32 %v4023_v25, %v2020_v23 }
 0xde6   :  { %v5266_v27 = vadd.f32 %v4023_v25, %v2019_v26 }
 0xde8   :  { %4472 = vmatprep.mubr.msk.f32.mxu1 %vm207_vm0, %v5266_v27 }
 0xde9   :  { %4473 = vmatmul.mubr.msk.f32.vlgmr.msra.gmra.mxu1 %vm207_vm0, %v5268_v28 }
 0xea9   :  { %v4474_v30 = vpop.f32.mrf.mxu1 }
 0xeaa   :  { %v5277_v2 = vadd.f32 %v4474_v30, %v4029_v5 }
 0xeab   :  { %v2114_v34 = vpop.f32.mrf.mxu1 }
 0xeac   :  { %v5279_v35 = vadd.f32 %v4029_v5, %v2114_v34  ;;  %2132 = vrot.lane.b32.xlu1 %v5277_v2, %s4753_s12 }
 0xeae   :  { %2130 = vrot.lane.b32.xlu0 %v5279_v35, %s4753_s12  ;;  %4479 = vmatprep.mubr.msk.f32.mxu1 %vm299_vm3, %v5279_v35  ;;  %s5667_s12 = smov 120  }
 0xf1e   :  { %v2133_v36 = vpop.permute.xlu1 %2132 }
 0xf1f   :  { %4475 = vmatprep.subr.msk.mxu1 %vm299_vm3, %v2133_v36 }
 0xf20   :  { %4476 = vmatpush3.xpose.msk.msra.mxu1 %vm299_vm3, %v2133_v36  ;;  %v2131_v37 = vpop.permute.xlu0 %2130 }
 0xf21   :  { %4477 = vmatprep.subr.msk.mxu1 %vm299_vm3, %v2131_v37 }
 0xf24   :  { %4478 = vmatpush3.xpose.msk.msra.mxu1 %vm299_vm3, %v2131_v37 }
 0xf27   :  { %4480 = vmatmul.mubr.msk.f32.vlgmr.msra.gmra.mxu1 %vm299_vm3, %v5277_v2 }
 0xfe7   :  { %v4481_v38 = vpop.f32.mrf.mxu1 }
 0xfe8   :  { %v2218_v39 = vmul.f32 0.35355338, %v4481_v38 }
 0xfe9   :  { %v2208_v40 = vpop.f32.mrf.mxu1 }
 0xfea   :  { %v2217_v42 = vmul.f32 0.35355338, %v2208_v40  ;;  %v2220_v43 = vadd.f32 %v2218_v39, %v4970_v29 }
 0xfec   :  { %v2224_v44 = vsel %vm122_vm2, %v2220_v43, -inf  ;;  %v2219_v45 = vadd.f32 %v2217_v42, %v4972_v33  ;;  %v4032_v42 = vld [vmem:[%s5662_s3 + $0x20] sm:$0xff] }
 0xfed   :  { %2225 = vmax.xlane.f32.xlu0 %v2224_v44 }
 0xfee   :  { %v2221_v47 = vsel %vm122_vm2, %v2219_v45, -inf }
 0xfef   :  { %2222 = vmax.xlane.f32.xlu1 %v2221_v47 }
0x1000   :  { %2245 = vrot.lane.b32.xlu1 %v5277_v2, %s4756_s0 }
0x1004   :  { %2336 = vrot.lane.b32.xlu1 %v5277_v2, %s5666_s4 }
0x1008   :  { %2334 = vrot.lane.b32.xlu1 %v5279_v35, %s5666_s4 }
0x1076   :  { %v2226_v48 = vpop.xlane.xlu0 %2225 }
0x1077   :  { %v2228_v51 = vsub.f32 %v2220_v43, %v2226_v48 }
0x1078   :  { %v2223_v52 = vpop.xlane.xlu1 %2222 }
0x1079   :  { %v2231_v53 = vmul.f32 1.442695, %v2228_v51  ;;  %v2227_v14 = vsub.f32 %v2219_v45, %v2223_v52 }
0x107b   :  { %4698 = vpow2.f32 %v2231_v53  ;;  %v2229_v21 = vmul.f32 1.442695, %v2227_v14 }
0x107c   :  { %v2246_v56 = vpop.permute.xlu1 %2245 }
0x107d   :  { %4700 = vpow2.f32 %v2229_v21  ;;  %4482 = vmatprep.subr.mxu1 %v2246_v56 }
0x107e   :  { %4483 = vmatpush3.msra.mxu1 %v2246_v56 }
0x1080   :  { %v2337_v55 = vpop.permute.xlu1 %2336 }
0x1084   :  { %v2335_v62 = vpop.permute.xlu1 %2334 }
0x1088   :  { %v4699_v58 = vpop.eup %4698 }
0x1089   :  { %v2236_v59 = vsel %vm122_vm2, %v4699_v58, 0.0 }
0x108a   :  { %v4701_v61 = vpop.eup %4700  ;;  %2237 = vadd.xlane.f32.xlu0 %v2236_v59  ;;  %v4077_v59 = vld [vmem:[%s5663_s1 + $0x38] sm:$0xff] }
0x108b   :  { %v2233_v57 = vsel %vm122_vm2, %v4701_v61, 0.0 }
0x108c   :  { %2234 = vadd.xlane.f32.xlu1 %v2233_v57  ;;  %v4076_v57 = vld [vmem:[%s5663_s1 + $0x30] sm:$0xff] }
0x109d   :  { %2332 = vrot.lane.b32.xlu1 %v5277_v2, %s5667_s12 }
0x10a0   :  { %2243 = vrot.lane.b32.xlu0 %v5279_v35, %s4756_s0 }
0x10a4   :  { %2330 = vrot.lane.b32.xlu0 %v5279_v35, %s5667_s12 }
0x1113   :  { %v2238_v63 = vpop.xlane.xlu0 %2237 }
0x1114   :  { %4702 = vrcp.f32 %v2238_v63 }
0x1115   :  { %v2235_v49 = vpop.xlane.xlu1 %2234 }
0x1116   :  { %4704 = vrcp.f32 %v2235_v49 }
0x1117   :  { %v2244_v50 = vpop.permute.xlu0 %2243 }
0x1118   :  { %4484 = vmatprep.subr.mxu1 %v2244_v50 }
0x1119   :  { %4485 = vmatpush3.msra.mxu1 %v2244_v50  ;;  %v2333_v32 = vpop.permute.xlu1 %2332 }
0x111a   :  { %4489 = vmatprep.subr.msk.mxu1 %vm299_vm3, %v2337_v55 }
0x111b   :  { %v2331_v4 = vpop.permute.xlu0 %2330 }
0x1121   :  { %v4703_v0 = vpop.eup %4702 }
0x1122   :  { %v2242_v3 = vmul.f32 %v4703_v0, %v4699_v58 }
0x1123   :  { %v4705_v24 = vpop.eup %4704 }
0x1124   :  { %v2240_v1 = vmul.f32 %v4705_v24, %v4701_v61 }
0x1126   :  { %4486 = vmatprep.mubr.msk.f32.mxu1 %vm122_vm2, %v2240_v1 }
0x1127   :  { %4487 = vmatmul.mubr.msk.f32.vlgmr.msra.gmra.mxu1 %vm122_vm2, %v2242_v3 }
0x1128   :  { %4490 = vmatpush3.xpose.msk.msra.mxu1 %vm299_vm3, %v2337_v55  ;;  %4493 = vmatprep.mubr.msk.f32.mxu1 %vm299_vm3, %v2331_v4  ;;  %v4075_v55 = vld [vmem:[%s5663_s1 + $0x28] sm:$0xff] }
0x1129   :  { %4491 = vmatprep.subr.msk.mxu1 %vm299_vm3, %v2335_v62 }
0x112c   :  { %4492 = vmatpush3.xpose.msk.msra.mxu1 %vm299_vm3, %v2335_v62  ;;  %v4074_v62 = vld [vmem:[%s5663_s1 + $0x20] sm:$0xff]  ;;  %s5673_s1 = smov 48  }
0x112d   :  { %4503 = vmatprep.subr.mxu1 %v4033_v17 }
0x112f   :  { %4494 = vmatmul.mubr.msk.f32.vlgmr.msra.gmra.mxu1 %vm299_vm3, %v2333_v32 }
0x1130   :  { %4504 = vmatpush3.msra.mxu1 %v4033_v17 }
0x11e7   :  { %v4488_v31 = vpop.f32.mrf.mxu1 }
0x11e9   :  { %v2321_v7 = vpop.f32.mrf.mxu1 }
0x11ef   :  { %v4495_v8 = vpop.f32.mrf.mxu1 }
0x11f0   :  { %v2422_v9 = vmul.f32 0.35355338, %v4495_v8 }
0x11f1   :  { %v2412_v10 = vpop.f32.mrf.mxu1 }
0x11f2   :  { %v2421_v11 = vmul.f32 0.35355338, %v2412_v10  ;;  %v2424_v13 = vadd.f32 %v2422_v9, %v4970_v29 }
0x11f4   :  { %v2428_v15 = vsel %vm122_vm2, %v2424_v13, -inf  ;;  %v2423_v60 = vadd.f32 %v2421_v11, %v4972_v33 }
0x11f5   :  { %2429 = vmax.xlane.f32.xlu1 %v2428_v15 }
0x11f6   :  { %v2425_v16 = vsel %vm122_vm2, %v2423_v60, -inf }
0x11f7   :  { %2426 = vmax.xlane.f32.xlu0 %v2425_v16 }
0x1206   :  { %2449 = vrot.lane.b32.xlu1 %v5277_v2, %s5668_s28 }
0x120a   :  { %2702 = vrot.lane.b32.xlu1 %v5277_v2, %s5669_s6 }
0x120e   :  { %2700 = vrot.lane.b32.xlu1 %v5279_v35, %s5669_s6 }
0x1212   :  { %2698 = vrot.lane.b32.xlu1 %v5277_v2, %s5670_s30 }
0x1216   :  { %2987 = vrot.lane.b32.xlu1 %v5279_v35, %s5671_s5 }
0x121a   :  { %2985 = vrot.lane.b32.xlu1 %v5277_v2, %s5672_s27 }
0x127e   :  { %v2430_v18 = vpop.xlane.xlu1 %2429 }
0x127f   :  { %v2432_v19 = vsub.f32 %v2424_v13, %v2430_v18 }
0x1280   :  { %v2427_v20 = vpop.xlane.xlu0 %2426 }
0x1281   :  { %v2435_v22 = vmul.f32 1.442695, %v2432_v19  ;;  %v2431_v23 = vsub.f32 %v2423_v60, %v2427_v20 }
0x1282   :  { %v2450_v25 = vpop.permute.xlu1 %2449 }
0x1283   :  { %4706 = vpow2.f32 %v2435_v22  ;;  %v2433_v26 = vmul.f32 1.442695, %v2431_v23  ;;  %4496 = vmatprep.subr.mxu0 %v2450_v25 }
0x1284   :  { %4497 = vmatpush3.msra.mxu0 %v2450_v25 }
0x1285   :  { %4708 = vpow2.f32 %v2433_v26 }
0x1286   :  { %v2703_v5 = vpop.permute.xlu1 %2702 }
0x1287   :  { %4513 = vmatprep.subr.msk.mxu1 %vm299_vm3, %v2703_v5 }
0x128a   :  { %v2701_v52 = vpop.permute.xlu1 %2700 }
0x128e   :  { %v2699_v21 = vpop.permute.xlu1 %2698 }
0x1290   :  { %v4707_v30 = vpop.eup %4706 }
0x1291   :  { %v2440_v34 = vsel %vm122_vm2, %v4707_v30, 0.0 }
0x1292   :  { %v4709_v36 = vpop.eup %4708  ;;  %2441 = vadd.xlane.f32.xlu0 %v2440_v34  ;;  %v2988_v58 = vpop.permute.xlu1 %2987 }
0x1293   :  { %v2437_v37 = vsel %vm122_vm2, %v4709_v36, 0.0 }
0x1296   :  { %2438 = vadd.xlane.f32.xlu0 %v2437_v37  ;;  %v2986_v61 = vpop.permute.xlu1 %2985 }
0x12ac   :  { %2447 = vrot.lane.b32.xlu0 %v5279_v35, %s5668_s28 }
0x12b0   :  { %2696 = vrot.lane.b32.xlu0 %v5279_v35, %s5670_s30 }
0x12b4   :  { %2989 = vrot.lane.b32.xlu0 %v5277_v2, %s5671_s5  ;;  %s5674_s5 = smov 40  }
0x12b8   :  { %2983 = vrot.lane.b32.xlu0 %v5279_v35, %s5672_s27 }
0x131b   :  { %v2442_v38 = vpop.xlane.xlu0 %2441 }
0x131c   :  { %4710 = vrcp.f32 %v2442_v38 }
0x131f   :  { %v2439_v39 = vpop.xlane.xlu0 %2438 }
0x1320   :  { %4712 = vrcp.f32 %v2439_v39 }
0x1323   :  { %v2448_v40 = vpop.permute.xlu0 %2447 }
0x1324   :  { %4498 = vmatprep.subr.mxu0 %v2448_v40 }
0x1325   :  { %4499 = vmatpush3.msra.mxu0 %v2448_v40 }
0x1326   :  { %4508 = vmatprep.subr.mxu0 %v4032_v42 }
0x1327   :  { %v2697_v48 = vpop.permute.xlu0 %2696 }
0x1329   :  { %v4711_v43 = vpop.eup %4710 }
0x132a   :  { %v2446_v47 = vmul.f32 %v4711_v43, %v4707_v30 }
0x132b   :  { %v2990_v14 = vpop.permute.xlu0 %2989 }
0x132d   :  { %v4713_v44 = vpop.eup %4712 }
0x132e   :  { %v2444_v45 = vmul.f32 %v4713_v44, %v4709_v36  ;;  %v4034_v44 = vld [vmem:[%s5662_s3 + $0x30] sm:$0xff] }
0x132f   :  { %v2984_v56 = vpop.permute.xlu0 %2983 }
0x1330   :  { %4500 = vmatprep.mubr.msk.f32.mxu0 %vm122_vm2, %v2444_v45 }
0x1331   :  { %4501 = vmatmul.mubr.msk.f32.vlgmr.msra.gmra.mxu0 %vm122_vm2, %v2446_v47 }
0x1332   :  { %4510 = vmatprep.mubr.msk.f32.mxu0 %vm299_vm3, %v2321_v7  ;;  %4509 = vmatpush3.msra.mxu0 %v4032_v42 }
0x1335   :  { %4511 = vmatmul.mubr.msk.f32.vlgmr.msra.gmra.mxu0 %vm299_vm3, %v4488_v31 }
0x13f1   :  { %v4502_v51 = vpop.f32.mrf.mxu0 }
0x13f3   :  { %v2525_v53 = vpop.f32.mrf.mxu0 }
0x13f4   :  { %4505 = vmatprep.mubr.msk.f32.mxu1 %vm299_vm3, %v2525_v53 }
0x13f5   :  { %4506 = vmatmul.mubr.msk.f32.vlgmr.msra.gmra.mxu1 %vm299_vm3, %v4502_v51 }
0x13f6   :  { %4514 = vmatpush3.xpose.msk.msra.mxu1 %vm299_vm3, %v2703_v5  ;;  %4517 = vmatprep.mubr.msk.f32.mxu1 %vm299_vm3, %v2697_v48 }
0x13f7   :  { %4515 = vmatprep.subr.msk.mxu1 %vm299_vm3, %v2701_v52 }
0x13fa   :  { %4516 = vmatpush3.xpose.msk.msra.mxu1 %vm299_vm3, %v2701_v52 }
0x13fb   :  { %4532 = vmatprep.subr.msk.mxu1 %vm299_vm3, %v2990_v14 }
0x13fd   :  { %4518 = vmatmul.mubr.msk.f32.vlgmr.msra.gmra.mxu1 %vm299_vm3, %v2699_v21 }
0x13fe   :  { %4533 = vmatpush3.xpose.msk.msra.mxu1 %vm299_vm3, %v2990_v14  ;;  %4536 = vmatprep.mubr.msk.f32.mxu1 %vm299_vm3, %v2984_v56 }
0x13ff   :  { %4534 = vmatprep.subr.msk.mxu1 %vm299_vm3, %v2988_v58 }
0x1402   :  { %4535 = vmatpush3.xpose.msk.msra.mxu1 %vm299_vm3, %v2988_v58  ;;  %v4512_v58 = vpop.f32.mrf.mxu0 }
0x1403   :  { %4551 = vmatprep.subr.mxu1 %v4750_v6 }
0x1405   :  { %4537 = vmatmul.mubr.msk.f32.vlgmr.msra.gmra.mxu1 %vm299_vm3, %v2986_v61 }
0x1406   :  { %4552 = vmatpush3.msra.mxu1 %v4077_v59  ;;  %4559 = vmatprep.mubr.msk.f32.mxu1 %vm4751_vm1, %v4750_v6  ;;  %v2687_v59 = vpop.f32.mrf.mxu0 }
0x1407   :  { %4553 = vmatprep.subr.mxu1 %v4750_v6 }
0x1408   :  { %4554 = vmatpush3.msra.mxu1 %v4076_v57 }
0x1409   :  { %4555 = vmatprep.subr.mxu1 %v4750_v6 }
0x140a   :  { %4556 = vmatpush3.msra.mxu1 %v4075_v55 }
0x140b   :  { %4557 = vmatprep.subr.mxu1 %v4750_v6 }
0x140c   :  { %4558 = vmatpush3.msra.mxu1 %v4074_v62 }
0x140d   :  { %4560 = vmatmul.mubr.msk.f32.vlgmr.msra.gmra.mxu1 %vm207_vm0, %v5057_v46 }
0x14b5   :  { %v5389_v63 = vpop.f32.mrf.mxu1 }
0x14b7   :  { %v5391_v49 = vpop.f32.mrf.mxu1 }
0x14bd   :  { %v4519_v50 = vpop.f32.mrf.mxu1 }
0x14be   :  { %v2788_v0 = vmul.f32 0.35355338, %v4519_v50 }
0x14bf   :  { %v2778_v24 = vpop.f32.mrf.mxu1 }
0x14c0   :  { %v2787_v1 = vmul.f32 0.35355338, %v2778_v24  ;;  %v2790_v3 = vadd.f32 %v2788_v0, %v4970_v29 }
0x14c2   :  { %v2794_v4 = vsel %vm122_vm2, %v2790_v3, -inf  ;;  %v2789_v32 = vadd.f32 %v2787_v1, %v4972_v33  ;;  %v4035_v1 = vld [vmem:[%s5662_s3 + $0x38] sm:$0xff] }
0x14c3   :  { %2795 = vmax.xlane.f32.xlu1 %v2794_v4 }
0x14c4   :  { %v2791_v31 = vsel %vm122_vm2, %v2789_v32, -inf }
0x14c5   :  { %2792 = vmax.xlane.f32.xlu0 %v2791_v31  ;;  %v4538_v7 = vpop.f32.mrf.mxu1 }
0x14c6   :  { %v3075_v34 = vmul.f32 0.35355338, %v4538_v7 }
0x14c7   :  { %v3065_v46 = vpop.f32.mrf.mxu1 }
0x14c8   :  { %v3074_v10 = vmul.f32 0.35355338, %v3065_v46  ;;  %v3077_v38 = vadd.f32 %v3075_v34, %v4970_v29 }
0x14ca   :  { %v3076_v11 = vadd.f32 %v3074_v10, %v4972_v33  ;;  %v3081_v39 = vsel %vm122_vm2, %v3077_v38, -inf }
0x14cc   :  { %v3078_v13 = vsel %vm122_vm2, %v3076_v11, -inf }
0x14cd   :  { %v5397_v8 = vpop.f32.mrf.mxu1 }
0x14cf   :  { %v4561_v9 = vpop.f32.mrf.mxu1 }
0x14d4   :  { %2815 = vrot.lane.b32.xlu1 %v5277_v2, %s5673_s1 }
0x14f8   :  { %3079 = vmax.xlane.f32.xlu1 %v3078_v13  ;;  %v4079_v13 = vld [vmem:[%s5607_s11 + $0x1] ss:$0 sm:$0xff] }
0x154c   :  { %v2796_v15 = vpop.xlane.xlu1 %2795 }
0x154d   :  { %v2798_v60 = vsub.f32 %v2790_v3, %v2796_v15  ;;  %v2693_v3 = vadd.f32 %v4512_v58, %v5389_v63  ;;  %v4083_v63 = vld [vmem:[%s5665_s26 + $0x30] sm:$0xff]  ;;  %v4081_v15 = vld [vmem:[%s5665_s26 + $0x20] sm:$0xff] }
0x154e   :  { %v2793_v16 = vpop.xlane.xlu0 %2792 }
0x154f   :  { %v2801_v17 = vmul.f32 1.442695, %v2798_v60  ;;  %v2797_v18 = vsub.f32 %v2789_v32, %v2793_v16  ;;  %v2688_v32 = vadd.f32 %v2687_v59, %v5391_v49  ;;  %v4082_v49 = vld [vmem:[%s5665_s26 + $0x28] sm:$0xff]  ;;  %v3408_v60 = vadd.f32 %v4079_v13, %v5397_v8 }
0x1550   :  { %v2816_v19 = vpop.permute.xlu1 %2815 }
0x1551   :  { %4714 = vpow2.f32 %v2801_v17  ;;  %v2799_v20 = vmul.f32 1.442695, %v2797_v18  ;;  %4520 = vmatprep.subr.mxu0 %v2816_v19  ;;  %v4069_v17 = vld [vmem:[%s5608_s7 + $0x1] ss:$0 sm:$0xff] }
0x1552   :  { %4521 = vmatpush3.msra.mxu0 %v2816_v19 }
0x1553   :  { %4716 = vpow2.f32 %v2799_v20 }
0x155e   :  { %v4715_v22 = vpop.eup %4714 }
0x155f   :  { %v2806_v23 = vsel %vm122_vm2, %v4715_v22, 0.0 }
0x1560   :  { %v4717_v25 = vpop.eup %4716  ;;  %2807 = vadd.xlane.f32.xlu0 %v2806_v23 }
0x1561   :  { %v2803_v33 = vsel %vm122_vm2, %v4717_v25, 0.0 }
0x1564   :  { %2804 = vadd.xlane.f32.xlu0 %v2803_v33 }
0x157a   :  { %2813 = vrot.lane.b32.xlu0 %v5279_v35, %s5673_s1 }
0x1581   :  { %v3080_v26 = vpop.xlane.xlu1 %3079 }
0x1582   :  { %v3084_v5 = vsub.f32 %v3076_v11, %v3080_v26  ;;  %v4084_v11 = vld [vmem:[%s5665_s26 + $0x38] sm:$0xff] }
0x1584   :  { %v3086_v30 = vmul.f32 1.442695, %v3084_v5 }
0x1586   :  { %4718 = vpow2.f32 %v3086_v30 }
0x1593   :  { %v4719_v36 = vpop.eup %4718 }
0x1594   :  { %v3090_v37 = vsel %vm122_vm2, %v4719_v36, 0.0 }
0x1595   :  { %3091 = vadd.xlane.f32.xlu1 %v3090_v37 }
0x1599   :  { %3082 = vmax.xlane.f32.xlu0 %v3081_v39 }
0x15a6   :  { %3102 = vrot.lane.b32.xlu1 %v5277_v2, %s5674_s5 }
0x15e9   :  { %v2808_v40 = vpop.xlane.xlu0 %2807 }
0x15ea   :  { %4720 = vrcp.f32 %v2808_v40 }
0x15ed   :  { %v2805_v42 = vpop.xlane.xlu0 %2804 }
0x15ee   :  { %4722 = vrcp.f32 %v2805_v42 }
0x15f1   :  { %v2814_v43 = vpop.permute.xlu0 %2813 }
0x15f2   :  { %4522 = vmatprep.subr.mxu0 %v2814_v43 }
0x15f3   :  { %4523 = vmatpush3.msra.mxu0 %v2814_v43 }
0x15f4   :  { %4527 = vmatprep.subr.mxu0 %v4034_v44 }
0x15f7   :  { %v4721_v29 = vpop.eup %4720 }
0x15f8   :  { %v2812_v48 = vmul.f32 %v4721_v29, %v4715_v22 }
0x15fb   :  { %v4723_v45 = vpop.eup %4722 }
0x15fc   :  { %v2810_v47 = vmul.f32 %v4723_v45, %v4717_v25 }
0x15fe   :  { %4524 = vmatprep.mubr.msk.f32.mxu0 %vm122_vm2, %v2810_v47 }
0x15ff   :  { %4525 = vmatmul.mubr.msk.f32.vlgmr.msra.gmra.mxu0 %vm122_vm2, %v2812_v48  ;;  %v4086_v48 = vld [vmem:[%s5609_s13 + $0x1] ss:$0 sm:$0xff] }
0x1600   :  { %4528 = vmatpush3.msra.mxu0 %v4034_v44 }
0x161e   :  { %v3092_v2 = vpop.xlane.xlu1 %3091 }
0x1622   :  { %v3103_v51 = vpop.permute.xlu1 %3102  ;;  %v3083_v52 = vpop.xlane.xlu0 %3082 }
0x1623   :  { %v3085_v53 = vsub.f32 %v3077_v38, %v3083_v52  ;;  %4539 = vmatprep.subr.mxu0 %v3103_v51 }
0x1625   :  { %v3088_v14 = vmul.f32 1.442695, %v3085_v53 }
0x1627   :  { %4724 = vpow2.f32 %v3088_v14 }
0x1628   :  { %4726 = vrcp.f32 %v3092_v2 }
0x1634   :  { %v4725_v21 = vpop.eup %4724 }
0x1635   :  { %v3093_v56 = vsel %vm122_vm2, %v4725_v21, 0.0  ;;  %v4727_v61 = vpop.eup %4726 }
0x1636   :  { %3094 = vadd.xlane.f32.xlu0 %v3093_v56  ;;  %v3097_v50 = vmul.f32 %v4727_v61, %v4719_v36  ;;  %v4073_v61 = vld [vmem:[%s5611_s9 + $0x1] ss:$0 sm:$0xff] }
0x164c   :  { %3100 = vrot.lane.b32.xlu0 %v5279_v35, %s5674_s5 }
0x16bf   :  { %v4526_v57 = vpop.f32.mrf.mxu0  ;;  %v3095_v55 = vpop.xlane.xlu0 %3094 }
0x16c0   :  { %4728 = vrcp.f32 %v3095_v55 }
0x16c1   :  { %v2891_v62 = vpop.f32.mrf.mxu0 }
0x16c2   :  { %4529 = vmatprep.mubr.msk.f32.mxu0 %vm299_vm3, %v2891_v62 }
0x16c3   :  { %4530 = vmatmul.mubr.msk.f32.vlgmr.msra.gmra.mxu0 %vm299_vm3, %v4526_v57  ;;  %v3101_v0 = vpop.permute.xlu0 %3100 }
0x16c4   :  { %4540 = vmatpush3.msra.mxu0 %v3103_v51  ;;  %4543 = vmatprep.mubr.msk.f32.mxu0 %vm122_vm2, %v3097_v50 }
0x16c5   :  { %4541 = vmatprep.subr.mxu0 %v3101_v0 }
0x16c6   :  { %4542 = vmatpush3.msra.mxu0 %v3101_v0 }
0x16c7   :  { %4546 = vmatprep.subr.mxu0 %v4035_v1 }
0x16cd   :  { %v4729_v35 = vpop.eup %4728 }
0x16ce   :  { %v3099_v24 = vmul.f32 %v4729_v35, %v4725_v21  ;;  %v4072_v21 = vld [vmem:[%s5610_s8 + $0x1] ss:$0 sm:$0xff] }
0x16d0   :  { %4544 = vmatmul.mubr.msk.f32.vlgmr.msra.gmra.mxu0 %vm122_vm2, %v3099_v24 }
0x16d1   :  { %4547 = vmatpush3.msra.mxu0 %v4035_v1 }
0x16d2   :  { %4562 = vmatprep.subr.mxu0 %v4750_v6 }
0x1783   :  { %v4531_v4 = vpop.f32.mrf.mxu0 }
0x1784   :  { %v2982_v31 = vadd.f32 %v4531_v4, %v2693_v3 }
0x1785   :  { %v2972_v7 = vpop.f32.mrf.mxu0 }
0x1786   :  { %v2981_v46 = vadd.f32 %v2972_v7, %v2688_v32 }
0x1790   :  { %v4545_v9 = vpop.f32.mrf.mxu0 }
0x1792   :  { %v3178_v10 = vpop.f32.mrf.mxu0 }
0x1793   :  { %4548 = vmatprep.mubr.msk.f32.mxu0 %vm299_vm3, %v3178_v10 }
0x1794   :  { %4549 = vmatmul.mubr.msk.f32.vlgmr.msra.gmra.mxu0 %vm299_vm3, %v4545_v9 }
0x1795   :  { %4563 = vmatpush3.msra.mxu0 %v4084_v11  ;;  %4570 = vmatprep.mubr.msk.f32.mxu0 %vm4751_vm1, %v4750_v6 }
0x1796   :  { %4564 = vmatprep.subr.mxu0 %v4750_v6 }
0x1797   :  { %4565 = vmatpush3.msra.mxu0 %v4083_v63 }
0x1798   :  { %4566 = vmatprep.subr.mxu0 %v4750_v6 }
0x1799   :  { %4567 = vmatpush3.msra.mxu0 %v4082_v49 }
0x179a   :  { %4568 = vmatprep.subr.mxu0 %v4750_v6 }
0x179b   :  { %4569 = vmatpush3.msra.mxu0 %v4081_v15  ;;  %v4095_v15 = vld [vmem:[%s5612_s16 + $0x38] sm:$0xff] }
0x179c   :  { %4571 = vmatmul.mubr.msk.f32.vlgmr.msra.gmra.mxu0 %vm207_vm0, %v3408_v60  ;;  %v4094_v60 = vld [vmem:[%s5612_s16 + $0x30] sm:$0xff]  ;;  %4573 = vmatprep.subr.mxu1 %v4095_v15 }
0x179d   :  { %4574 = vmatpush3.msra.mxu1 %v4095_v15 }
0x179e   :  { %4575 = vmatprep.subr.mxu1 %v4094_v60 }
0x179f   :  { %4576 = vmatpush3.msra.mxu1 %v4094_v60 }
0x1854   :  { %v4550_v16 = vpop.f32.mrf.mxu0 }
0x1855   :  { %v3269_v18 = vadd.f32 %v4550_v16, %v2982_v31  ;;  %v4093_v16 = vld [vmem:[%s5612_s16 + $0x28] sm:$0xff] }
0x1856   :  { %v3259_v19 = vpop.f32.mrf.mxu0  ;;  %4577 = vmatprep.subr.mxu1 %v4093_v16 }
0x1857   :  { %v3279_v20 = vadd.f32 %v4069_v17, %v3269_v18  ;;  %v3268_v22 = vadd.f32 %v3259_v19, %v2981_v46  ;;  %4578 = vmatpush3.msra.mxu1 %v4093_v16 }
0x1859   :  { %v3278_v23 = vadd.f32 %v4069_v17, %v3268_v22  ;;  %v3281_v25 = vadd.f32 %v3279_v20, %v5268_v28  ;;  %v4092_v17 = vld [vmem:[%s5612_s16 + $0x20] sm:$0xff] }
0x185a   :  { %4579 = vmatprep.subr.mxu1 %v4092_v17 }
0x185b   :  { %v3289_v33 = vsel %vm207_vm0, %v3281_v25, 0.0  ;;  %v3280_v8 = vadd.f32 %v3278_v23, %v5266_v27  ;;  %4580 = vmatpush3.msra.mxu1 %v4092_v17 }
0x185c   :  { %v3493_v6 = vpop.f32.mrf.mxu0  ;;  %3290 = vadd.xlane.f32.xlu0 %v3289_v33 }
0x185d   :  { %v3286_v26 = vsel %vm207_vm0, %v3280_v8, 0.0  ;;  %v3494_v51 = vadd.f32 %v4086_v48, %v3493_v6  ;;  %v4105_v48 = vld [vmem:[%s5615_s18 + $0xa8] sm:$0xff] }
0x185e   :  { %v4572_v5 = vpop.f32.mrf.mxu0  ;;  %3287 = vadd.xlane.f32.xlu1 %v3286_v26 }
0x185f   :  { %v3504_v52 = vrot.slane %v3494_v51, %v5140_v41  ;;  %v4103_v51 = vld [vmem:[%s5615_s18 + $0x98] sm:$0xff] }
0x1861   :  { %v3505_v53 = vcombine.high %v3504_v52, %v3504_v52  ;;  %v3512_v57 = vrot.slane %v3504_v52, %v5140_v41  ;;  %v4102_v52 = vld [vmem:[%s5615_s18 + $0x90] sm:$0xff] }
0x1863   :  { %v3519_v58 = vrot.slane %v3505_v53, %v5140_v41  ;;  %v3523_v3 = vrot.slane %v3512_v57, %v5152_v54  ;;  %v4101_v53 = vld [vmem:[%s5615_s18 + $0x88] sm:$0xff] }
0x1865   :  { %v3527_v0 = vrot.slane %v3519_v58, %v5152_v54 }
0x18e5   :  { %v3291_v30 = vpop.xlane.xlu0 %3290 }
0x18e6   :  { %v3293_v34 = vmul.f32 0.03125, %v3291_v30 }
0x18e7   :  { %v3288_v36 = vpop.xlane.xlu1 %3287 }
0x18e8   :  { %v3295_v37 = vsub.f32 %v3281_v25, %v3293_v34  ;;  %v3292_v38 = vmul.f32 0.03125, %v3288_v36  ;;  %v4091_v34 = vld [vmem:[%s5614_s15 + $0x1] ss:$0 sm:$0xff] }
0x18ea   :  { %v3294_v39 = vsub.f32 %v3280_v8, %v3292_v38  ;;  %v3297_v40 = vmul.f32 %v3295_v37, %v3295_v37  ;;  %v4090_v8 = vld [vmem:[%s5613_s14 + $0x1] ss:$0 sm:$0xff] }
0x18ec   :  { %v3301_v42 = vsel %vm207_vm0, %v3297_v40, 0.0  ;;  %v3296_v28 = vmul.f32 %v3294_v39, %v3294_v39  ;;  %v4114_v40 = vld [vmem:[%s5615_s18 + $0xf0] sm:$0xff] }
0x18ed   :  { %3302 = vadd.xlane.f32.xlu0 %v3301_v42  ;;  %v4113_v42 = vld [vmem:[%s5615_s18 + $0xe8] sm:$0xff] }
0x18ee   :  { %v3298_v43 = vsel %vm207_vm0, %v3296_v28, 0.0  ;;  %v4112_v28 = vld [vmem:[%s5615_s18 + $0xe0] sm:$0xff] }
0x18ef   :  { %3299 = vadd.xlane.f32.xlu1 %v3298_v43  ;;  %v4111_v43 = vld [vmem:[%s5615_s18 + $0xd8] sm:$0xff] }
0x1976   :  { %v3303_v27 = vpop.xlane.xlu0 %3302 }
0x1977   :  { %v3305_v44 = vmul.f32 0.03125, %v3303_v27  ;;  %v4110_v27 = vld [vmem:[%s5615_s18 + $0xd0] sm:$0xff] }
0x1978   :  { %v3300_v29 = vpop.xlane.xlu1 %3299 }
0x1979   :  { %v3307_v45 = vadd.f32 1e-05, %v3305_v44  ;;  %v3304_v47 = vmul.f32 0.03125, %v3300_v29  ;;  %v4109_v44 = vld [vmem:[%s5615_s18 + $0xc8] sm:$0xff]  ;;  %v4108_v29 = vld [vmem:[%s5615_s18 + $0xc0] sm:$0xff] }
0x197b   :  { %4730 = vrsqrt.f32 %v3307_v45  ;;  %v3306_v2 = vadd.f32 1e-05, %v3304_v47  ;;  %v4107_v45 = vld [vmem:[%s5615_s18 + $0xb8] sm:$0xff]  ;;  %v4106_v47 = vld [vmem:[%s5615_s18 + $0xb0] sm:$0xff] }
0x197d   :  { %4732 = vrsqrt.f32 %v3306_v2  ;;  %v4104_v2 = vld [vmem:[%s5615_s18 + $0xa0] sm:$0xff] }
0x1988   :  { %v4731_v14 = vpop.eup %4730 }
0x1989   :  { %v3311_v56 = vmul.f32 %v4731_v14, %v3295_v37  ;;  %v4100_v14 = vld [vmem:[%s5615_s18 + $0x80] sm:$0xff] }
0x198a   :  { %v4733_v59 = vpop.eup %4732 }
0x198b   :  { %v3319_v55 = vmul.f32 %v4072_v21, %v3311_v56  ;;  %v3310_v62 = vmul.f32 %v4733_v59, %v3294_v39  ;;  %v4115_v39 = vld [vmem:[%s5615_s18 + $0xf8] sm:$0xff] }
0x198c   :  { %4584 = vmatprep.subr.mxu0 %v4115_v39 }
0x198d   :  { %v3327_v50 = vadd.f32 %v4073_v61, %v3319_v55  ;;  %v3318_v35 = vmul.f32 %v4072_v21, %v3310_v62  ;;  %4585 = vmatpush3.msra.mxu0 %v4115_v39  ;;  %v4097_v21 = vld [vmem:[%s5616_s17 + $0x1] ss:$0 sm:$0xff] }
0x198e   :  { %4586 = vmatprep.subr.mxu0 %v4114_v40 }
0x198f   :  { %v3531_v24 = vadd.f32 %v3527_v0, %v3327_v50  ;;  %v3326_v1 = vadd.f32 %v4073_v61, %v3318_v35  ;;  %4587 = vmatpush3.msra.mxu0 %v4114_v40 }
0x1990   :  { %4588 = vmatprep.subr.mxu0 %v4113_v42 }
0x1991   :  { %v3539_v4 = vsel %vm207_vm0, %v3531_v24, 0.0  ;;  %v3530_v32 = vadd.f32 %v3523_v3, %v3326_v1  ;;  %4589 = vmatpush3.msra.mxu0 %v4113_v42 }
0x1992   :  { %3540 = vadd.xlane.f32.xlu0 %v3539_v4  ;;  %4590 = vmatprep.subr.mxu0 %v4112_v28 }
0x1993   :  { %v3536_v31 = vsel %vm207_vm0, %v3530_v32, 0.0  ;;  %4591 = vmatpush3.msra.mxu0 %v4112_v28 }
0x1994   :  { %3537 = vadd.xlane.f32.xlu1 %v3536_v31  ;;  %4592 = vmatprep.subr.mxu0 %v4111_v43 }
0x1995   :  { %4593 = vmatpush3.msra.mxu0 %v4111_v43 }
0x1996   :  { %4594 = vmatprep.subr.mxu0 %v4110_v27 }
0x1997   :  { %4595 = vmatpush3.msra.mxu0 %v4110_v27 }
0x1998   :  { %4596 = vmatprep.subr.mxu0 %v4109_v44 }
0x1999   :  { %4597 = vmatpush3.msra.mxu0 %v4109_v44 }
0x199a   :  { %4598 = vmatprep.subr.mxu0 %v4108_v29 }
0x199b   :  { %4599 = vmatpush3.msra.mxu0 %v4108_v29 }
0x199c   :  { %4600 = vmatprep.subr.mxu0 %v4107_v45 }
0x199d   :  { %4601 = vmatpush3.msra.mxu0 %v4107_v45 }
0x199e   :  { %4602 = vmatprep.subr.mxu0 %v4106_v47 }
0x199f   :  { %4603 = vmatpush3.msra.mxu0 %v4106_v47 }
0x19a0   :  { %4604 = vmatprep.subr.mxu0 %v4105_v48 }
0x19a1   :  { %4605 = vmatpush3.msra.mxu0 %v4105_v48  ;;  %v4117_v48 = vld [vmem:[%s5617_s19 + $0x1] ss:$0 sm:$0xff] }
0x19a2   :  { %4606 = vmatprep.subr.mxu0 %v4104_v2 }
0x19a3   :  { %4607 = vmatpush3.msra.mxu0 %v4104_v2 }
0x19a4   :  { %4608 = vmatprep.subr.mxu0 %v4103_v51 }
0x19a5   :  { %4609 = vmatpush3.msra.mxu0 %v4103_v51 }
0x19a6   :  { %4610 = vmatprep.subr.mxu0 %v4102_v52 }
0x19a7   :  { %4611 = vmatpush3.msra.mxu0 %v4102_v52 }
0x19a8   :  { %4612 = vmatprep.subr.mxu0 %v4101_v53 }
0x19a9   :  { %4613 = vmatpush3.msra.mxu0 %v4101_v53 }
0x19aa   :  { %4614 = vmatprep.subr.mxu0 %v4100_v14 }
0x19ab   :  { %4615 = vmatpush3.msra.mxu0 %v4100_v14 }
0x1a1b   :  { %v3541_v7 = vpop.xlane.xlu0 %3540 }
0x1a1c   :  { %v3543_v46 = vmul.f32 0.03125, %v3541_v7 }
0x1a1d   :  { %v3538_v41 = vpop.xlane.xlu1 %3537 }
0x1a1e   :  { %v3545_v9 = vsub.f32 %v3531_v24, %v3543_v46  ;;  %v3542_v10 = vmul.f32 0.03125, %v3538_v41 }
0x1a20   :  { %v3544_v11 = vsub.f32 %v3530_v32, %v3542_v10  ;;  %v3547_v63 = vmul.f32 %v3545_v9, %v3545_v9 }
0x1a22   :  { %v3551_v49 = vsel %vm207_vm0, %v3547_v63, 0.0  ;;  %v3546_v13 = vmul.f32 %v3544_v11, %v3544_v11 }
0x1a23   :  { %3552 = vadd.xlane.f32.xlu0 %v3551_v49 }
0x1a24   :  { %v3548_v54 = vsel %vm207_vm0, %v3546_v13, 0.0 }
0x1a25   :  { %3549 = vadd.xlane.f32.xlu1 %v3548_v54 }
0x1aac   :  { %v3553_v18 = vpop.xlane.xlu0 %3552 }
0x1aad   :  { %v3555_v19 = vmul.f32 0.03125, %v3553_v18 }
0x1aae   :  { %v3550_v20 = vpop.xlane.xlu1 %3549 }
0x1aaf   :  { %v3557_v22 = vadd.f32 1e-05, %v3555_v19  ;;  %v3554_v23 = vmul.f32 0.03125, %v3550_v20 }
0x1ab1   :  { %4734 = vrsqrt.f32 %v3557_v22  ;;  %v3556_v25 = vadd.f32 1e-05, %v3554_v23 }
0x1ab3   :  { %4736 = vrsqrt.f32 %v3556_v25 }
0x1abe   :  { %v4735_v33 = vpop.eup %4734 }
0x1abf   :  { %v3561_v6 = vmul.f32 %v4735_v33, %v3545_v9 }
0x1ac0   :  { %v4737_v26 = vpop.eup %4736 }
0x1ac1   :  { %v3560_v5 = vmul.f32 %v4737_v26, %v3544_v11  ;;  %v3569_v30 = vmul.f32 %v4090_v8, %v3561_v6 }
0x1ac3   :  { %v3568_v36 = vmul.f32 %v4090_v8, %v3560_v5  ;;  %v5501_v38 = vadd.f32 %v4091_v34, %v3569_v30 }
0x1ac5   :  { %v5499_v37 = vadd.f32 %v4091_v34, %v3568_v36 }
0x1ac7   :  { %4581 = vmatprep.mubr.msk.f32.mxu1 %vm207_vm0, %v5499_v37 }
0x1ac8   :  { %4582 = vmatmul.mubr.msk.f32.vlgmr.msra.gmra.mxu1 %vm207_vm0, %v5501_v38 }
0x1b88   :  { %v4583_v56 = vpop.f32.mrf.mxu1 }
0x1b89   :  { %v3669_v58 = vadd.f32 %v4583_v56, %v4097_v21 }
0x1b8a   :  { %v3663_v59 = vpop.f32.mrf.mxu1 }
0x1b8b   :  { %v3675_v61 = vmul.f32 0.70710677, %v3669_v58  ;;  %v3664_v57 = vadd.f32 %v4097_v21, %v3663_v59  ;;  %v3673_v29 = vmul.f32 0.5, %v3669_v58 }
0x1b8d   :  { %v3681_v55 = vand.u32 2147483647, %v3675_v61  ;;  %v3674_v62 = vmul.f32 0.70710677, %v3664_v57  ;;  %vm3677_vm10 = vcmp.ge.f32.partialorder %v3675_v61, 0.0  ;;  %v3672_v27 = vmul.f32 0.5, %v3664_v57 }
0x1b8e   :  { %v3679_v34 = vsel %vm3677_vm10, 1.0, %v4765_v12 }
0x1b8f   :  { %v3683_v50 = vmul.f32 0.3275911, %v3681_v55  ;;  %v3680_v0 = vand.u32 2147483647, %v3674_v62  ;;  %v3709_v3 = vsub.f32 0.0, %v3681_v55  ;;  %vm3676_vm11 = vcmp.ge.f32.partialorder %v3674_v62, 0.0 }
0x1b90   :  { %v3678_v42 = vsel %vm3676_vm11, 1.0, %v4765_v12 }
0x1b91   :  { %v3685_v35 = vadd.f32 1.0, %v3683_v50  ;;  %v3682_v24 = vmul.f32 0.3275911, %v3680_v0  ;;  %v3708_v4 = vsub.f32 0.0, %v3680_v0  ;;  %v3711_v32 = vmul.f32 %v3709_v3, %v3681_v55  ;;  %v3874_v3 = vld [vmem:[%s5620_s22] sm:$0xff] }
0x1b93   :  { %4738 = vrcp.f32 %v3685_v35  ;;  %v3684_v1 = vadd.f32 1.0, %v3682_v24  ;;  %v3710_v7 = vmul.f32 %v3708_v4, %v3680_v0  ;;  %v3714_v41 = vmul.f32 1.442695, %v3711_v32  ;;  %v3876_v24 = vld [vmem:[%s5620_s22 + $0x10] sm:$0xff] }
0x1b95   :  { %4740 = vrcp.f32 %v3684_v1  ;;  %v3712_v11 = vmul.f32 1.442695, %v3710_v7  ;;  %v3875_v1 = vld [vmem:[%s5620_s22 + $0x8] sm:$0xff] }
0x1b96   :  { %4742 = vpow2.f32 %v3714_v41 }
0x1b97   :  { %4744 = vpow2.f32 %v3712_v11 }
0x1ba0   :  { %v4739_v31 = vpop.eup %4738 }
0x1ba1   :  { %v3691_v46 = vmul.f32 1.0614054, %v4739_v31 }
0x1ba2   :  { %v4741_v9 = vpop.eup %4740 }
0x1ba3   :  { %v3693_v10 = vadd.f32 -1.4531521, %v3691_v46  ;;  %v3690_v63 = vmul.f32 1.0614054, %v4741_v9  ;;  %v4743_v33 = vpop.eup %4742 }
0x1ba4   :  { %v4745_v5 = vpop.eup %4744 }
0x1ba5   :  { %v3695_v49 = vmul.f32 %v4739_v31, %v3693_v10  ;;  %v3692_v13 = vadd.f32 -1.4531521, %v3690_v63  ;;  %v4120_v10 = vld [vmem:[%s5618_s20 + $0x1] ss:$0 sm:$0xff] }
0x1ba7   :  { %v3697_v54 = vadd.f32 1.4214138, %v3695_v49  ;;  %v3694_v15 = vmul.f32 %v4741_v9, %v3692_v13 }
0x1ba9   :  { %v3699_v60 = vmul.f32 %v4739_v31, %v3697_v54  ;;  %v3696_v16 = vadd.f32 1.4214138, %v3694_v15  ;;  %v4121_v54 = vld [vmem:[%s5619_s21 + $0x1] ss:$0 sm:$0xff] }
0x1bab   :  { %v3701_v17 = vadd.f32 -0.28449672, %v3699_v60  ;;  %v3698_v18 = vmul.f32 %v4741_v9, %v3696_v16 }
0x1bad   :  { %v3703_v19 = vmul.f32 %v4739_v31, %v3701_v17  ;;  %v3700_v20 = vadd.f32 -0.28449672, %v3698_v18  ;;  %v4122_v17 = vld [vmem:[%s5621_s23] ss:$0 sm:$0xff] }
0x1baf   :  { %v3705_v22 = vadd.f32 0.2548296, %v3703_v19  ;;  %v3702_v23 = vmul.f32 %v4741_v9, %v3700_v20 }
0x1bb1   :  { %v3707_v25 = vmul.f32 %v4739_v31, %v3705_v22  ;;  %v3704_v8 = vadd.f32 0.2548296, %v3702_v23 }
0x1bb3   :  { %v3717_v6 = vmul.f32 %v4743_v33, %v3707_v25  ;;  %v3706_v26 = vmul.f32 %v4741_v9, %v3704_v8 }
0x1bb5   :  { %v3719_v30 = vsub.f32 1.0, %v3717_v6  ;;  %v3716_v36 = vmul.f32 %v4745_v5, %v3706_v26 }
0x1bb7   :  { %v3721_v39 = vmul.f32 %v3719_v30, %v3679_v34  ;;  %v3718_v40 = vsub.f32 1.0, %v3716_v36 }
0x1bb9   :  { %v3720_v28 = vmul.f32 %v3718_v40, %v3678_v42  ;;  %v3723_v43 = vadd.f32 1.0, %v3721_v39 }
0x1bbb   :  { %v3722_v44 = vadd.f32 1.0, %v3720_v28  ;;  %v3725_v47 = vmul.f32 %v3723_v43, %v3673_v29 }
0x1bbd   :  { %v3724_v45 = vmul.f32 %v3722_v44, %v3672_v27 }
0x1bbf   :  { %4616 = vmatprep.mubr.f32.mxu0 %v3724_v45 }
0x1bc0   :  { %4617 = vmatmul.mubr.f32.vlgmr.msra.gmra.mxu0 %v3725_v47 }
0x1c80   :  { %v4618_v2 = vpop.f32.mrf.mxu0 }
0x1c81   :  { %v3823_v51 = vadd.f32 %v4618_v2, %v4117_v48 }
0x1c82   :  { %v3817_v52 = vpop.f32.mrf.mxu0 }
0x1c83   :  { %v3827_v53 = vadd.f32 %v3823_v51, %v5501_v38  ;;  %v3818_v14 = vadd.f32 %v4117_v48, %v3817_v52 }
0x1c85   :  { %v3835_v12 = vsel %vm207_vm0, %v3827_v53, 0.0  ;;  %v3826_v21 = vadd.f32 %v3818_v14, %v5499_v37  ;;  %v3877_v37 = vld [vmem:[%s5620_s22 + $0x18] sm:$0xff] }
0x1c86   :  { %3836 = vadd.xlane.f32.xlu0 %v3835_v12  ;;  %4619 = vmatprep.subr.mxu1 %v3877_v37 }
0x1c87   :  { %v3832_v56 = vsel %vm207_vm0, %v3826_v21, 0.0  ;;  %4620 = vmatpush3.msra.mxu1 %v3877_v37 }
0x1c88   :  { %3833 = vadd.xlane.f32.xlu1 %v3832_v56  ;;  %4621 = vmatprep.subr.mxu1 %v3876_v24 }
0x1c89   :  { %4622 = vmatpush3.msra.mxu1 %v3876_v24 }
0x1c8a   :  { %4623 = vmatprep.subr.mxu1 %v3875_v1 }
0x1c8b   :  { %4624 = vmatpush3.msra.mxu1 %v3875_v1 }
0x1c8c   :  { %4625 = vmatprep.subr.mxu1 %v3874_v3 }
0x1c8d   :  { %4626 = vmatpush3.msra.mxu1 %v3874_v3 }
0x1d0f   :  { %v3837_v58 = vpop.xlane.xlu0 %3836 }
0x1d10   :  { %v3839_v59 = vmul.f32 0.03125, %v3837_v58 }
0x1d11   :  { %v3834_v61 = vpop.xlane.xlu1 %3833 }
0x1d12   :  { %v3841_v57 = vsub.f32 %v3827_v53, %v3839_v59  ;;  %v3838_v55 = vmul.f32 0.03125, %v3834_v61 }
0x1d14   :  { %v3840_v62 = vsub.f32 %v3826_v21, %v3838_v55  ;;  %v3843_v50 = vmul.f32 %v3841_v57, %v3841_v57 }
0x1d16   :  { %v3847_v0 = vsel %vm207_vm0, %v3843_v50, 0.0  ;;  %v3842_v35 = vmul.f32 %v3840_v62, %v3840_v62 }
0x1d17   :  { %3848 = vadd.xlane.f32.xlu0 %v3847_v0 }
0x1d18   :  { %v3844_v38 = vsel %vm207_vm0, %v3842_v35, 0.0 }
0x1d19   :  { %3845 = vadd.xlane.f32.xlu1 %v3844_v38 }
0x1da0   :  { %v3849_v4 = vpop.xlane.xlu0 %3848 }
0x1da1   :  { %v3851_v32 = vmul.f32 0.03125, %v3849_v4 }
0x1da2   :  { %v3846_v31 = vpop.xlane.xlu1 %3845 }
0x1da3   :  { %v3853_v7 = vadd.f32 1e-05, %v3851_v32  ;;  %v3850_v46 = vmul.f32 0.03125, %v3846_v31 }
0x1da5   :  { %4746 = vrsqrt.f32 %v3853_v7  ;;  %v3852_v41 = vadd.f32 1e-05, %v3850_v46 }
0x1da7   :  { %4748 = vrsqrt.f32 %v3852_v41 }
0x1db2   :  { %v4747_v9 = vpop.eup %4746 }
0x1db3   :  { %v3857_v11 = vmul.f32 %v4747_v9, %v3841_v57 }
0x1db4   :  { %v4749_v63 = vpop.eup %4748 }
0x1db5   :  { %v3856_v49 = vmul.f32 %v4749_v63, %v3840_v62  ;;  %v3865_v13 = vmul.f32 %v4120_v10, %v3857_v11 }
0x1db7   :  { %v3864_v15 = vmul.f32 %v4120_v10, %v3856_v49  ;;  %v3873_v16 = vadd.f32 %v4121_v54, %v3865_v13 }
0x1db9   :  { %v3872_v60 = vadd.f32 %v4121_v54, %v3864_v15 }
0x1dbb   :  { %4627 = vmatprep.mubr.msk.f32.mxu1 %vm207_vm0, %v3872_v60 }
0x1dbc   :  { %4628 = vmatmul.mubr.msk.f32.vlgmr.msra.gmra.mxu1 %vm207_vm0, %v3873_v16 }
0x1e7c   :  { %v4629_v18 = vpop.f32.mrf.mxu1 }
0x1e7d   :  { %v3963_v19 = vadd.f32 %v4629_v18, %v4122_v17 }
0x1e7e   :  { %v3957_v20 = vpop.f32.mrf.mxu1 }
0x1e7f   :  { %3967 = vst [vmem:[%s5622_s24 + $0x8] sm:$0xff] %v3963_v19  ;;  %v3958_v22 = vadd.f32 %v4122_v17, %v3957_v20 }
0x1e81   :  { %3966 = vst [vmem:[%s5622_s24] sm:$0xff] %v3958_v22 }

</bundles_post_ra>
